<compile_context>
chip_gen: v6e
topology: v6e:2x2x1
jax: 0.10.0
libtpu: 0.0.40
codegen_flags: <defaults>
</compile_context>

<pallas_src>
import functools

import jax
import jax.numpy as jnp
from jax.experimental import pallas as pl
from jax.experimental.pallas import tpu as pltpu

CPAD = 128  # lane-dense channel width used for all padded activations/weights


# ----------------------------------------------------------------------------
# Kernel 1: fused GEMM  out = act(x @ w + b [+ res])   (1x1 convs / header)
# ----------------------------------------------------------------------------
def _gemm_kernel(x_ref, w_ref, b_ref, o_ref, *, relu):
    acc = jnp.dot(x_ref[...], w_ref[...], preferred_element_type=jnp.float32)
    acc = acc + b_ref[...]
    if relu:
        acc = jnp.maximum(acc, 0.0)
    o_ref[...] = acc.astype(o_ref.dtype)


def _gemm_res_kernel(x_ref, w_ref, b_ref, r_ref, o_ref, *, relu):
    acc = jnp.dot(x_ref[...], w_ref[...], preferred_element_type=jnp.float32)
    acc = acc + b_ref[...] + r_ref[...].astype(jnp.float32)
    if relu:
        acc = jnp.maximum(acc, 0.0)
    o_ref[...] = acc.astype(o_ref.dtype)


def _pick_m_tile(m, max_tm=1024):
    """Largest tile <= max_tm that divides M exactly (no pad / slice on M)."""
    if m <= max_tm:
        return m
    for tm in range(max_tm, 8, -8):
        if m % tm == 0:
            return tm
    return m  # fallback: single tile


def fused_gemm(x, w, b, res=None, relu=False, out_dtype=jnp.bfloat16,
               max_tm=1024):
    """x:[M,K] bf16 @ w:[K,N] bf16 + b:[N] f32 [+ res:[M,N]], optional ReLU.

    N is already lane-dense (multiple of 128).  max_tm=1024 keeps the
    double-buffered working set (x, out, res, resident w) far below the 32 MiB
    scoped-VMEM default on v5e/v6e/v7x, so no vmem_limit override is needed.
    """
    m, k = x.shape
    _, n = w.shape
    tm = _pick_m_tile(m, max_tm)
    b2 = b.reshape(1, n).astype(jnp.float32)

    in_specs = [
        pl.BlockSpec((tm, k), lambda i: (i, 0)),   # activation tile
        pl.BlockSpec((k, n), lambda i: (0, 0)),    # resident weight
        pl.BlockSpec((1, n), lambda i: (0, 0)),    # bias row
    ]
    args = [x, w, b2]
    if res is None:
        kernel = functools.partial(_gemm_kernel, relu=relu)
    else:
        kernel = functools.partial(_gemm_res_kernel, relu=relu)
        in_specs.append(pl.BlockSpec((tm, n), lambda i: (i, 0)))
        args.append(res)

    return pl.pallas_call(
        kernel,
        out_shape=jax.ShapeDtypeStruct((m, n), out_dtype),
        grid=(m // tm,),
        in_specs=in_specs,
        out_specs=pl.BlockSpec((tm, n), lambda i: (i, 0)),
        compiler_params=pltpu.CompilerParams(dimension_semantics=("parallel",)),
    )(*args)


# ----------------------------------------------------------------------------
# Kernel 2: fused 3x3 / stride-2 / pad-1 conv (+bias, +ReLU), no im2col.
# The zero-padded input is 2x2 phase-decomposed once in XLA (~1x input bytes);
# every tap of the 3x3 window is then a *contiguous* row slice of one phase,
# so the kernel accumulates 9 small MXU dots per output row in f32.
# ----------------------------------------------------------------------------
def _conv3x3s2_kernel(p_ref, w_ref, b_ref, o_ref, *, hph, wo, relu):
    # p_ref : (4*hph, wph, cin)  4 phases of this batch element, row-stacked
    # w_ref : (9, cin, cout)     tap-major weights (bf16)
    # b_ref : (1, cout)          f32 bias
    # o_ref : (1, 1, wo, cout)   one output row
    y = pl.program_id(1)
    cout = o_ref.shape[-1]
    acc = jnp.zeros((wo, cout), jnp.float32)
    for dy in range(3):
        for dx in range(3):
            ph = (dy % 2) * 2 + (dx % 2)
            row = ph * hph + y + (dy // 2)
            tap = p_ref[row, pl.ds(dx // 2, wo), :]            # (wo, cin)
            acc += jnp.dot(tap, w_ref[dy * 3 + dx],
                           preferred_element_type=jnp.float32)
    acc = acc + b_ref[...]
    if relu:
        acc = jnp.maximum(acc, 0.0)
    o_ref[0, 0] = acc.astype(o_ref.dtype)


def _phase_decompose(x):
    """(n,H,W,C) -> (n*4*(H//2+1), W//2+1, C): 2x2 phases of zero-padded x."""
    n, h, w, c = x.shape
    xp = jnp.pad(x, ((0, 0), (1, 1), (1, 1), (0, 0)))
    phases = [xp[:, py::2, px::2, :] for py in (0, 1) for px in (0, 1)]
    ph = jnp.stack(phases, axis=1)                 # (n, 4, h//2+1, w//2+1, c)
    return ph.reshape(n * 4 * (h // 2 + 1), w // 2 + 1, c)


def conv3x3_s2(x, w, b, relu=True, out_dtype=jnp.bfloat16):
    """x:(n,H,W,Cin) bf16, w:(9,Cin,Cout) bf16, b:(Cout,) f32 -> (n,H/2,W/2,Cout)."""
    n, h, wdim, cin = x.shape
    ho, wo = h // 2, wdim // 2
    hph, wph = ho + 1, wo + 1
    cout = w.shape[-1]
    phases = _phase_decompose(x)
    kernel = functools.partial(_conv3x3s2_kernel, hph=hph, wo=wo, relu=relu)
    return pl.pallas_call(
        kernel,
        out_shape=jax.ShapeDtypeStruct((n, ho, wo, cout), out_dtype),
        grid=(n, ho),
        in_specs=[
            # whole phase stack of the current batch element; block index is
            # constant along the row axis, so it is DMA'd once per image.
            pl.BlockSpec((4 * hph, wph, cin), lambda bi, y: (bi, 0, 0)),
            pl.BlockSpec((9, cin, cout), lambda bi, y: (0, 0, 0)),
            pl.BlockSpec((1, cout), lambda bi, y: (0, 0)),
        ],
        out_specs=pl.BlockSpec((1, 1, wo, cout), lambda bi, y: (bi, y, 0, 0)),
        compiler_params=pltpu.CompilerParams(
            dimension_semantics=("parallel", "arbitrary")),
    )(phases, w, b.reshape(1, cout).astype(jnp.float32))


# ----------------------------------------------------------------------------
# Parameter construction (deterministic, synthetic, channel-padded to 128)
# ----------------------------------------------------------------------------
def _conv_param(key, kh, kw, cin, cout, cin_pad, cout_pad):
    k_w, k_b = jax.random.split(key)
    w = jax.random.normal(k_w, (kh, kw, cin, cout), jnp.float32) / jnp.sqrt(kh * kw * cin)
    b = 0.01 * jax.random.normal(k_b, (cout,), jnp.float32)
    w = jnp.pad(w, ((0, 0), (0, 0), (0, cin_pad - cin), (0, cout_pad - cout)))
    b = jnp.pad(b, (0, cout_pad - cout))
    return w.astype(jnp.bfloat16), b  # bias stays f32


def init_params(key, num_classes, dec_ch=32):
    ks = jax.random.split(key, 7)
    p = {}
    # encoder: 3x3 stride-2 convs; weights stored tap-major (9, Cin_pad, 128)
    for name, k, cin, cout, cin_pad in (("e1", ks[0], 3, 16, 3),
                                        ("e2", ks[1], 16, 32, CPAD),
                                        ("e3", ks[2], 32, 64, CPAD)):
        w, b = _conv_param(k, 3, 3, cin, cout, cin_pad, CPAD)
        p[f"{name}_w"] = w.reshape(9, cin_pad, CPAD)
        p[f"{name}_b"] = b
    # decoder laterals + header: 1x1 convs stored as 2-D GEMM weights
    for name, k, cin, cout in (("l1", ks[3], 16, dec_ch),
                               ("l2", ks[4], 32, dec_ch),
                               ("l3", ks[5], 64, dec_ch),
                               ("h", ks[6], dec_ch, num_classes)):
        w, b = _conv_param(k, 1, 1, cin, cout, CPAD, CPAD)
        p[f"{name}_w"] = w.reshape(CPAD, CPAD)
        p[f"{name}_b"] = b
    return p


# ----------------------------------------------------------------------------
# Full forward: encoder -> decoder -> header
# ----------------------------------------------------------------------------
def upsample2x(x):
    # nearest-neighbour 2x upsample, NHWC
    # TODO(synk): fuse into the consumer GEMM's residual read (the decoder
    # tensors here are tiny, so it is left as XLA glue).
    return jnp.repeat(jnp.repeat(x, 2, axis=1), 2, axis=2)


def model_forward(x_nchw, params, *, num_classes):
    # external I/O is NCHW (PyTorch convention); internal layout is NHWC bf16
    x = jnp.transpose(x_nchw, (0, 2, 3, 1)).astype(jnp.bfloat16)

    # encoder (multi-scale features) — fused conv3x3/s2 + bias + ReLU kernels
    f1 = conv3x3_s2(x, params["e1_w"], params["e1_b"], relu=True)    # /2
    f2 = conv3x3_s2(f1, params["e2_w"], params["e2_b"], relu=True)   # /4
    f3 = conv3x3_s2(f2, params["e3_w"], params["e3_b"], relu=True)   # /8

    def flat(t):
        return t.reshape(-1, t.shape[-1])

    # decoder (FPN-lite): 1x1 laterals; top-down add fused into the GEMM
    p3 = fused_gemm(flat(f3), params["l3_w"], params["l3_b"]).reshape(f3.shape)
    p2 = fused_gemm(flat(f2), params["l2_w"], params["l2_b"],
                    res=flat(upsample2x(p3))).reshape(f2.shape)
    p1 = fused_gemm(flat(f1), params["l1_w"], params["l1_b"],
                    res=flat(upsample2x(p2))).reshape(f1.shape)

    # header: 1x1 conv to (lane-padded) class logits, f32, upsample back to /1
    logits = fused_gemm(flat(p1), params["h_w"], params["h_b"],
                        out_dtype=jnp.float32)
    logits = logits.reshape(p1.shape[:3] + (CPAD,))[..., :num_classes]
    logits = upsample2x(logits)
    # TODO(synk): optional `target` dict (loss inside the header) has no
    # concrete definition in the reference module; forward returns logits only.
    return jnp.transpose(logits, (0, 3, 1, 2))


# ----------------------------------------------------------------------------
# Pure-XLA f32 reference (same bf16-rounded weights, true channel counts)
# ----------------------------------------------------------------------------
def reference_forward(x_nchw, params, num_classes, dec_ch=32):
    x = jnp.transpose(x_nchw, (0, 2, 3, 1)).astype(jnp.float32)

    def conv3(t, w9, b, cin, cout):
        w = w9.reshape(3, 3, w9.shape[1], w9.shape[2])[:, :, :cin, :cout]
        y = jax.lax.conv_general_dilated(
            t, w.astype(jnp.float32), (2, 2), ((1, 1), (1, 1)),
            dimension_numbers=("NHWC", "HWIO", "NHWC"))
        return jnp.maximum(y + b[:cout], 0.0)

    def mm(t, w, b, cin, cout):
        return jnp.einsum("nhwc,cd->nhwd", t,
                          w[:cin, :cout].astype(jnp.float32)) + b[:cout]

    f1 = conv3(x, params["e1_w"], params["e1_b"], 3, 16)
    f2 = conv3(f1, params["e2_w"], params["e2_b"], 16, 32)
    f3 = conv3(f2, params["e3_w"], params["e3_b"], 32, 64)
    p3 = mm(f3, params["l3_w"], params["l3_b"], 64, dec_ch)
    p2 = mm(f2, params["l2_w"], params["l2_b"], 32, dec_ch) + upsample2x(p3)
    p1 = mm(f1, params["l1_w"], params["l1_b"], 16, dec_ch) + upsample2x(p2)
    logits = mm(p1, params["h_w"], params["h_b"], dec_ch, num_classes)
    return jnp.transpose(upsample2x(logits), (0, 3, 1, 2))


if __name__ == "__main__":
    num_classes = 5
    key = jax.random.PRNGKey(0)
    k_in, k_par = jax.random.split(key)

    # small NCHW input consistent with an image segmentation model
    x = jax.random.normal(k_in, (2, 3, 32, 32), jnp.float32)
    params = init_params(k_par, num_classes)

    fwd = jax.jit(functools.partial(model_forward, num_classes=num_classes))
    out = jax.block_until_ready(fwd(x, params))

    assert out.shape == (2, num_classes, 32, 32), out.shape
    assert out.dtype == jnp.float32
    assert bool(jnp.all(jnp.isfinite(out)))

    # numerical check vs. the pure-XLA f32 reference (bf16 MXU inputs -> loose tol)
    ref = reference_forward(x, params, num_classes)
    rel = float(jnp.linalg.norm(out - ref) / jnp.linalg.norm(ref))
    assert rel < 5e-2, rel

    print("KERNEL_OK")
</pallas_src>

<mosaic_0001>
module attributes {stable_mosaic.version = 11 : i64} {
  func.func @_conv3x3s2_kernel(%arg0: i32, %arg1: i32, %arg2: memref<68x17x3xbf16, #tpu.memory_space<vmem>>, %arg3: memref<9x3x128xbf16, #tpu.memory_space<vmem>>, %arg4: memref<1x128xf32, #tpu.memory_space<vmem>>, %arg5: memref<1x1x16x128xbf16, #tpu.memory_space<vmem>>) attributes {dimension_semantics = [#tpu.dimension_semantics<parallel>, #tpu.dimension_semantics<arbitrary>], iteration_bounds = array<i64: 2, 16>, scalar_prefetch = 0 : i64, scratch_operands = 0 : i64, tpu.core_type = #tpu.core_type<tc>, window_params = [{transform_indices = @transform_0, window_bounds = array<i64: 68, 17, 3>}, {pipeline_mode = #tpu.pipeline_mode<synchronous>, transform_indices = @transform_1, window_bounds = array<i64: 9, 3, 128>}, {pipeline_mode = #tpu.pipeline_mode<synchronous>, transform_indices = @transform_2, window_bounds = array<i64: 1, 128>}, {transform_indices = @transform_3, window_bounds = array<i64: 1, 1, 16, 128>}]} {
    %cst = arith.constant 0.000000e+00 : f32
    %0 = vector.broadcast %cst : f32 to vector<16x128xf32>
    %c0_i32 = arith.constant 0 : i32
    %1 = arith.addi %c0_i32, %arg1 : i32
    %c0_i32_0 = arith.constant 0 : i32
    %2 = arith.addi %1, %c0_i32_0 : i32
    %3 = arith.index_cast %2 : i32 to index
    %c0 = arith.constant 0 : index
    %c0_1 = arith.constant 0 : index
    %4 = vector.load %arg2[%3, %c0, %c0_1] : memref<68x17x3xbf16, #tpu.memory_space<vmem>>, vector<1x16x3xbf16>
    %5 = vector.shape_cast %4 : vector<1x16x3xbf16> to vector<16x3xbf16>
    %c0_2 = arith.constant 0 : index
    %c0_3 = arith.constant 0 : index
    %c0_4 = arith.constant 0 : index
    %6 = vector.load %arg3[%c0_2, %c0_3, %c0_4] : memref<9x3x128xbf16, #tpu.memory_space<vmem>>, vector<1x3x128xbf16>
    %7 = vector.shape_cast %6 : vector<1x3x128xbf16> to vector<3x128xbf16>
    %cst_5 = arith.constant dense<0.000000e+00> : vector<16x128xf32>
    %8 = tpu.matmul %5, %7, %cst_5 {dimension_numbers = #tpu.dot_dimension_numbers<[1], [0], [0], [1], [0, 0, 1, 1], [], []>} : vector<16x3xbf16>, vector<3x128xbf16>, vector<16x128xf32> -> vector<16x128xf32>
    %9 = arith.addf %0, %8 : vector<16x128xf32>
    %c17_i32 = arith.constant 17 : i32
    %10 = arith.addi %c17_i32, %arg1 : i32
    %c0_i32_6 = arith.constant 0 : i32
    %11 = arith.addi %10, %c0_i32_6 : i32
    %12 = arith.index_cast %11 : i32 to index
    %c0_7 = arith.constant 0 : index
    %c0_8 = arith.constant 0 : index
    %13 = vector.load %arg2[%12, %c0_7, %c0_8] : memref<68x17x3xbf16, #tpu.memory_space<vmem>>, vector<1x16x3xbf16>
    %14 = vector.shape_cast %13 : vector<1x16x3xbf16> to vector<16x3xbf16>
    %c1 = arith.constant 1 : index
    %c0_9 = arith.constant 0 : index
    %c0_10 = arith.constant 0 : index
    %15 = vector.load %arg3[%c1, %c0_9, %c0_10] : memref<9x3x128xbf16, #tpu.memory_space<vmem>>, vector<1x3x128xbf16>
    %16 = vector.shape_cast %15 : vector<1x3x128xbf16> to vector<3x128xbf16>
    %cst_11 = arith.constant dense<0.000000e+00> : vector<16x128xf32>
    %17 = tpu.matmul %14, %16, %cst_11 {dimension_numbers = #tpu.dot_dimension_numbers<[1], [0], [0], [1], [0, 0, 1, 1], [], []>} : vector<16x3xbf16>, vector<3x128xbf16>, vector<16x128xf32> -> vector<16x128xf32>
    %18 = arith.addf %9, %17 : vector<16x128xf32>
    %c0_i32_12 = arith.constant 0 : i32
    %19 = arith.addi %c0_i32_12, %arg1 : i32
    %c0_i32_13 = arith.constant 0 : i32
    %20 = arith.addi %19, %c0_i32_13 : i32
    %21 = arith.index_cast %20 : i32 to index
    %c1_14 = arith.constant 1 : index
    %c0_15 = arith.constant 0 : index
    %22 = vector.load %arg2[%21, %c1_14, %c0_15] : memref<68x17x3xbf16, #tpu.memory_space<vmem>>, vector<1x16x3xbf16>
    %23 = vector.shape_cast %22 : vector<1x16x3xbf16> to vector<16x3xbf16>
    %c2 = arith.constant 2 : index
    %c0_16 = arith.constant 0 : index
    %c0_17 = arith.constant 0 : index
    %24 = vector.load %arg3[%c2, %c0_16, %c0_17] : memref<9x3x128xbf16, #tpu.memory_space<vmem>>, vector<1x3x128xbf16>
    %25 = vector.shape_cast %24 : vector<1x3x128xbf16> to vector<3x128xbf16>
    %cst_18 = arith.constant dense<0.000000e+00> : vector<16x128xf32>
    %26 = tpu.matmul %23, %25, %cst_18 {dimension_numbers = #tpu.dot_dimension_numbers<[1], [0], [0], [1], [0, 0, 1, 1], [], []>} : vector<16x3xbf16>, vector<3x128xbf16>, vector<16x128xf32> -> vector<16x128xf32>
    %27 = arith.addf %18, %26 : vector<16x128xf32>
    %c34_i32 = arith.constant 34 : i32
    %28 = arith.addi %c34_i32, %arg1 : i32
    %c0_i32_19 = arith.constant 0 : i32
    %29 = arith.addi %28, %c0_i32_19 : i32
    %30 = arith.index_cast %29 : i32 to index
    %c0_20 = arith.constant 0 : index
    %c0_21 = arith.constant 0 : index
    %31 = vector.load %arg2[%30, %c0_20, %c0_21] : memref<68x17x3xbf16, #tpu.memory_space<vmem>>, vector<1x16x3xbf16>
    %32 = vector.shape_cast %31 : vector<1x16x3xbf16> to vector<16x3xbf16>
    %c3 = arith.constant 3 : index
    %c0_22 = arith.constant 0 : index
    %c0_23 = arith.constant 0 : index
    %33 = vector.load %arg3[%c3, %c0_22, %c0_23] : memref<9x3x128xbf16, #tpu.memory_space<vmem>>, vector<1x3x128xbf16>
    %34 = vector.shape_cast %33 : vector<1x3x128xbf16> to vector<3x128xbf16>
    %cst_24 = arith.constant dense<0.000000e+00> : vector<16x128xf32>
    %35 = tpu.matmul %32, %34, %cst_24 {dimension_numbers = #tpu.dot_dimension_numbers<[1], [0], [0], [1], [0, 0, 1, 1], [], []>} : vector<16x3xbf16>, vector<3x128xbf16>, vector<16x128xf32> -> vector<16x128xf32>
    %36 = arith.addf %27, %35 : vector<16x128xf32>
    %c51_i32 = arith.constant 51 : i32
    %37 = arith.addi %c51_i32, %arg1 : i32
    %c0_i32_25 = arith.constant 0 : i32
    %38 = arith.addi %37, %c0_i32_25 : i32
    %39 = arith.index_cast %38 : i32 to index
    %c0_26 = arith.constant 0 : index
    %c0_27 = arith.constant 0 : index
    %40 = vector.load %arg2[%39, %c0_26, %c0_27] : memref<68x17x3xbf16, #tpu.memory_space<vmem>>, vector<1x16x3xbf16>
    %41 = vector.shape_cast %40 : vector<1x16x3xbf16> to vector<16x3xbf16>
    %c4 = arith.constant 4 : index
    %c0_28 = arith.constant 0 : index
    %c0_29 = arith.constant 0 : index
    %42 = vector.load %arg3[%c4, %c0_28, %c0_29] : memref<9x3x128xbf16, #tpu.memory_space<vmem>>, vector<1x3x128xbf16>
    %43 = vector.shape_cast %42 : vector<1x3x128xbf16> to vector<3x128xbf16>
    %cst_30 = arith.constant dense<0.000000e+00> : vector<16x128xf32>
    %44 = tpu.matmul %41, %43, %cst_30 {dimension_numbers = #tpu.dot_dimension_numbers<[1], [0], [0], [1], [0, 0, 1, 1], [], []>} : vector<16x3xbf16>, vector<3x128xbf16>, vector<16x128xf32> -> vector<16x128xf32>
    %45 = arith.addf %36, %44 : vector<16x128xf32>
    %c34_i32_31 = arith.constant 34 : i32
    %46 = arith.addi %c34_i32_31, %arg1 : i32
    %c0_i32_32 = arith.constant 0 : i32
    %47 = arith.addi %46, %c0_i32_32 : i32
    %48 = arith.index_cast %47 : i32 to index
    %c1_33 = arith.constant 1 : index
    %c0_34 = arith.constant 0 : index
    %49 = vector.load %arg2[%48, %c1_33, %c0_34] : memref<68x17x3xbf16, #tpu.memory_space<vmem>>, vector<1x16x3xbf16>
    %50 = vector.shape_cast %49 : vector<1x16x3xbf16> to vector<16x3xbf16>
    %c5 = arith.constant 5 : index
    %c0_35 = arith.constant 0 : index
    %c0_36 = arith.constant 0 : index
    %51 = vector.load %arg3[%c5, %c0_35, %c0_36] : memref<9x3x128xbf16, #tpu.memory_space<vmem>>, vector<1x3x128xbf16>
    %52 = vector.shape_cast %51 : vector<1x3x128xbf16> to vector<3x128xbf16>
    %cst_37 = arith.constant dense<0.000000e+00> : vector<16x128xf32>
    %53 = tpu.matmul %50, %52, %cst_37 {dimension_numbers = #tpu.dot_dimension_numbers<[1], [0], [0], [1], [0, 0, 1, 1], [], []>} : vector<16x3xbf16>, vector<3x128xbf16>, vector<16x128xf32> -> vector<16x128xf32>
    %54 = arith.addf %45, %53 : vector<16x128xf32>
    %c0_i32_38 = arith.constant 0 : i32
    %55 = arith.addi %c0_i32_38, %arg1 : i32
    %c1_i32 = arith.constant 1 : i32
    %56 = arith.addi %55, %c1_i32 : i32
    %57 = arith.index_cast %56 : i32 to index
    %c0_39 = arith.constant 0 : index
    %c0_40 = arith.constant 0 : index
    %58 = vector.load %arg2[%57, %c0_39, %c0_40] : memref<68x17x3xbf16, #tpu.memory_space<vmem>>, vector<1x16x3xbf16>
    %59 = vector.shape_cast %58 : vector<1x16x3xbf16> to vector<16x3xbf16>
    %c6 = arith.constant 6 : index
    %c0_41 = arith.constant 0 : index
    %c0_42 = arith.constant 0 : index
    %60 = vector.load %arg3[%c6, %c0_41, %c0_42] : memref<9x3x128xbf16, #tpu.memory_space<vmem>>, vector<1x3x128xbf16>
    %61 = vector.shape_cast %60 : vector<1x3x128xbf16> to vector<3x128xbf16>
    %cst_43 = arith.constant dense<0.000000e+00> : vector<16x128xf32>
    %62 = tpu.matmul %59, %61, %cst_43 {dimension_numbers = #tpu.dot_dimension_numbers<[1], [0], [0], [1], [0, 0, 1, 1], [], []>} : vector<16x3xbf16>, vector<3x128xbf16>, vector<16x128xf32> -> vector<16x128xf32>
    %63 = arith.addf %54, %62 : vector<16x128xf32>
    %c17_i32_44 = arith.constant 17 : i32
    %64 = arith.addi %c17_i32_44, %arg1 : i32
    %c1_i32_45 = arith.constant 1 : i32
    %65 = arith.addi %64, %c1_i32_45 : i32
    %66 = arith.index_cast %65 : i32 to index
    %c0_46 = arith.constant 0 : index
    %c0_47 = arith.constant 0 : index
    %67 = vector.load %arg2[%66, %c0_46, %c0_47] : memref<68x17x3xbf16, #tpu.memory_space<vmem>>, vector<1x16x3xbf16>
    %68 = vector.shape_cast %67 : vector<1x16x3xbf16> to vector<16x3xbf16>
    %c7 = arith.constant 7 : index
    %c0_48 = arith.constant 0 : index
    %c0_49 = arith.constant 0 : index
    %69 = vector.load %arg3[%c7, %c0_48, %c0_49] : memref<9x3x128xbf16, #tpu.memory_space<vmem>>, vector<1x3x128xbf16>
    %70 = vector.shape_cast %69 : vector<1x3x128xbf16> to vector<3x128xbf16>
    %cst_50 = arith.constant dense<0.000000e+00> : vector<16x128xf32>
    %71 = tpu.matmul %68, %70, %cst_50 {dimension_numbers = #tpu.dot_dimension_numbers<[1], [0], [0], [1], [0, 0, 1, 1], [], []>} : vector<16x3xbf16>, vector<3x128xbf16>, vector<16x128xf32> -> vector<16x128xf32>
    %72 = arith.addf %63, %71 : vector<16x128xf32>
    %c0_i32_51 = arith.constant 0 : i32
    %73 = arith.addi %c0_i32_51, %arg1 : i32
    %c1_i32_52 = arith.constant 1 : i32
    %74 = arith.addi %73, %c1_i32_52 : i32
    %75 = arith.index_cast %74 : i32 to index
    %c1_53 = arith.constant 1 : index
    %c0_54 = arith.constant 0 : index
    %76 = vector.load %arg2[%75, %c1_53, %c0_54] : memref<68x17x3xbf16, #tpu.memory_space<vmem>>, vector<1x16x3xbf16>
    %77 = vector.shape_cast %76 : vector<1x16x3xbf16> to vector<16x3xbf16>
    %c8 = arith.constant 8 : index
    %c0_55 = arith.constant 0 : index
    %c0_56 = arith.constant 0 : index
    %78 = vector.load %arg3[%c8, %c0_55, %c0_56] : memref<9x3x128xbf16, #tpu.memory_space<vmem>>, vector<1x3x128xbf16>
    %79 = vector.shape_cast %78 : vector<1x3x128xbf16> to vector<3x128xbf16>
    %cst_57 = arith.constant dense<0.000000e+00> : vector<16x128xf32>
    %80 = tpu.matmul %77, %79, %cst_57 {dimension_numbers = #tpu.dot_dimension_numbers<[1], [0], [0], [1], [0, 0, 1, 1], [], []>} : vector<16x3xbf16>, vector<3x128xbf16>, vector<16x128xf32> -> vector<16x128xf32>
    %81 = arith.addf %72, %80 : vector<16x128xf32>
    %c0_58 = arith.constant 0 : index
    %c0_59 = arith.constant 0 : index
    %82 = vector.load %arg4[%c0_58, %c0_59] : memref<1x128xf32, #tpu.memory_space<vmem>>, vector<1x128xf32>
    %83 = vector.broadcast %82 : vector<1x128xf32> to vector<16x128xf32>
    %84 = arith.addf %81, %83 : vector<16x128xf32>
    %cst_60 = arith.constant 0.000000e+00 : f32
    %85 = vector.broadcast %cst_60 : f32 to vector<16x128xf32>
    %86 = arith.maximumf %84, %85 : vector<16x128xf32>
    %87 = arith.truncf %86 : vector<16x128xf32> to vector<16x128xbf16>
    %c0_61 = arith.constant 0 : index
    %c0_62 = arith.constant 0 : index
    %c0_63 = arith.constant 0 : index
    %c0_64 = arith.constant 0 : index
    %88 = vector.load %arg5[%c0_61, %c0_62, %c0_63, %c0_64] : memref<1x1x16x128xbf16, #tpu.memory_space<vmem>>, vector<1x1x16x128xbf16>
    %89 = vector.shape_cast %88 : vector<1x1x16x128xbf16> to vector<16x128xbf16>
    %90 = vector.shape_cast %87 : vector<16x128xbf16> to vector<1x1x16x128xbf16>
    tpu.vector_store %arg5[%c0_61, %c0_62, %c0_63, %c0_64], %90 {strides = array<i32>} : memref<1x1x16x128xbf16, #tpu.memory_space<vmem>>, vector<1x1x16x128xbf16>,
    return
  }
  func.func @transform_0(%arg0: i32, %arg1: i32) -> (i32, i32, i32) {
    %c0_i32 = arith.constant 0 : i32
    %c0_i32_0 = arith.constant 0 : i32
    %c0_i32_1 = arith.constant 0 : i32
    return %arg0, %c0_i32, %c0_i32_0 : i32, i32, i32
  }
  func.func @transform_1(%arg0: i32, %arg1: i32) -> (i32, i32, i32) {
    %c0_i32 = arith.constant 0 : i32
    %c0_i32_0 = arith.constant 0 : i32
    %c0_i32_1 = arith.constant 0 : i32
    %c0_i32_2 = arith.constant 0 : i32
    return %c0_i32, %c0_i32_0, %c0_i32_1 : i32, i32, i32
  }
  func.func @transform_2(%arg0: i32, %arg1: i32) -> (i32, i32) {
    %c0_i32 = arith.constant 0 : i32
    %c0_i32_0 = arith.constant 0 : i32
    %c0_i32_1 = arith.constant 0 : i32
    return %c0_i32, %c0_i32_0 : i32, i32
  }
  func.func @transform_3(%arg0: i32, %arg1: i32) -> (i32, i32, i32, i32) {
    %c0_i32 = arith.constant 0 : i32
    %c0_i32_0 = arith.constant 0 : i32
    %c0_i32_1 = arith.constant 0 : i32
    return %arg0, %arg1, %c0_i32, %c0_i32_0 : i32, i32, i32, i32
  }
}

module attributes {stable_mosaic.version = 11 : i64} {
  func.func @_conv3x3s2_kernel(%arg0: i32, %arg1: i32, %arg2: memref<36x9x128xbf16, #tpu.memory_space<vmem>>, %arg3: memref<9x128x128xbf16, #tpu.memory_space<vmem>>, %arg4: memref<1x128xf32, #tpu.memory_space<vmem>>, %arg5: memref<1x1x8x128xbf16, #tpu.memory_space<vmem>>) attributes {dimension_semantics = [#tpu.dimension_semantics<parallel>, #tpu.dimension_semantics<arbitrary>], iteration_bounds = array<i64: 2, 8>, scalar_prefetch = 0 : i64, scratch_operands = 0 : i64, tpu.core_type = #tpu.core_type<tc>, window_params = [{transform_indices = @transform_0, window_bounds = array<i64: 36, 9, 128>}, {pipeline_mode = #tpu.pipeline_mode<synchronous>, transform_indices = @transform_1, window_bounds = array<i64: 9, 128, 128>}, {pipeline_mode = #tpu.pipeline_mode<synchronous>, transform_indices = @transform_2, window_bounds = array<i64: 1, 128>}, {transform_indices = @transform_3, window_bounds = array<i64: 1, 1, 8, 128>}]} {
    %cst = arith.constant 0.000000e+00 : f32
    %0 = vector.broadcast %cst : f32 to vector<8x128xf32>
    %c0_i32 = arith.constant 0 : i32
    %1 = arith.addi %c0_i32, %arg1 : i32
    %c0_i32_0 = arith.constant 0 : i32
    %2 = arith.addi %1, %c0_i32_0 : i32
    %3 = arith.index_cast %2 : i32 to index
    %c0 = arith.constant 0 : index
    %c0_1 = arith.constant 0 : index
    %4 = vector.load %arg2[%3, %c0, %c0_1] : memref<36x9x128xbf16, #tpu.memory_space<vmem>>, vector<1x8x128xbf16>
    %5 = vector.shape_cast %4 : vector<1x8x128xbf16> to vector<8x128xbf16>
    %c0_2 = arith.constant 0 : index
    %c0_3 = arith.constant 0 : index
    %c0_4 = arith.constant 0 : index
    %6 = vector.load %arg3[%c0_2, %c0_3, %c0_4] : memref<9x128x128xbf16, #tpu.memory_space<vmem>>, vector<1x128x128xbf16>
    %7 = vector.shape_cast %6 : vector<1x128x128xbf16> to vector<128x128xbf16>
    %cst_5 = arith.constant dense<0.000000e+00> : vector<8x128xf32>
    %8 = tpu.matmul %5, %7, %cst_5 {dimension_numbers = #tpu.dot_dimension_numbers<[1], [0], [0], [1], [0, 0, 1, 1], [], []>} : vector<8x128xbf16>, vector<128x128xbf16>, vector<8x128xf32> -> vector<8x128xf32>
    %9 = arith.addf %0, %8 : vector<8x128xf32>
    %c9_i32 = arith.constant 9 : i32
    %10 = arith.addi %c9_i32, %arg1 : i32
    %c0_i32_6 = arith.constant 0 : i32
    %11 = arith.addi %10, %c0_i32_6 : i32
    %12 = arith.index_cast %11 : i32 to index
    %c0_7 = arith.constant 0 : index
    %c0_8 = arith.constant 0 : index
    %13 = vector.load %arg2[%12, %c0_7, %c0_8] : memref<36x9x128xbf16, #tpu.memory_space<vmem>>, vector<1x8x128xbf16>
    %14 = vector.shape_cast %13 : vector<1x8x128xbf16> to vector<8x128xbf16>
    %c1 = arith.constant 1 : index
    %c0_9 = arith.constant 0 : index
    %c0_10 = arith.constant 0 : index
    %15 = vector.load %arg3[%c1, %c0_9, %c0_10] : memref<9x128x128xbf16, #tpu.memory_space<vmem>>, vector<1x128x128xbf16>
    %16 = vector.shape_cast %15 : vector<1x128x128xbf16> to vector<128x128xbf16>
    %cst_11 = arith.constant dense<0.000000e+00> : vector<8x128xf32>
    %17 = tpu.matmul %14, %16, %cst_11 {dimension_numbers = #tpu.dot_dimension_numbers<[1], [0], [0], [1], [0, 0, 1, 1], [], []>} : vector<8x128xbf16>, vector<128x128xbf16>, vector<8x128xf32> -> vector<8x128xf32>
    %18 = arith.addf %9, %17 : vector<8x128xf32>
    %c0_i32_12 = arith.constant 0 : i32
    %19 = arith.addi %c0_i32_12, %arg1 : i32
    %c0_i32_13 = arith.constant 0 : i32
    %20 = arith.addi %19, %c0_i32_13 : i32
    %21 = arith.index_cast %20 : i32 to index
    %c1_14 = arith.constant 1 : index
    %c0_15 = arith.constant 0 : index
    %22 = vector.load %arg2[%21, %c1_14, %c0_15] : memref<36x9x128xbf16, #tpu.memory_space<vmem>>, vector<1x8x128xbf16>
    %23 = vector.shape_cast %22 : vector<1x8x128xbf16> to vector<8x128xbf16>
    %c2 = arith.constant 2 : index
    %c0_16 = arith.constant 0 : index
    %c0_17 = arith.constant 0 : index
    %24 = vector.load %arg3[%c2, %c0_16, %c0_17] : memref<9x128x128xbf16, #tpu.memory_space<vmem>>, vector<1x128x128xbf16>
    %25 = vector.shape_cast %24 : vector<1x128x128xbf16> to vector<128x128xbf16>
    %cst_18 = arith.constant dense<0.000000e+00> : vector<8x128xf32>
    %26 = tpu.matmul %23, %25, %cst_18 {dimension_numbers = #tpu.dot_dimension_numbers<[1], [0], [0], [1], [0, 0, 1, 1], [], []>} : vector<8x128xbf16>, vector<128x128xbf16>, vector<8x128xf32> -> vector<8x128xf32>
    %27 = arith.addf %18, %26 : vector<8x128xf32>
    %c18_i32 = arith.constant 18 : i32
    %28 = arith.addi %c18_i32, %arg1 : i32
    %c0_i32_19 = arith.constant 0 : i32
    %29 = arith.addi %28, %c0_i32_19 : i32
    %30 = arith.index_cast %29 : i32 to index
    %c0_20 = arith.constant 0 : index
    %c0_21 = arith.constant 0 : index
    %31 = vector.load %arg2[%30, %c0_20, %c0_21] : memref<36x9x128xbf16, #tpu.memory_space<vmem>>, vector<1x8x128xbf16>
    %32 = vector.shape_cast %31 : vector<1x8x128xbf16> to vector<8x128xbf16>
    %c3 = arith.constant 3 : index
    %c0_22 = arith.constant 0 : index
    %c0_23 = arith.constant 0 : index
    %33 = vector.load %arg3[%c3, %c0_22, %c0_23] : memref<9x128x128xbf16, #tpu.memory_space<vmem>>, vector<1x128x128xbf16>
    %34 = vector.shape_cast %33 : vector<1x128x128xbf16> to vector<128x128xbf16>
    %cst_24 = arith.constant dense<0.000000e+00> : vector<8x128xf32>
    %35 = tpu.matmul %32, %34, %cst_24 {dimension_numbers = #tpu.dot_dimension_numbers<[1], [0], [0], [1], [0, 0, 1, 1], [], []>} : vector<8x128xbf16>, vector<128x128xbf16>, vector<8x128xf32> -> vector<8x128xf32>
    %36 = arith.addf %27, %35 : vector<8x128xf32>
    %c27_i32 = arith.constant 27 : i32
    %37 = arith.addi %c27_i32, %arg1 : i32
    %c0_i32_25 = arith.constant 0 : i32
    %38 = arith.addi %37, %c0_i32_25 : i32
    %39 = arith.index_cast %38 : i32 to index
    %c0_26 = arith.constant 0 : index
    %c0_27 = arith.constant 0 : index
    %40 = vector.load %arg2[%39, %c0_26, %c0_27] : memref<36x9x128xbf16, #tpu.memory_space<vmem>>, vector<1x8x128xbf16>
    %41 = vector.shape_cast %40 : vector<1x8x128xbf16> to vector<8x128xbf16>
    %c4 = arith.constant 4 : index
    %c0_28 = arith.constant 0 : index
    %c0_29 = arith.constant 0 : index
    %42 = vector.load %arg3[%c4, %c0_28, %c0_29] : memref<9x128x128xbf16, #tpu.memory_space<vmem>>, vector<1x128x128xbf16>
    %43 = vector.shape_cast %42 : vector<1x128x128xbf16> to vector<128x128xbf16>
    %cst_30 = arith.constant dense<0.000000e+00> : vector<8x128xf32>
    %44 = tpu.matmul %41, %43, %cst_30 {dimension_numbers = #tpu.dot_dimension_numbers<[1], [0], [0], [1], [0, 0, 1, 1], [], []>} : vector<8x128xbf16>, vector<128x128xbf16>, vector<8x128xf32> -> vector<8x128xf32>
    %45 = arith.addf %36, %44 : vector<8x128xf32>
    %c18_i32_31 = arith.constant 18 : i32
    %46 = arith.addi %c18_i32_31, %arg1 : i32
    %c0_i32_32 = arith.constant 0 : i32
    %47 = arith.addi %46, %c0_i32_32 : i32
    %48 = arith.index_cast %47 : i32 to index
    %c1_33 = arith.constant 1 : index
    %c0_34 = arith.constant 0 : index
    %49 = vector.load %arg2[%48, %c1_33, %c0_34] : memref<36x9x128xbf16, #tpu.memory_space<vmem>>, vector<1x8x128xbf16>
    %50 = vector.shape_cast %49 : vector<1x8x128xbf16> to vector<8x128xbf16>
    %c5 = arith.constant 5 : index
    %c0_35 = arith.constant 0 : index
    %c0_36 = arith.constant 0 : index
    %51 = vector.load %arg3[%c5, %c0_35, %c0_36] : memref<9x128x128xbf16, #tpu.memory_space<vmem>>, vector<1x128x128xbf16>
    %52 = vector.shape_cast %51 : vector<1x128x128xbf16> to vector<128x128xbf16>
    %cst_37 = arith.constant dense<0.000000e+00> : vector<8x128xf32>
    %53 = tpu.matmul %50, %52, %cst_37 {dimension_numbers = #tpu.dot_dimension_numbers<[1], [0], [0], [1], [0, 0, 1, 1], [], []>} : vector<8x128xbf16>, vector<128x128xbf16>, vector<8x128xf32> -> vector<8x128xf32>
    %54 = arith.addf %45, %53 : vector<8x128xf32>
    %c0_i32_38 = arith.constant 0 : i32
    %55 = arith.addi %c0_i32_38, %arg1 : i32
    %c1_i32 = arith.constant 1 : i32
    %56 = arith.addi %55, %c1_i32 : i32
    %57 = arith.index_cast %56 : i32 to index
    %c0_39 = arith.constant 0 : index
    %c0_40 = arith.constant 0 : index
    %58 = vector.load %arg2[%57, %c0_39, %c0_40] : memref<36x9x128xbf16, #tpu.memory_space<vmem>>, vector<1x8x128xbf16>
    %59 = vector.shape_cast %58 : vector<1x8x128xbf16> to vector<8x128xbf16>
    %c6 = arith.constant 6 : index
    %c0_41 = arith.constant 0 : index
    %c0_42 = arith.constant 0 : index
    %60 = vector.load %arg3[%c6, %c0_41, %c0_42] : memref<9x128x128xbf16, #tpu.memory_space<vmem>>, vector<1x128x128xbf16>
    %61 = vector.shape_cast %60 : vector<1x128x128xbf16> to vector<128x128xbf16>
    %cst_43 = arith.constant dense<0.000000e+00> : vector<8x128xf32>
    %62 = tpu.matmul %59, %61, %cst_43 {dimension_numbers = #tpu.dot_dimension_numbers<[1], [0], [0], [1], [0, 0, 1, 1], [], []>} : vector<8x128xbf16>, vector<128x128xbf16>, vector<8x128xf32> -> vector<8x128xf32>
    %63 = arith.addf %54, %62 : vector<8x128xf32>
    %c9_i32_44 = arith.constant 9 : i32
    %64 = arith.addi %c9_i32_44, %arg1 : i32
    %c1_i32_45 = arith.constant 1 : i32
    %65 = arith.addi %64, %c1_i32_45 : i32
    %66 = arith.index_cast %65 : i32 to index
    %c0_46 = arith.constant 0 : index
    %c0_47 = arith.constant 0 : index
    %67 = vector.load %arg2[%66, %c0_46, %c0_47] : memref<36x9x128xbf16, #tpu.memory_space<vmem>>, vector<1x8x128xbf16>
    %68 = vector.shape_cast %67 : vector<1x8x128xbf16> to vector<8x128xbf16>
    %c7 = arith.constant 7 : index
    %c0_48 = arith.constant 0 : index
    %c0_49 = arith.constant 0 : index
    %69 = vector.load %arg3[%c7, %c0_48, %c0_49] : memref<9x128x128xbf16, #tpu.memory_space<vmem>>, vector<1x128x128xbf16>
    %70 = vector.shape_cast %69 : vector<1x128x128xbf16> to vector<128x128xbf16>
    %cst_50 = arith.constant dense<0.000000e+00> : vector<8x128xf32>
    %71 = tpu.matmul %68, %70, %cst_50 {dimension_numbers = #tpu.dot_dimension_numbers<[1], [0], [0], [1], [0, 0, 1, 1], [], []>} : vector<8x128xbf16>, vector<128x128xbf16>, vector<8x128xf32> -> vector<8x128xf32>
    %72 = arith.addf %63, %71 : vector<8x128xf32>
    %c0_i32_51 = arith.constant 0 : i32
    %73 = arith.addi %c0_i32_51, %arg1 : i32
    %c1_i32_52 = arith.constant 1 : i32
    %74 = arith.addi %73, %c1_i32_52 : i32
    %75 = arith.index_cast %74 : i32 to index
    %c1_53 = arith.constant 1 : index
    %c0_54 = arith.constant 0 : index
    %76 = vector.load %arg2[%75, %c1_53, %c0_54] : memref<36x9x128xbf16, #tpu.memory_space<vmem>>, vector<1x8x128xbf16>
    %77 = vector.shape_cast %76 : vector<1x8x128xbf16> to vector<8x128xbf16>
    %c8 = arith.constant 8 : index
    %c0_55 = arith.constant 0 : index
    %c0_56 = arith.constant 0 : index
    %78 = vector.load %arg3[%c8, %c0_55, %c0_56] : memref<9x128x128xbf16, #tpu.memory_space<vmem>>, vector<1x128x128xbf16>
    %79 = vector.shape_cast %78 : vector<1x128x128xbf16> to vector<128x128xbf16>
    %cst_57 = arith.constant dense<0.000000e+00> : vector<8x128xf32>
    %80 = tpu.matmul %77, %79, %cst_57 {dimension_numbers = #tpu.dot_dimension_numbers<[1], [0], [0], [1], [0, 0, 1, 1], [], []>} : vector<8x128xbf16>, vector<128x128xbf16>, vector<8x128xf32> -> vector<8x128xf32>
    %81 = arith.addf %72, %80 : vector<8x128xf32>
    %c0_58 = arith.constant 0 : index
    %c0_59 = arith.constant 0 : index
    %82 = vector.load %arg4[%c0_58, %c0_59] : memref<1x128xf32, #tpu.memory_space<vmem>>, vector<1x128xf32>
    %83 = vector.broadcast %82 : vector<1x128xf32> to vector<8x128xf32>
    %84 = arith.addf %81, %83 : vector<8x128xf32>
    %cst_60 = arith.constant 0.000000e+00 : f32
    %85 = vector.broadcast %cst_60 : f32 to vector<8x128xf32>
    %86 = arith.maximumf %84, %85 : vector<8x128xf32>
    %87 = arith.truncf %86 : vector<8x128xf32> to vector<8x128xbf16>
    %c0_61 = arith.constant 0 : index
    %c0_62 = arith.constant 0 : index
    %c0_63 = arith.constant 0 : index
    %c0_64 = arith.constant 0 : index
    %88 = vector.load %arg5[%c0_61, %c0_62, %c0_63, %c0_64] : memref<1x1x8x128xbf16, #tpu.memory_space<vmem>>, vector<1x1x8x128xbf16>
    %89 = vector.shape_cast %88 : vector<1x1x8x128xbf16> to vector<8x128xbf16>
    %90 = vector.shape_cast %87 : vector<8x128xbf16> to vector<1x1x8x128xbf16>
    tpu.vector_store %arg5[%c0_61, %c0_62, %c0_63, %c0_64], %90 {strides = array<i32>} : memref<1x1x8x128xbf16, #tpu.memory_space<vmem>>, vector<1x1x8x128xbf16>,
    return
  }
  func.func @transform_0(%arg0: i32, %arg1: i32) -> (i32, i32, i32) {
    %c0_i32 = arith.constant 0 : i32
    %c0_i32_0 = arith.constant 0 : i32
    %c0_i32_1 = arith.constant 0 : i32
    return %arg0, %c0_i32, %c0_i32_0 : i32, i32, i32
  }
  func.func @transform_1(%arg0: i32, %arg1: i32) -> (i32, i32, i32) {
    %c0_i32 = arith.constant 0 : i32
    %c0_i32_0 = arith.constant 0 : i32
    %c0_i32_1 = arith.constant 0 : i32
    %c0_i32_2 = arith.constant 0 : i32
    return %c0_i32, %c0_i32_0, %c0_i32_1 : i32, i32, i32
  }
  func.func @transform_2(%arg0: i32, %arg1: i32) -> (i32, i32) {
    %c0_i32 = arith.constant 0 : i32
    %c0_i32_0 = arith.constant 0 : i32
    %c0_i32_1 = arith.constant 0 : i32
    return %c0_i32, %c0_i32_0 : i32, i32
  }
  func.func @transform_3(%arg0: i32, %arg1: i32) -> (i32, i32, i32, i32) {
    %c0_i32 = arith.constant 0 : i32
    %c0_i32_0 = arith.constant 0 : i32
    %c0_i32_1 = arith.constant 0 : i32
    return %arg0, %arg1, %c0_i32, %c0_i32_0 : i32, i32, i32, i32
  }
}

module attributes {stable_mosaic.version = 11 : i64} {
  func.func @_gemm_kernel(%arg0: i32, %arg1: memref<32x128xbf16, #tpu.memory_space<vmem>>, %arg2: memref<128x128xbf16, #tpu.memory_space<vmem>>, %arg3: memref<1x128xf32, #tpu.memory_space<vmem>>, %arg4: memref<32x128xbf16, #tpu.memory_space<vmem>>) attributes {dimension_semantics = [#tpu.dimension_semantics<parallel>], iteration_bounds = array<i64: 1>, scalar_prefetch = 0 : i64, scratch_operands = 0 : i64, tpu.core_type = #tpu.core_type<tc>, window_params = [{transform_indices = @transform_0, window_bounds = array<i64: 32, 128>}, {pipeline_mode = #tpu.pipeline_mode<synchronous>, transform_indices = @transform_1, window_bounds = array<i64: 128, 128>}, {pipeline_mode = #tpu.pipeline_mode<synchronous>, transform_indices = @transform_2, window_bounds = array<i64: 1, 128>}, {transform_indices = @transform_3, window_bounds = array<i64: 32, 128>}]} {
    %c0 = arith.constant 0 : index
    %c0_0 = arith.constant 0 : index
    %0 = vector.load %arg1[%c0, %c0_0] : memref<32x128xbf16, #tpu.memory_space<vmem>>, vector<32x128xbf16>
    %c0_1 = arith.constant 0 : index
    %c0_2 = arith.constant 0 : index
    %1 = vector.load %arg2[%c0_1, %c0_2] : memref<128x128xbf16, #tpu.memory_space<vmem>>, vector<128x128xbf16>
    %cst = arith.constant dense<0.000000e+00> : vector<32x128xf32>
    %2 = tpu.matmul %0, %1, %cst {dimension_numbers = #tpu.dot_dimension_numbers<[1], [0], [0], [1], [0, 0, 1, 1], [], []>} : vector<32x128xbf16>, vector<128x128xbf16>, vector<32x128xf32> -> vector<32x128xf32>
    %c0_3 = arith.constant 0 : index
    %c0_4 = arith.constant 0 : index
    %3 = vector.load %arg3[%c0_3, %c0_4] : memref<1x128xf32, #tpu.memory_space<vmem>>, vector<1x128xf32>
    %4 = vector.broadcast %3 : vector<1x128xf32> to vector<32x128xf32>
    %5 = arith.addf %2, %4 : vector<32x128xf32>
    %6 = arith.truncf %5 : vector<32x128xf32> to vector<32x128xbf16>
    %c0_5 = arith.constant 0 : index
    %c0_6 = arith.constant 0 : index
    %7 = vector.load %arg4[%c0_5, %c0_6] : memref<32x128xbf16, #tpu.memory_space<vmem>>, vector<32x128xbf16>
    tpu.vector_store %arg4[%c0_5, %c0_6], %6 {strides = array<i32>} : memref<32x128xbf16, #tpu.memory_space<vmem>>, vector<32x128xbf16>,
    return
  }
  func.func @transform_0(%arg0: i32) -> (i32, i32) {
    %c0_i32 = arith.constant 0 : i32
    %c0_i32_0 = arith.constant 0 : i32
    return %arg0, %c0_i32 : i32, i32
  }
  func.func @transform_1(%arg0: i32) -> (i32, i32) {
    %c0_i32 = arith.constant 0 : i32
    %c0_i32_0 = arith.constant 0 : i32
    %c0_i32_1 = arith.constant 0 : i32
    return %c0_i32, %c0_i32_0 : i32, i32
  }
  func.func @transform_2(%arg0: i32) -> (i32, i32) {
    %c0_i32 = arith.constant 0 : i32
    %c0_i32_0 = arith.constant 0 : i32
    %c0_i32_1 = arith.constant 0 : i32
    return %c0_i32, %c0_i32_0 : i32, i32
  }
  func.func @transform_3(%arg0: i32) -> (i32, i32) {
    %c0_i32 = arith.constant 0 : i32
    %c0_i32_0 = arith.constant 0 : i32
    return %arg0, %c0_i32 : i32, i32
  }
}

module attributes {stable_mosaic.version = 11 : i64} {
  func.func @_conv3x3s2_kernel(%arg0: i32, %arg1: i32, %arg2: memref<20x5x128xbf16, #tpu.memory_space<vmem>>, %arg3: memref<9x128x128xbf16, #tpu.memory_space<vmem>>, %arg4: memref<1x128xf32, #tpu.memory_space<vmem>>, %arg5: memref<1x1x4x128xbf16, #tpu.memory_space<vmem>>) attributes {dimension_semantics = [#tpu.dimension_semantics<parallel>, #tpu.dimension_semantics<arbitrary>], iteration_bounds = array<i64: 2, 4>, scalar_prefetch = 0 : i64, scratch_operands = 0 : i64, tpu.core_type = #tpu.core_type<tc>, window_params = [{transform_indices = @transform_0, window_bounds = array<i64: 20, 5, 128>}, {pipeline_mode = #tpu.pipeline_mode<synchronous>, transform_indices = @transform_1, window_bounds = array<i64: 9, 128, 128>}, {pipeline_mode = #tpu.pipeline_mode<synchronous>, transform_indices = @transform_2, window_bounds = array<i64: 1, 128>}, {transform_indices = @transform_3, window_bounds = array<i64: 1, 1, 4, 128>}]} {
    %cst = arith.constant 0.000000e+00 : f32
    %0 = vector.broadcast %cst : f32 to vector<4x128xf32>
    %c0_i32 = arith.constant 0 : i32
    %1 = arith.addi %c0_i32, %arg1 : i32
    %c0_i32_0 = arith.constant 0 : i32
    %2 = arith.addi %1, %c0_i32_0 : i32
    %3 = arith.index_cast %2 : i32 to index
    %c0 = arith.constant 0 : index
    %c0_1 = arith.constant 0 : index
    %4 = vector.load %arg2[%3, %c0, %c0_1] : memref<20x5x128xbf16, #tpu.memory_space<vmem>>, vector<1x4x128xbf16>
    %5 = vector.shape_cast %4 : vector<1x4x128xbf16> to vector<4x128xbf16>
    %c0_2 = arith.constant 0 : index
    %c0_3 = arith.constant 0 : index
    %c0_4 = arith.constant 0 : index
    %6 = vector.load %arg3[%c0_2, %c0_3, %c0_4] : memref<9x128x128xbf16, #tpu.memory_space<vmem>>, vector<1x128x128xbf16>
    %7 = vector.shape_cast %6 : vector<1x128x128xbf16> to vector<128x128xbf16>
    %cst_5 = arith.constant dense<0.000000e+00> : vector<4x128xf32>
    %8 = tpu.matmul %5, %7, %cst_5 {dimension_numbers = #tpu.dot_dimension_numbers<[1], [0], [0], [1], [0, 0, 1, 1], [], []>} : vector<4x128xbf16>, vector<128x128xbf16>, vector<4x128xf32> -> vector<4x128xf32>
    %9 = arith.addf %0, %8 : vector<4x128xf32>
    %c5_i32 = arith.constant 5 : i32
    %10 = arith.addi %c5_i32, %arg1 : i32
    %c0_i32_6 = arith.constant 0 : i32
    %11 = arith.addi %10, %c0_i32_6 : i32
    %12 = arith.index_cast %11 : i32 to index
    %c0_7 = arith.constant 0 : index
    %c0_8 = arith.constant 0 : index
    %13 = vector.load %arg2[%12, %c0_7, %c0_8] : memref<20x5x128xbf16, #tpu.memory_space<vmem>>, vector<1x4x128xbf16>
    %14 = vector.shape_cast %13 : vector<1x4x128xbf16> to vector<4x128xbf16>
    %c1 = arith.constant 1 : index
    %c0_9 = arith.constant 0 : index
    %c0_10 = arith.constant 0 : index
    %15 = vector.load %arg3[%c1, %c0_9, %c0_10] : memref<9x128x128xbf16, #tpu.memory_space<vmem>>, vector<1x128x128xbf16>
    %16 = vector.shape_cast %15 : vector<1x128x128xbf16> to vector<128x128xbf16>
    %cst_11 = arith.constant dense<0.000000e+00> : vector<4x128xf32>
    %17 = tpu.matmul %14, %16, %cst_11 {dimension_numbers = #tpu.dot_dimension_numbers<[1], [0], [0], [1], [0, 0, 1, 1], [], []>} : vector<4x128xbf16>, vector<128x128xbf16>, vector<4x128xf32> -> vector<4x128xf32>
    %18 = arith.addf %9, %17 : vector<4x128xf32>
    %c0_i32_12 = arith.constant 0 : i32
    %19 = arith.addi %c0_i32_12, %arg1 : i32
    %c0_i32_13 = arith.constant 0 : i32
    %20 = arith.addi %19, %c0_i32_13 : i32
    %21 = arith.index_cast %20 : i32 to index
    %c1_14 = arith.constant 1 : index
    %c0_15 = arith.constant 0 : index
    %22 = vector.load %arg2[%21, %c1_14, %c0_15] : memref<20x5x128xbf16, #tpu.memory_space<vmem>>, vector<1x4x128xbf16>
    %23 = vector.shape_cast %22 : vector<1x4x128xbf16> to vector<4x128xbf16>
    %c2 = arith.constant 2 : index
    %c0_16 = arith.constant 0 : index
    %c0_17 = arith.constant 0 : index
    %24 = vector.load %arg3[%c2, %c0_16, %c0_17] : memref<9x128x128xbf16, #tpu.memory_space<vmem>>, vector<1x128x128xbf16>
    %25 = vector.shape_cast %24 : vector<1x128x128xbf16> to vector<128x128xbf16>
    %cst_18 = arith.constant dense<0.000000e+00> : vector<4x128xf32>
    %26 = tpu.matmul %23, %25, %cst_18 {dimension_numbers = #tpu.dot_dimension_numbers<[1], [0], [0], [1], [0, 0, 1, 1], [], []>} : vector<4x128xbf16>, vector<128x128xbf16>, vector<4x128xf32> -> vector<4x128xf32>
    %27 = arith.addf %18, %26 : vector<4x128xf32>
    %c10_i32 = arith.constant 10 : i32
    %28 = arith.addi %c10_i32, %arg1 : i32
    %c0_i32_19 = arith.constant 0 : i32
    %29 = arith.addi %28, %c0_i32_19 : i32
    %30 = arith.index_cast %29 : i32 to index
    %c0_20 = arith.constant 0 : index
    %c0_21 = arith.constant 0 : index
    %31 = vector.load %arg2[%30, %c0_20, %c0_21] : memref<20x5x128xbf16, #tpu.memory_space<vmem>>, vector<1x4x128xbf16>
    %32 = vector.shape_cast %31 : vector<1x4x128xbf16> to vector<4x128xbf16>
    %c3 = arith.constant 3 : index
    %c0_22 = arith.constant 0 : index
    %c0_23 = arith.constant 0 : index
    %33 = vector.load %arg3[%c3, %c0_22, %c0_23] : memref<9x128x128xbf16, #tpu.memory_space<vmem>>, vector<1x128x128xbf16>
    %34 = vector.shape_cast %33 : vector<1x128x128xbf16> to vector<128x128xbf16>
    %cst_24 = arith.constant dense<0.000000e+00> : vector<4x128xf32>
    %35 = tpu.matmul %32, %34, %cst_24 {dimension_numbers = #tpu.dot_dimension_numbers<[1], [0], [0], [1], [0, 0, 1, 1], [], []>} : vector<4x128xbf16>, vector<128x128xbf16>, vector<4x128xf32> -> vector<4x128xf32>
    %36 = arith.addf %27, %35 : vector<4x128xf32>
    %c15_i32 = arith.constant 15 : i32
    %37 = arith.addi %c15_i32, %arg1 : i32
    %c0_i32_25 = arith.constant 0 : i32
    %38 = arith.addi %37, %c0_i32_25 : i32
    %39 = arith.index_cast %38 : i32 to index
    %c0_26 = arith.constant 0 : index
    %c0_27 = arith.constant 0 : index
    %40 = vector.load %arg2[%39, %c0_26, %c0_27] : memref<20x5x128xbf16, #tpu.memory_space<vmem>>, vector<1x4x128xbf16>
    %41 = vector.shape_cast %40 : vector<1x4x128xbf16> to vector<4x128xbf16>
    %c4 = arith.constant 4 : index
    %c0_28 = arith.constant 0 : index
    %c0_29 = arith.constant 0 : index
    %42 = vector.load %arg3[%c4, %c0_28, %c0_29] : memref<9x128x128xbf16, #tpu.memory_space<vmem>>, vector<1x128x128xbf16>
    %43 = vector.shape_cast %42 : vector<1x128x128xbf16> to vector<128x128xbf16>
    %cst_30 = arith.constant dense<0.000000e+00> : vector<4x128xf32>
    %44 = tpu.matmul %41, %43, %cst_30 {dimension_numbers = #tpu.dot_dimension_numbers<[1], [0], [0], [1], [0, 0, 1, 1], [], []>} : vector<4x128xbf16>, vector<128x128xbf16>, vector<4x128xf32> -> vector<4x128xf32>
    %45 = arith.addf %36, %44 : vector<4x128xf32>
    %c10_i32_31 = arith.constant 10 : i32
    %46 = arith.addi %c10_i32_31, %arg1 : i32
    %c0_i32_32 = arith.constant 0 : i32
    %47 = arith.addi %46, %c0_i32_32 : i32
    %48 = arith.index_cast %47 : i32 to index
    %c1_33 = arith.constant 1 : index
    %c0_34 = arith.constant 0 : index
    %49 = vector.load %arg2[%48, %c1_33, %c0_34] : memref<20x5x128xbf16, #tpu.memory_space<vmem>>, vector<1x4x128xbf16>
    %50 = vector.shape_cast %49 : vector<1x4x128xbf16> to vector<4x128xbf16>
    %c5 = arith.constant 5 : index
    %c0_35 = arith.constant 0 : index
    %c0_36 = arith.constant 0 : index
    %51 = vector.load %arg3[%c5, %c0_35, %c0_36] : memref<9x128x128xbf16, #tpu.memory_space<vmem>>, vector<1x128x128xbf16>
    %52 = vector.shape_cast %51 : vector<1x128x128xbf16> to vector<128x128xbf16>
    %cst_37 = arith.constant dense<0.000000e+00> : vector<4x128xf32>
    %53 = tpu.matmul %50, %52, %cst_37 {dimension_numbers = #tpu.dot_dimension_numbers<[1], [0], [0], [1], [0, 0, 1, 1], [], []>} : vector<4x128xbf16>, vector<128x128xbf16>, vector<4x128xf32> -> vector<4x128xf32>
    %54 = arith.addf %45, %53 : vector<4x128xf32>
    %c0_i32_38 = arith.constant 0 : i32
    %55 = arith.addi %c0_i32_38, %arg1 : i32
    %c1_i32 = arith.constant 1 : i32
    %56 = arith.addi %55, %c1_i32 : i32
    %57 = arith.index_cast %56 : i32 to index
    %c0_39 = arith.constant 0 : index
    %c0_40 = arith.constant 0 : index
    %58 = vector.load %arg2[%57, %c0_39, %c0_40] : memref<20x5x128xbf16, #tpu.memory_space<vmem>>, vector<1x4x128xbf16>
    %59 = vector.shape_cast %58 : vector<1x4x128xbf16> to vector<4x128xbf16>
    %c6 = arith.constant 6 : index
    %c0_41 = arith.constant 0 : index
    %c0_42 = arith.constant 0 : index
    %60 = vector.load %arg3[%c6, %c0_41, %c0_42] : memref<9x128x128xbf16, #tpu.memory_space<vmem>>, vector<1x128x128xbf16>
    %61 = vector.shape_cast %60 : vector<1x128x128xbf16> to vector<128x128xbf16>
    %cst_43 = arith.constant dense<0.000000e+00> : vector<4x128xf32>
    %62 = tpu.matmul %59, %61, %cst_43 {dimension_numbers = #tpu.dot_dimension_numbers<[1], [0], [0], [1], [0, 0, 1, 1], [], []>} : vector<4x128xbf16>, vector<128x128xbf16>, vector<4x128xf32> -> vector<4x128xf32>
    %63 = arith.addf %54, %62 : vector<4x128xf32>
    %c5_i32_44 = arith.constant 5 : i32
    %64 = arith.addi %c5_i32_44, %arg1 : i32
    %c1_i32_45 = arith.constant 1 : i32
    %65 = arith.addi %64, %c1_i32_45 : i32
    %66 = arith.index_cast %65 : i32 to index
    %c0_46 = arith.constant 0 : index
    %c0_47 = arith.constant 0 : index
    %67 = vector.load %arg2[%66, %c0_46, %c0_47] : memref<20x5x128xbf16, #tpu.memory_space<vmem>>, vector<1x4x128xbf16>
    %68 = vector.shape_cast %67 : vector<1x4x128xbf16> to vector<4x128xbf16>
    %c7 = arith.constant 7 : index
    %c0_48 = arith.constant 0 : index
    %c0_49 = arith.constant 0 : index
    %69 = vector.load %arg3[%c7, %c0_48, %c0_49] : memref<9x128x128xbf16, #tpu.memory_space<vmem>>, vector<1x128x128xbf16>
    %70 = vector.shape_cast %69 : vector<1x128x128xbf16> to vector<128x128xbf16>
    %cst_50 = arith.constant dense<0.000000e+00> : vector<4x128xf32>
    %71 = tpu.matmul %68, %70, %cst_50 {dimension_numbers = #tpu.dot_dimension_numbers<[1], [0], [0], [1], [0, 0, 1, 1], [], []>} : vector<4x128xbf16>, vector<128x128xbf16>, vector<4x128xf32> -> vector<4x128xf32>
    %72 = arith.addf %63, %71 : vector<4x128xf32>
    %c0_i32_51 = arith.constant 0 : i32
    %73 = arith.addi %c0_i32_51, %arg1 : i32
    %c1_i32_52 = arith.constant 1 : i32
    %74 = arith.addi %73, %c1_i32_52 : i32
    %75 = arith.index_cast %74 : i32 to index
    %c1_53 = arith.constant 1 : index
    %c0_54 = arith.constant 0 : index
    %76 = vector.load %arg2[%75, %c1_53, %c0_54] : memref<20x5x128xbf16, #tpu.memory_space<vmem>>, vector<1x4x128xbf16>
    %77 = vector.shape_cast %76 : vector<1x4x128xbf16> to vector<4x128xbf16>
    %c8 = arith.constant 8 : index
    %c0_55 = arith.constant 0 : index
    %c0_56 = arith.constant 0 : index
    %78 = vector.load %arg3[%c8, %c0_55, %c0_56] : memref<9x128x128xbf16, #tpu.memory_space<vmem>>, vector<1x128x128xbf16>
    %79 = vector.shape_cast %78 : vector<1x128x128xbf16> to vector<128x128xbf16>
    %cst_57 = arith.constant dense<0.000000e+00> : vector<4x128xf32>
    %80 = tpu.matmul %77, %79, %cst_57 {dimension_numbers = #tpu.dot_dimension_numbers<[1], [0], [0], [1], [0, 0, 1, 1], [], []>} : vector<4x128xbf16>, vector<128x128xbf16>, vector<4x128xf32> -> vector<4x128xf32>
    %81 = arith.addf %72, %80 : vector<4x128xf32>
    %c0_58 = arith.constant 0 : index
    %c0_59 = arith.constant 0 : index
    %82 = vector.load %arg4[%c0_58, %c0_59] : memref<1x128xf32, #tpu.memory_space<vmem>>, vector<1x128xf32>
    %83 = vector.broadcast %82 : vector<1x128xf32> to vector<4x128xf32>
    %84 = arith.addf %81, %83 : vector<4x128xf32>
    %cst_60 = arith.constant 0.000000e+00 : f32
    %85 = vector.broadcast %cst_60 : f32 to vector<4x128xf32>
    %86 = arith.maximumf %84, %85 : vector<4x128xf32>
    %87 = arith.truncf %86 : vector<4x128xf32> to vector<4x128xbf16>
    %c0_61 = arith.constant 0 : index
    %c0_62 = arith.constant 0 : index
    %c0_63 = arith.constant 0 : index
    %c0_64 = arith.constant 0 : index
    %88 = vector.load %arg5[%c0_61, %c0_62, %c0_63, %c0_64] : memref<1x1x4x128xbf16, #tpu.memory_space<vmem>>, vector<1x1x4x128xbf16>
    %89 = vector.shape_cast %88 : vector<1x1x4x128xbf16> to vector<4x128xbf16>
    %90 = vector.shape_cast %87 : vector<4x128xbf16> to vector<1x1x4x128xbf16>
    tpu.vector_store %arg5[%c0_61, %c0_62, %c0_63, %c0_64], %90 {strides = array<i32>} : memref<1x1x4x128xbf16, #tpu.memory_space<vmem>>, vector<1x1x4x128xbf16>,
    return
  }
  func.func @transform_0(%arg0: i32, %arg1: i32) -> (i32, i32, i32) {
    %c0_i32 = arith.constant 0 : i32
    %c0_i32_0 = arith.constant 0 : i32
    %c0_i32_1 = arith.constant 0 : i32
    return %arg0, %c0_i32, %c0_i32_0 : i32, i32, i32
  }
  func.func @transform_1(%arg0: i32, %arg1: i32) -> (i32, i32, i32) {
    %c0_i32 = arith.constant 0 : i32
    %c0_i32_0 = arith.constant 0 : i32
    %c0_i32_1 = arith.constant 0 : i32
    %c0_i32_2 = arith.constant 0 : i32
    return %c0_i32, %c0_i32_0, %c0_i32_1 : i32, i32, i32
  }
  func.func @transform_2(%arg0: i32, %arg1: i32) -> (i32, i32) {
    %c0_i32 = arith.constant 0 : i32
    %c0_i32_0 = arith.constant 0 : i32
    %c0_i32_1 = arith.constant 0 : i32
    return %c0_i32, %c0_i32_0 : i32, i32
  }
  func.func @transform_3(%arg0: i32, %arg1: i32) -> (i32, i32, i32, i32) {
    %c0_i32 = arith.constant 0 : i32
    %c0_i32_0 = arith.constant 0 : i32
    %c0_i32_1 = arith.constant 0 : i32
    return %arg0, %arg1, %c0_i32, %c0_i32_0 : i32, i32, i32, i32
  }
}

module attributes {stable_mosaic.version = 11 : i64} {
  func.func @_gemm_res_kernel(%arg0: i32, %arg1: memref<128x128xbf16, #tpu.memory_space<vmem>>, %arg2: memref<128x128xbf16, #tpu.memory_space<vmem>>, %arg3: memref<1x128xf32, #tpu.memory_space<vmem>>, %arg4: memref<128x128xbf16, #tpu.memory_space<vmem>>, %arg5: memref<128x128xbf16, #tpu.memory_space<vmem>>) attributes {dimension_semantics = [#tpu.dimension_semantics<parallel>], iteration_bounds = array<i64: 1>, scalar_prefetch = 0 : i64, scratch_operands = 0 : i64, tpu.core_type = #tpu.core_type<tc>, window_params = [{transform_indices = @transform_0, window_bounds = array<i64: 128, 128>}, {pipeline_mode = #tpu.pipeline_mode<synchronous>, transform_indices = @transform_1, window_bounds = array<i64: 128, 128>}, {pipeline_mode = #tpu.pipeline_mode<synchronous>, transform_indices = @transform_2, window_bounds = array<i64: 1, 128>}, {transform_indices = @transform_3, window_bounds = array<i64: 128, 128>}, {transform_indices = @transform_4, window_bounds = array<i64: 128, 128>}]} {
    %c0 = arith.constant 0 : index
    %c0_0 = arith.constant 0 : index
    %0 = vector.load %arg1[%c0, %c0_0] : memref<128x128xbf16, #tpu.memory_space<vmem>>, vector<128x128xbf16>
    %c0_1 = arith.constant 0 : index
    %c0_2 = arith.constant 0 : index
    %1 = vector.load %arg2[%c0_1, %c0_2] : memref<128x128xbf16, #tpu.memory_space<vmem>>, vector<128x128xbf16>
    %cst = arith.constant dense<0.000000e+00> : vector<128x128xf32>
    %2 = tpu.matmul %0, %1, %cst {dimension_numbers = #tpu.dot_dimension_numbers<[1], [0], [0], [1], [0, 0, 1, 1], [], []>} : vector<128x128xbf16>, vector<128x128xbf16>, vector<128x128xf32> -> vector<128x128xf32>
    %c0_3 = arith.constant 0 : index
    %c0_4 = arith.constant 0 : index
    %3 = vector.load %arg3[%c0_3, %c0_4] : memref<1x128xf32, #tpu.memory_space<vmem>>, vector<1x128xf32>
    %4 = vector.broadcast %3 : vector<1x128xf32> to vector<128x128xf32>
    %5 = arith.addf %2, %4 : vector<128x128xf32>
    %c0_5 = arith.constant 0 : index
    %c0_6 = arith.constant 0 : index
    %6 = vector.load %arg4[%c0_5, %c0_6] : memref<128x128xbf16, #tpu.memory_space<vmem>>, vector<128x128xbf16>
    %7 = arith.extf %6 : vector<128x128xbf16> to vector<128x128xf32>
    %8 = arith.addf %5, %7 : vector<128x128xf32>
    %9 = arith.truncf %8 : vector<128x128xf32> to vector<128x128xbf16>
    %c0_7 = arith.constant 0 : index
    %c0_8 = arith.constant 0 : index
    %10 = vector.load %arg5[%c0_7, %c0_8] : memref<128x128xbf16, #tpu.memory_space<vmem>>, vector<128x128xbf16>
    tpu.vector_store %arg5[%c0_7, %c0_8], %9 {strides = array<i32>} : memref<128x128xbf16, #tpu.memory_space<vmem>>, vector<128x128xbf16>,
    return
  }
  func.func @transform_0(%arg0: i32) -> (i32, i32) {
    %c0_i32 = arith.constant 0 : i32
    %c0_i32_0 = arith.constant 0 : i32
    return %arg0, %c0_i32 : i32, i32
  }
  func.func @transform_1(%arg0: i32) -> (i32, i32) {
    %c0_i32 = arith.constant 0 : i32
    %c0_i32_0 = arith.constant 0 : i32
    %c0_i32_1 = arith.constant 0 : i32
    return %c0_i32, %c0_i32_0 : i32, i32
  }
  func.func @transform_2(%arg0: i32) -> (i32, i32) {
    %c0_i32 = arith.constant 0 : i32
    %c0_i32_0 = arith.constant 0 : i32
    %c0_i32_1 = arith.constant 0 : i32
    return %c0_i32, %c0_i32_0 : i32, i32
  }
  func.func @transform_3(%arg0: i32) -> (i32, i32) {
    %c0_i32 = arith.constant 0 : i32
    %c0_i32_0 = arith.constant 0 : i32
    return %arg0, %c0_i32 : i32, i32
  }
  func.func @transform_4(%arg0: i32) -> (i32, i32) {
    %c0_i32 = arith.constant 0 : i32
    %c0_i32_0 = arith.constant 0 : i32
    return %arg0, %c0_i32 : i32, i32
  }
}

module attributes {stable_mosaic.version = 11 : i64} {
  func.func @_gemm_res_kernel(%arg0: i32, %arg1: memref<512x128xbf16, #tpu.memory_space<vmem>>, %arg2: memref<128x128xbf16, #tpu.memory_space<vmem>>, %arg3: memref<1x128xf32, #tpu.memory_space<vmem>>, %arg4: memref<512x128xbf16, #tpu.memory_space<vmem>>, %arg5: memref<512x128xbf16, #tpu.memory_space<vmem>>) attributes {dimension_semantics = [#tpu.dimension_semantics<parallel>], iteration_bounds = array<i64: 1>, scalar_prefetch = 0 : i64, scratch_operands = 0 : i64, tpu.core_type = #tpu.core_type<tc>, window_params = [{transform_indices = @transform_0, window_bounds = array<i64: 512, 128>}, {pipeline_mode = #tpu.pipeline_mode<synchronous>, transform_indices = @transform_1, window_bounds = array<i64: 128, 128>}, {pipeline_mode = #tpu.pipeline_mode<synchronous>, transform_indices = @transform_2, window_bounds = array<i64: 1, 128>}, {transform_indices = @transform_3, window_bounds = array<i64: 512, 128>}, {transform_indices = @transform_4, window_bounds = array<i64: 512, 128>}]} {
    %c0 = arith.constant 0 : index
    %c0_0 = arith.constant 0 : index
    %0 = vector.load %arg1[%c0, %c0_0] : memref<512x128xbf16, #tpu.memory_space<vmem>>, vector<512x128xbf16>
    %c0_1 = arith.constant 0 : index
    %c0_2 = arith.constant 0 : index
    %1 = vector.load %arg2[%c0_1, %c0_2] : memref<128x128xbf16, #tpu.memory_space<vmem>>, vector<128x128xbf16>
    %cst = arith.constant dense<0.000000e+00> : vector<512x128xf32>
    %2 = tpu.matmul %0, %1, %cst {dimension_numbers = #tpu.dot_dimension_numbers<[1], [0], [0], [1], [0, 0, 1, 1], [], []>} : vector<512x128xbf16>, vector<128x128xbf16>, vector<512x128xf32> -> vector<512x128xf32>
    %c0_3 = arith.constant 0 : index
    %c0_4 = arith.constant 0 : index
    %3 = vector.load %arg3[%c0_3, %c0_4] : memref<1x128xf32, #tpu.memory_space<vmem>>, vector<1x128xf32>
    %4 = vector.broadcast %3 : vector<1x128xf32> to vector<512x128xf32>
    %5 = arith.addf %2, %4 : vector<512x128xf32>
    %c0_5 = arith.constant 0 : index
    %c0_6 = arith.constant 0 : index
    %6 = vector.load %arg4[%c0_5, %c0_6] : memref<512x128xbf16, #tpu.memory_space<vmem>>, vector<512x128xbf16>
    %7 = arith.extf %6 : vector<512x128xbf16> to vector<512x128xf32>
    %8 = arith.addf %5, %7 : vector<512x128xf32>
    %9 = arith.truncf %8 : vector<512x128xf32> to vector<512x128xbf16>
    %c0_7 = arith.constant 0 : index
    %c0_8 = arith.constant 0 : index
    %10 = vector.load %arg5[%c0_7, %c0_8] : memref<512x128xbf16, #tpu.memory_space<vmem>>, vector<512x128xbf16>
    tpu.vector_store %arg5[%c0_7, %c0_8], %9 {strides = array<i32>} : memref<512x128xbf16, #tpu.memory_space<vmem>>, vector<512x128xbf16>,
    return
  }
  func.func @transform_0(%arg0: i32) -> (i32, i32) {
    %c0_i32 = arith.constant 0 : i32
    %c0_i32_0 = arith.constant 0 : i32
    return %arg0, %c0_i32 : i32, i32
  }
  func.func @transform_1(%arg0: i32) -> (i32, i32) {
    %c0_i32 = arith.constant 0 : i32
    %c0_i32_0 = arith.constant 0 : i32
    %c0_i32_1 = arith.constant 0 : i32
    return %c0_i32, %c0_i32_0 : i32, i32
  }
  func.func @transform_2(%arg0: i32) -> (i32, i32) {
    %c0_i32 = arith.constant 0 : i32
    %c0_i32_0 = arith.constant 0 : i32
    %c0_i32_1 = arith.constant 0 : i32
    return %c0_i32, %c0_i32_0 : i32, i32
  }
  func.func @transform_3(%arg0: i32) -> (i32, i32) {
    %c0_i32 = arith.constant 0 : i32
    %c0_i32_0 = arith.constant 0 : i32
    return %arg0, %c0_i32 : i32, i32
  }
  func.func @transform_4(%arg0: i32) -> (i32, i32) {
    %c0_i32 = arith.constant 0 : i32
    %c0_i32_0 = arith.constant 0 : i32
    return %arg0, %c0_i32 : i32, i32
  }
}

module attributes {stable_mosaic.version = 11 : i64} {
  func.func @_gemm_kernel(%arg0: i32, %arg1: memref<512x128xbf16, #tpu.memory_space<vmem>>, %arg2: memref<128x128xbf16, #tpu.memory_space<vmem>>, %arg3: memref<1x128xf32, #tpu.memory_space<vmem>>, %arg4: memref<512x128xf32, #tpu.memory_space<vmem>>) attributes {dimension_semantics = [#tpu.dimension_semantics<parallel>], iteration_bounds = array<i64: 1>, scalar_prefetch = 0 : i64, scratch_operands = 0 : i64, tpu.core_type = #tpu.core_type<tc>, window_params = [{transform_indices = @transform_0, window_bounds = array<i64: 512, 128>}, {pipeline_mode = #tpu.pipeline_mode<synchronous>, transform_indices = @transform_1, window_bounds = array<i64: 128, 128>}, {pipeline_mode = #tpu.pipeline_mode<synchronous>, transform_indices = @transform_2, window_bounds = array<i64: 1, 128>}, {transform_indices = @transform_3, window_bounds = array<i64: 512, 128>}]} {
    %c0 = arith.constant 0 : index
    %c0_0 = arith.constant 0 : index
    %0 = vector.load %arg1[%c0, %c0_0] : memref<512x128xbf16, #tpu.memory_space<vmem>>, vector<512x128xbf16>
    %c0_1 = arith.constant 0 : index
    %c0_2 = arith.constant 0 : index
    %1 = vector.load %arg2[%c0_1, %c0_2] : memref<128x128xbf16, #tpu.memory_space<vmem>>, vector<128x128xbf16>
    %cst = arith.constant dense<0.000000e+00> : vector<512x128xf32>
    %2 = tpu.matmul %0, %1, %cst {dimension_numbers = #tpu.dot_dimension_numbers<[1], [0], [0], [1], [0, 0, 1, 1], [], []>} : vector<512x128xbf16>, vector<128x128xbf16>, vector<512x128xf32> -> vector<512x128xf32>
    %c0_3 = arith.constant 0 : index
    %c0_4 = arith.constant 0 : index
    %3 = vector.load %arg3[%c0_3, %c0_4] : memref<1x128xf32, #tpu.memory_space<vmem>>, vector<1x128xf32>
    %4 = vector.broadcast %3 : vector<1x128xf32> to vector<512x128xf32>
    %5 = arith.addf %2, %4 : vector<512x128xf32>
    %c0_5 = arith.constant 0 : index
    %c0_6 = arith.constant 0 : index
    %6 = vector.load %arg4[%c0_5, %c0_6] : memref<512x128xf32, #tpu.memory_space<vmem>>, vector<512x128xf32>
    tpu.vector_store %arg4[%c0_5, %c0_6], %5 {strides = array<i32>} : memref<512x128xf32, #tpu.memory_space<vmem>>, vector<512x128xf32>,
    return
  }
  func.func @transform_0(%arg0: i32) -> (i32, i32) {
    %c0_i32 = arith.constant 0 : i32
    %c0_i32_0 = arith.constant 0 : i32
    return %arg0, %c0_i32 : i32, i32
  }
  func.func @transform_1(%arg0: i32) -> (i32, i32) {
    %c0_i32 = arith.constant 0 : i32
    %c0_i32_0 = arith.constant 0 : i32
    %c0_i32_1 = arith.constant 0 : i32
    return %c0_i32, %c0_i32_0 : i32, i32
  }
  func.func @transform_2(%arg0: i32) -> (i32, i32) {
    %c0_i32 = arith.constant 0 : i32
    %c0_i32_0 = arith.constant 0 : i32
    %c0_i32_1 = arith.constant 0 : i32
    return %c0_i32, %c0_i32_0 : i32, i32
  }
  func.func @transform_3(%arg0: i32) -> (i32, i32) {
    %c0_i32 = arith.constant 0 : i32
    %c0_i32_0 = arith.constant 0 : i32
    return %arg0, %c0_i32 : i32, i32
  }
}

</mosaic_0001>

<bundles_post_ra>
// kernel: model_forward.7
= control target key start
LH: loop header
LB: loop body
LE: loop exit
PB: predicated region body
PF: predicated region fallthrough
CT: control target
= control target key end

     0   :  { %s1176_s12 = smov 0   ;;  %s1178_s13 = smov 0   ;;  %s1331_s0 = inlined_call_operand.vmem [shape: bf16[136,17,3], index: 0, kind: input, shape index: {}]   ;;  %s1332_s1 = inlined_call_operand.vmem [shape: bf16[9,3,128], index: 1, kind: input, shape index: {}]   ;;  %s1333_s2 = inlined_call_operand.vmem [shape: f32[1,128], index: 2, kind: input, shape index: {}]   ;;  %s1334_s3 = inlined_call_operand.vmem [shape: bf16[2,16,16,128], index: 3, kind: output, shape index: {}]  }
   0x1   :  { %s1180_s14 = smov 0   ;;  %s1182_s15 = smov 0  }
   0x2   :  { %s1184_s16 = smov 0  }
   0x3 LB: > { %s22_s17 = sadd.s32 1, %s1143_s14  ;;  %s25_s18 = sadd.s32 1, %s1147_s15  ;;  %s1151_s16 = sphi %s1184_s16, %s13_s16   ;;  %s1147_s15 = sphi %s1182_s15, %s1338_s15   ;;  %s1143_s14 = sphi %s1180_s14, %s1337_s14   ;;  %s1139_s13 = sphi %s1178_s13, %s1336_s13   ;;  %s1135_s12 = sphi %s1176_s12, %s1335_s12  }
   0x4   : > { %p23_p0 = scmp.ge.s32.totalorder %s22_s17, 16  ;;  %p921_p1 = scmp.ge.s32.totalorder %s1151_s16, 1 }
   0x5   : > { %p153_p2 = scmp.lt.s32.totalorder %s1151_s16, 33 }
   0x6   : > { %s1340_s17 = smov (%p23_p0, %s22_s17), 0  ;;  %s1342_s18 = smov (!%p23_p0, %s25_s18), %s1147_s15 }
   0x7   : > { %p154_p3 = pnand %p921_p1, %p153_p2  ;;  %p27_p4 = scmp.ge.s32.totalorder %s1342_s18, 2 }
   0x8   : > { %s182_s23 = smul.u32 (!%p154_p3), 68, %s1139_s13  ;;  %p189_p6 = scmp.lt.s32.totalorder (!%p154_p3), %s1139_s13, 1 }
   0x9   : > { %s1344_s18 = smov (%p27_p4, %s1342_s18), 0  ;;  %157 = sbr.rel (%p154_p3) target bundleno = 260 (0x104), region = 32 }
   0xa   : > { %p183_p5 = scmp.lt.s32.totalorder (!%p154_p3), %s182_s23, 135  ;;  %s977_s24 = smul.u32 (!%p154_p3), 12, %s1135_s12 }
   0xb   : > { %p191_p7 = scmp.lt.s32.totalorder (!%p154_p3), %s1135_s12, 15 }
   0xe   : > { %v929_v0 = vld [vmem:[%s1332_s1 + $0x2] sm:$0x3]  ;;  %vm222_vm0 = vcmask 1040384   ;;  %vm223_vm1 = vcmask 1041408   ;;  %v1153_v1 = vmov 0.0   ;;  %v1154_v2 = vmov 65535  }
   0xf   : > { %1003 = vmatprep.subr.bf16.mxu0 %v1153_v1  ;;  %v224_v3 = vsel %vm222_vm0, 4294967295, %v1154_v2  ;;  %1009 = vmatprep.subr.bf16.mxu1 %v1153_v1  ;;  %v204_v4 = vld [vmem:[%s1332_s1] sm:$0x3]  ;;  %vm1155_vm2 = vmmov 0   ;;  %s1346_s23 = smov (!%p183_p5, %s182_s23), 135  ;;  %vm218_vm3 = vcmask 23552  }
  0x10   : > { %v1219_v5 = vsel %vm223_vm1, %v224_v3, 0  ;;  %1005 = vmatprep.mubr.msk.bf16.mxu0 %vm1155_vm2, %v1153_v1  ;;  %1011 = vmatprep.mubr.msk.bf16.mxu1 %vm1155_vm2, %v1153_v1  ;;  %s1057_s25 = smul.u32 12, %s1346_s23  ;;  %v934_v8 = vld [vmem:[%s1332_s1 + $0x4] sm:$0x3]  ;;  %v940_v9 = vld [vmem:[%s1332_s1 + $0x6] sm:$0x3] }
  0x11   : > { %v227_v6 = vand.u32 %v929_v0, %v1219_v5  ;;  %v279_v7 = vand.u32 %v1219_v5, %v204_v4  ;;  %v352_v10 = vand.u32 %v934_v8, %v1219_v5  ;;  %v414_v12 = vand.u32 %v940_v9, %v1219_v5  ;;  %v945_v16 = vld [vmem:[%s1332_s1 + $0x8] sm:$0x3]  ;;  %v951_v17 = vld [vmem:[%s1332_s1 + $0xa] sm:$0x3]  ;;  %v962_v36 = vld [vmem:[%s1332_s1 + $0xe] sm:$0x3] }
  0x12   : > { %s187_s5 = scalar_lea.vmem %s1331_s0, %s1057_s25  ;;  %vm335_vm4 = vsmask.f32 7424  ;;  %v476_v26 = vand.u32 %v945_v16, %v1219_v5  ;;  %v550_v27 = vand.u32 %v951_v17, %v1219_v5  ;;  %v957_v37 = vld [vmem:[%s1332_s1 + $0xc] sm:$0x3]  ;;  %v674_v40 = vand.u32 %v962_v36, %v1219_v5  ;;  %v968_v45 = vld [vmem:[%s1332_s1 + $0x10] sm:$0x3] }
  0x13   : > { %1004 = vmatpush3.bf16.msra.mxu0 %v227_v6  ;;  %1010 = vmatpush3.bf16.msra.mxu1 %v279_v7  ;;  %s1239_s6 = scalar_lea.vmem %s187_s5, %s977_s24  ;;  %v612_v41 = vand.u32 %v957_v37, %v1219_v5  ;;  %v748_v48 = vand.u32 %v968_v45, %v1219_v5  ;;  %s1348_s13 = smov (!%p189_p6, %s1139_s13), 1 }
  0x14   : > { %1015 = vmatprep.subr.bf16.mxu0 %v1153_v1  ;;  %1021 = vmatprep.subr.bf16.mxu1 %v1153_v1  ;;  %v1101_v11 = vld [vmem:[%s1239_s6 + $0xcc] sm:$0xff]   ;;  %v1102_v13 = vld [vmem:[%s1239_s6] sm:$0xff]   ;;  %v1104_v15 = vld [vmem:[%s1239_s6 + $0x8] ss:$0 sps:$4 sm:$0x11]   ;;  %s1350_s12 = smov (!%p191_p7, %s1135_s12), 15 }
  0x15   : > { %v1103_v14 = vld [vmem:[%s1239_s6] sm:$0xff]   ;;  %v344_v20 = vshll.u32 %v1104_v15, 16  ;;  %v1105_v21 = vld [vmem:[%s1239_s6 + $0x198] sm:$0xff]   ;;  %v1111_v42 = vld [vmem:[%s1239_s6 + $0xc] sm:$0xff]   ;;  %s923_s24 = sshll.u32 %s1350_s12, 1  ;;  %s924_s25 = sshll.u32 %s1348_s13, 5 }
  0x16   : > { %1006 = vmatmul.mubr.msk.bf16.vlgmr.msra.gmra.mxu0 %vm218_vm3, %v1101_v11  ;;  %1012 = vmatmul.mubr.msk.bf16.vlgmr.msra.gmra.mxu1 %vm218_vm3, %v1102_v13  ;;  %v337_v18 = vshrl.u32 %v1103_v14, 16  ;;  %v339_v19 = vshll.u32 %v1103_v14, 16  ;;  %v1107_v24 = vld [vmem:[%s1239_s6 + $0x198] sm:$0xff]   ;;  %v1108_v25 = vld [vmem:[%s1239_s6 + $0x1a0] ss:$0 sps:$4 sm:$0x11]   ;;  %s195_s28 = sadd.s32 %s924_s25, %s923_s24 }
  0x17   : > { %1016 = vmatpush3.bf16.msra.mxu0 %v352_v10  ;;  %1022 = vmatpush3.bf16.msra.mxu1 %v414_v12  ;;  %v346_v23 = vrot.slane %v344_v20, 1  ;;  %v535_v29 = vshrl.u32 %v1107_v24, 16  ;;  %v537_v30 = vshll.u32 %v1107_v24, 16  ;;  %v542_v31 = vshll.u32 %v1108_v25, 16  ;;  %v1106_v38 = vld [vmem:[%s1239_s6 + $0x264] sm:$0xff]   ;;  %v1110_v46 = vld [vmem:[%s1239_s6 + $0xd8] sm:$0xff]  }
  0x18   : > { %1017 = vmatprep.mubr.msk.bf16.mxu0 %vm1155_vm2, %v1153_v1  ;;  %1023 = vmatprep.mubr.msk.bf16.mxu1 %vm1155_vm2, %v1153_v1  ;;  %v341_v22 = vrot.slane %v339_v19, 1  ;;  %v1112_v43 = vld [vmem:[%s1239_s6 + $0x14] ss:$0 sps:$4 sm:$0x11]   ;;  %v735_v44 = vshll.u32 %v1111_v42, 16  ;;  %v1109_v47 = vld [vmem:[%s1239_s6 + $0xc] sm:$0xff]  }
  0x19   : > { %1027 = vmatprep.subr.bf16.mxu0 %v1153_v1  ;;  %1033 = vmatprep.subr.bf16.mxu1 %v1153_v1  ;;  %v539_v33 = vrot.slane %v537_v30, 1  ;;  %v544_v34 = vrot.slane %v542_v31, 1  ;;  %v733_v49 = vshrl.u32 %v1111_v42, 16  ;;  %v740_v51 = vshll.u32 %v1112_v43, 16  ;;  %s925_s29 = sshll.u32 %s195_s28, 2 }
  0x1a   : > { %v342_v28 = vor.u32 %v341_v22, %v337_v18  ;;  %v737_v50 = vrot.slane %v735_v44, 1  ;;  %s197_s12 = scalar_lea.vmem %s1334_s3, %s925_s29 }
  0x1b   : > { %v540_v35 = vor.u32 %v539_v33, %v535_v29  ;;  %v742_v53 = vrot.slane %v740_v51, 1 }
  0x1c   : > { %v347_v32 = vsel %vm335_vm4, %v342_v28, %v346_v23  ;;  %v738_v52 = vor.u32 %v737_v50, %v733_v49 }
  0x1d   : > { %v545_v39 = vsel %vm335_vm4, %v540_v35, %v544_v34 }
  0x1e   : > { %1024 = vmatmul.mubr.msk.bf16.vlgmr.msra.gmra.mxu1 %vm218_vm3, %v1105_v21  ;;  %1018 = vmatmul.mubr.msk.bf16.vlgmr.msra.gmra.mxu0 %vm218_vm3, %v347_v32  ;;  %v743_v54 = vsel %vm335_vm4, %v738_v52, %v742_v53 }
  0x1f   : > { %1034 = vmatpush3.bf16.msra.mxu1 %v550_v27  ;;  %1028 = vmatpush3.bf16.msra.mxu0 %v476_v26 }
  0x20   : > { %1029 = vmatprep.mubr.msk.bf16.mxu0 %vm1155_vm2, %v1153_v1  ;;  %1035 = vmatprep.mubr.msk.bf16.mxu1 %vm1155_vm2, %v1153_v1 }
  0x21   : > { %1039 = vmatprep.subr.bf16.mxu0 %v1153_v1  ;;  %1045 = vmatprep.subr.bf16.mxu1 %v1153_v1 }
  0x26   : > { %1036 = vmatmul.mubr.msk.bf16.vlgmr.msra.gmra.mxu1 %vm218_vm3, %v545_v39  ;;  %1030 = vmatmul.mubr.msk.bf16.vlgmr.msra.gmra.mxu0 %vm218_vm3, %v1106_v38  ;;  %v972_v38 = vld [vmem:[%s1333_s2] ss:$0 sm:$0xff] }
  0x27   : > { %1046 = vmatpush3.bf16.msra.mxu1 %v674_v40  ;;  %1040 = vmatpush3.bf16.msra.mxu0 %v612_v41 }
  0x28   : > { %1041 = vmatprep.mubr.msk.bf16.mxu0 %vm1155_vm2, %v1153_v1  ;;  %1047 = vmatprep.mubr.msk.bf16.mxu1 %vm1155_vm2, %v1153_v1 }
  0x29   : > { %1051 = vmatprep.subr.bf16.mxu0 %v1153_v1 }
  0x2e   : > { %1048 = vmatmul.mubr.msk.bf16.vlgmr.msra.gmra.mxu1 %vm218_vm3, %v1110_v46  ;;  %1042 = vmatmul.mubr.msk.bf16.vlgmr.msra.gmra.mxu0 %vm218_vm3, %v1109_v47 }
  0x2f   : > { %1052 = vmatpush3.bf16.msra.mxu0 %v748_v48  ;;  %1053 = vmatprep.mubr.msk.bf16.mxu0 %vm1155_vm2, %v1153_v1 }
  0x36   : > { %1054 = vmatmul.mubr.msk.bf16.vlgmr.msra.gmra.mxu0 %vm218_vm3, %v743_v54 }
  0xd6   : > { %v263_v55 = vpop.f32.mrf.mxu0  ;;  %v315_v56 = vpop.f32.mrf.mxu1 }
  0xd7   : > { %v316_v5 = vadd.f32 %v315_v56, %v263_v55 }
  0xd8   : > { %v1007_v57 = vpop.f32.mrf.mxu0  ;;  %v1013_v58 = vpop.f32.mrf.mxu1 }
  0xda   : > { %v266_v59 = vpop.f32.mrf.mxu0  ;;  %v318_v60 = vpop.f32.mrf.mxu1 }
  0xdb   : > { %v319_v11 = vadd.f32 %v318_v60, %v266_v59 }
  0xdc   : > { %v1008_v61 = vpop.f32.mrf.mxu0  ;;  %v1014_v62 = vpop.f32.mrf.mxu1 }
  0xde   : > { %v450_v63 = vpop.f32.mrf.mxu1  ;;  %v388_v0 = vpop.f32.mrf.mxu0 }
  0xdf   : > { %v395_v8 = vadd.f32 %v388_v0, %v316_v5 }
  0xe0   : > { %v1025_v2 = vpop.f32.mrf.mxu1  ;;  %v1019_v3 = vpop.f32.mrf.mxu0 }
  0xe1   : > { %v457_v14 = vadd.f32 %v450_v63, %v395_v8 }
  0xe2   : > { %v453_v4 = vpop.f32.mrf.mxu1  ;;  %v391_v1 = vpop.f32.mrf.mxu0 }
  0xe3   : > { %v396_v15 = vadd.f32 %v391_v1, %v319_v11 }
  0xe4   : > { %v1026_v6 = vpop.f32.mrf.mxu1  ;;  %v1020_v7 = vpop.f32.mrf.mxu0 }
  0xe5   : > { %v458_v21 = vadd.f32 %v453_v4, %v396_v15 }
  0xe6   : > { %v586_v9 = vpop.f32.mrf.mxu1  ;;  %v512_v10 = vpop.f32.mrf.mxu0 }
  0xe7   : > { %v519_v18 = vadd.f32 %v512_v10, %v457_v14 }
  0xe8   : > { %v1037_v12 = vpop.f32.mrf.mxu1  ;;  %v1031_v13 = vpop.f32.mrf.mxu0 }
  0xe9   : > { %v593_v24 = vadd.f32 %v586_v9, %v519_v18 }
  0xea   : > { %v589_v16 = vpop.f32.mrf.mxu1  ;;  %v515_v17 = vpop.f32.mrf.mxu0 }
  0xeb   : > { %v520_v25 = vadd.f32 %v515_v17, %v458_v21 }
  0xec   : > { %v1038_v19 = vpop.f32.mrf.mxu1  ;;  %v1032_v20 = vpop.f32.mrf.mxu0 }
  0xed   : > { %v594_v31 = vadd.f32 %v589_v16, %v520_v25 }
  0xee   : > { %v710_v22 = vpop.f32.mrf.mxu1  ;;  %v648_v23 = vpop.f32.mrf.mxu0 }
  0xef   : > { %v655_v28 = vadd.f32 %v648_v23, %v593_v24 }
  0xf0   : > { %v1049_v26 = vpop.f32.mrf.mxu1  ;;  %v1043_v27 = vpop.f32.mrf.mxu0 }
  0xf1   : > { %v717_v34 = vadd.f32 %v710_v22, %v655_v28 }
  0xf2   : > { %v713_v29 = vpop.f32.mrf.mxu1  ;;  %v651_v30 = vpop.f32.mrf.mxu0 }
  0xf3   : > { %v656_v35 = vadd.f32 %v651_v30, %v594_v31 }
  0xf4   : > { %v1050_v32 = vpop.f32.mrf.mxu1  ;;  %v1044_v33 = vpop.f32.mrf.mxu0 }
  0xf5   : > { %v718_v40 = vadd.f32 %v713_v29, %v656_v35 }
  0xf6   : > { %v784_v36 = vpop.f32.mrf.mxu0 }
  0xf7   : > { %v791_v37 = vadd.f32 %v784_v36, %v717_v34 }
  0xf8   : > { %v1055_v39 = vpop.f32.mrf.mxu0 }
  0xf9   : > { %v800_v42 = vadd.f32 %v972_v38, %v791_v37 }
  0xfa   : > { %v787_v41 = vpop.f32.mrf.mxu0 }
  0xfb   : > { %v792_v43 = vadd.f32 %v787_v41, %v718_v40  ;;  %v802_v46 = vmax.f32 %v800_v42, 0.0 }
  0xfc   : > { %v1056_v44 = vpop.f32.mrf.mxu0 }
  0xfd   : > { %v801_v45 = vadd.f32 %v972_v38, %v792_v43 }
  0xff   : > { %v803_v47 = vmax.f32 %v801_v45, 0.0 }
 0x101   : > { %v983_v48 = vpack.c.bf16 %v803_v47, %v802_v46 }
 0x103   : > { %984 = vst [vmem:[%s197_s12] sm:$0xff] %v983_v48  }
 0x104 PF: > { %s13_s16 = sadd.s32 1, %s1151_s16   ;;  %s1335_s12 = smov %s1143_s14 }
 0x105   : > { %p10_p8 = scmp.ge.s32.totalorder %s13_s16, 34   ;;  %s1336_s13 = smov %s1147_s15 }
 0x106   : > { %s1337_s14 = smov %s1340_s17  ;;  %s1338_s15 = smov %s1344_s18 }
 0x107   :  { %12 = sbr.rel (!%p10_p8) target bundleno = 3 (0x3), region = 76 }

// kernel: model_forward.8
= control target key start
LH: loop header
LB: loop body
LE: loop exit
PB: predicated region body
PF: predicated region fallthrough
CT: control target
= control target key end

     0   :  { %s2003_s12 = smov 0   ;;  %s2005_s13 = smov 0   ;;  %s2384_s0 = inlined_call_operand.vmem [shape: bf16[72,9,128], index: 0, kind: input, shape index: {}]   ;;  %s2385_s1 = inlined_call_operand.vmem [shape: bf16[9,128,128], index: 1, kind: input, shape index: {}]   ;;  %s2386_s2 = inlined_call_operand.vmem [shape: f32[1,128], index: 2, kind: input, shape index: {}]   ;;  %s2387_s3 = inlined_call_operand.vmem [shape: bf16[2,8,8,128], index: 3, kind: output, shape index: {}]  }
   0x1   :  { %s2007_s14 = smov 0   ;;  %s2009_s15 = smov 0  }
   0x2   :  { %s2011_s16 = smov 0  }
   0x3 LB: > { %s22_s17 = sadd.s32 1, %s1971_s14  ;;  %s25_s18 = sadd.s32 1, %s1975_s15  ;;  %s1979_s16 = sphi %s2011_s16, %s13_s16   ;;  %s1975_s15 = sphi %s2009_s15, %s2391_s15   ;;  %s1971_s14 = sphi %s2007_s14, %s2390_s14   ;;  %s1967_s13 = sphi %s2005_s13, %s2389_s13   ;;  %s1963_s12 = sphi %s2003_s12, %s2388_s12  }
   0x4   : > { %p23_p0 = scmp.ge.s32.totalorder %s22_s17, 8  ;;  %p1334_p1 = scmp.ge.s32.totalorder %s1979_s16, 1 }
   0x5   : > { %p153_p2 = scmp.lt.s32.totalorder %s1979_s16, 17 }
   0x6   : > { %s2393_s17 = smov (%p23_p0, %s22_s17), 0  ;;  %s2395_s18 = smov (!%p23_p0, %s25_s18), %s1975_s15 }
   0x7   : > { %p154_p3 = pnand %p1334_p1, %p153_p2  ;;  %p27_p4 = scmp.ge.s32.totalorder %s2395_s18, 2 }
   0x8   : > { %s181_s4 = smul.u32 (!%p154_p3), 36, %s1967_s13  ;;  %s1562_s30 = sshll.u32 (!%p154_p3), %s1963_s12, 3 }
   0x9   : > { %s2397_s18 = smov (%p27_p4, %s2395_s18), 0  ;;  %157 = sbr.rel (%p154_p3) target bundleno = 377 (0x179), region = 32 }
   0xa   : > { %p182_p5 = scmp.lt.s32.totalorder (!%p154_p3), %s181_s4, 71  ;;  %p188_p6 = scmp.lt.s32.totalorder (!%p154_p3), %s1967_s13, 1 }
   0xb   : > { %p190_p7 = scmp.lt.s32.totalorder (!%p154_p3), %s1963_s12, 7 }
   0xe   : > { %v1866_v0 = vld [vmem:[%s2385_s1 + $0x78] sm:$0xff]   ;;  %v1981_v1 = vmov 0.0   ;;  %v1868_v3 = vld [vmem:[%s2385_s1 + $0x70] sm:$0xff]   ;;  %vm1982_vm0 = vmmov 0   ;;  %v1870_v5 = vld [vmem:[%s2385_s1 + $0x68] sm:$0xff]   ;;  %s2399_s4 = smov (!%p182_p5, %s181_s4), 71 }
   0xf   : > { %1644 = vmatprep.subr.bf16.mxu0 %v1981_v1  ;;  %1664 = vmatprep.subr.bf16.mxu1 %v1981_v1  ;;  %v1867_v2 = vld [vmem:[%s2385_s1 + $0x38] sm:$0xff]   ;;  %v1869_v4 = vld [vmem:[%s2385_s1 + $0x30] sm:$0xff]   ;;  %v1871_v6 = vld [vmem:[%s2385_s1 + $0x28] sm:$0xff]   ;;  %s1561_s24 = sshll.u32 %s2399_s4, 3  ;;  %s2401_s13 = smov (!%p188_p6, %s1967_s13), 1 }
  0x10   : > { %1645 = vmatpush3.bf16.msra.mxu0 %v1866_v0  ;;  %1660 = vmatprep.mubr.msk.bf16.mxu0 %vm1982_vm0, %v1981_v1  ;;  %v1872_v7 = vld [vmem:[%s2385_s1 + $0x60] sm:$0xff]   ;;  %v1874_v9 = vld [vmem:[%s2385_s1 + $0x58] sm:$0xff]   ;;  %v1876_v11 = vld [vmem:[%s2385_s1 + $0x50] sm:$0xff]   ;;  %s186_s29 = scalar_lea.vmem %s2384_s0, %s1561_s24  ;;  %s2403_s12 = smov (!%p190_p7, %s1963_s12), 7 }
  0x11   : > { %1665 = vmatpush3.bf16.msra.mxu1 %v1867_v2  ;;  %1646 = vmatprep.subr.bf16.mxu0 %v1981_v1  ;;  %v1873_v8 = vld [vmem:[%s2385_s1 + $0x20] sm:$0xff]   ;;  %v1875_v10 = vld [vmem:[%s2385_s1 + $0x18] sm:$0xff]   ;;  %v1877_v12 = vld [vmem:[%s2385_s1 + $0x10] sm:$0xff]   ;;  %s2102_s4 = scalar_lea.vmem %s186_s29, %s1562_s30  ;;  %s1337_s8 = sshll.u32 %s2401_s13, 3 }
  0x12   : > { %1666 = vmatprep.subr.bf16.mxu1 %v1981_v1  ;;  %1680 = vmatprep.mubr.msk.bf16.mxu1 %vm1982_vm0, %v1981_v1  ;;  %v1878_v13 = vld [vmem:[%s2385_s1 + $0x48] sm:$0xff]   ;;  %v1880_v15 = vld [vmem:[%s2385_s1 + $0x40] sm:$0xff]   ;;  %v1882_v19 = vld [vmem:[%s2385_s1 + $0xb8] sm:$0xff]   ;;  %s193_s9 = sadd.s32 %s1337_s8, %s2403_s12 }
  0x13   : > { %v1879_v14 = vld [vmem:[%s2385_s1 + $0x8] sm:$0xff]   ;;  %v1881_v16 = vld [vmem:[%s2385_s1] sm:$0xff]   ;;  %v1883_v20 = vld [vmem:[%s2385_s1 + $0xf8] sm:$0xff]   ;;  %s1338_s19 = sshll.u32 %s193_s9, 2 }
  0x14   : > { %1647 = vmatpush3.bf16.msra.mxu0 %v1868_v3  ;;  %v1342_v17 = vld [vmem:[%s2102_s4 + $0x48] sm:$0xf]  ;;  %v200_v18 = vld [vmem:[%s2102_s4] sm:$0xf]  ;;  %v1884_v21 = vld [vmem:[%s2385_s1 + $0xb0] sm:$0xff]   ;;  %s195_s22 = scalar_lea.vmem %s2387_s3, %s1338_s19 }
  0x15   : > { %1667 = vmatpush3.bf16.msra.mxu1 %v1869_v4  ;;  %1648 = vmatprep.subr.bf16.mxu0 %v1981_v1  ;;  %v1885_v22 = vld [vmem:[%s2385_s1 + $0xf0] sm:$0xff]   ;;  %v1886_v23 = vld [vmem:[%s2385_s1 + $0xa8] sm:$0xff]   ;;  %v1888_v25 = vld [vmem:[%s2385_s1 + $0xa0] sm:$0xff]  }
  0x16   : > { %1668 = vmatprep.subr.bf16.mxu1 %v1981_v1  ;;  %v1887_v24 = vld [vmem:[%s2385_s1 + $0xe8] sm:$0xff]   ;;  %v1889_v26 = vld [vmem:[%s2385_s1 + $0xe0] sm:$0xff]   ;;  %v1890_v27 = vld [vmem:[%s2385_s1 + $0x98] sm:$0xff]  }
  0x17   : > { %v1891_v28 = vld [vmem:[%s2385_s1 + $0xd8] sm:$0xff]   ;;  %v1898_v29 = vld [vmem:[%s2102_s4] sm:$0x1f]   ;;  %v1892_v30 = vld [vmem:[%s2385_s1 + $0x90] sm:$0xff]  }
  0x18   : > { %1649 = vmatpush3.bf16.msra.mxu0 %v1870_v5  ;;  %v1893_v31 = vld [vmem:[%s2385_s1 + $0xd0] sm:$0xff]   ;;  %v442_v32 = vshll.u32 %v1898_v29, 16  ;;  %v1894_v33 = vld [vmem:[%s2385_s1 + $0x88] sm:$0xff]   ;;  %v440_v35 = vshrl.u32 %v1898_v29, 16  ;;  %v1896_v37 = vld [vmem:[%s2385_s1 + $0x80] sm:$0xff]  }
  0x19   : > { %1669 = vmatpush3.bf16.msra.mxu1 %v1871_v6  ;;  %1650 = vmatprep.subr.bf16.mxu0 %v1981_v1  ;;  %v1895_v34 = vld [vmem:[%s2385_s1 + $0xc8] sm:$0xff]   ;;  %v1897_v38 = vld [vmem:[%s2385_s1 + $0xc0] sm:$0xff]   ;;  %v1899_v40 = vld [vmem:[%s2385_s1 + $0x138] sm:$0xff]  }
  0x1a   : > { %1670 = vmatprep.subr.bf16.mxu1 %v1981_v1  ;;  %v444_v36 = vrot.slane %v442_v32, 1  ;;  %v1401_v41 = vld [vmem:[%s2102_s4 + $0x90] sm:$0xf]  ;;  %v1900_v42 = vld [vmem:[%s2385_s1 + $0x178] sm:$0xff]   ;;  %v1903_v45 = vld [vmem:[%s2385_s1 + $0x128] sm:$0xff]  }
  0x1b   : > { %v1901_v43 = vld [vmem:[%s2385_s1 + $0x130] sm:$0xff]   ;;  %v1904_v46 = vld [vmem:[%s2385_s1 + $0x168] sm:$0xff]   ;;  %v1905_v47 = vld [vmem:[%s2385_s1 + $0x120] sm:$0xff]  }
  0x1c   : > { %1651 = vmatpush3.bf16.msra.mxu0 %v1872_v7  ;;  %v445_v39 = vor.u32 %v444_v36, %v440_v35  ;;  %v1902_v44 = vld [vmem:[%s2385_s1 + $0x170] sm:$0xff]   ;;  %v1906_v48 = vld [vmem:[%s2385_s1 + $0x160] sm:$0xff]   ;;  %v1907_v49 = vld [vmem:[%s2385_s1 + $0x118] sm:$0xff]  }
  0x1d   : > { %1671 = vmatpush3.bf16.msra.mxu1 %v1873_v8  ;;  %1652 = vmatprep.subr.bf16.mxu0 %v1981_v1  ;;  %v1908_v50 = vld [vmem:[%s2385_s1 + $0x158] sm:$0xff]   ;;  %v1909_v51 = vld [vmem:[%s2385_s1 + $0x110] sm:$0xff]   ;;  %v1911_v54 = vld [vmem:[%s2385_s1 + $0x108] sm:$0xff]  }
  0x1e   : > { %1672 = vmatprep.subr.bf16.mxu1 %v1981_v1  ;;  %v1916_v52 = vld [vmem:[%s2102_s4 + $0x90] sm:$0x1f]   ;;  %v1912_v56 = vld [vmem:[%s2385_s1 + $0x148] sm:$0xff]   ;;  %v1913_v57 = vld [vmem:[%s2385_s1 + $0x100] sm:$0xff]  }
  0x1f   : > { %v1910_v53 = vld [vmem:[%s2385_s1 + $0x150] sm:$0xff]   ;;  %v785_v55 = vshll.u32 %v1916_v52, 16  ;;  %v783_v58 = vshrl.u32 %v1916_v52, 16  ;;  %v1914_v60 = vld [vmem:[%s2385_s1 + $0x140] sm:$0xff]   ;;  %v1427_v61 = vld [vmem:[%s2102_s4 + $0xd8] sm:$0xf] }
  0x20   : > { %1653 = vmatpush3.bf16.msra.mxu0 %v1874_v9  ;;  %v1915_v62 = vld [vmem:[%s2385_s1 + $0x1b8] sm:$0xff]   ;;  %v1918_v2 = vld [vmem:[%s2385_s1 + $0x1b0] sm:$0xff]   ;;  %v1920_v4 = vld [vmem:[%s2385_s1 + $0x1a8] sm:$0xff]  }
  0x21   : > { %1673 = vmatpush3.bf16.msra.mxu1 %v1875_v10  ;;  %1654 = vmatprep.subr.bf16.mxu0 %v1981_v1  ;;  %v787_v59 = vrot.slane %v785_v55, 1  ;;  %v1917_v0 = vld [vmem:[%s2385_s1 + $0x1f8] sm:$0xff]   ;;  %v1919_v3 = vld [vmem:[%s2385_s1 + $0x1f0] sm:$0xff]   ;;  %v1921_v5 = vld [vmem:[%s2385_s1 + $0x1e8] sm:$0xff]  }
  0x22   : > { %1674 = vmatprep.subr.bf16.mxu1 %v1981_v1  ;;  %v1922_v6 = vld [vmem:[%s2385_s1 + $0x1a0] sm:$0xff]   ;;  %v1924_v8 = vld [vmem:[%s2385_s1 + $0x198] sm:$0xff]   ;;  %v1926_v10 = vld [vmem:[%s2385_s1 + $0x190] sm:$0xff]  }
  0x23   : > { %v788_v63 = vor.u32 %v787_v59, %v783_v58  ;;  %v1923_v7 = vld [vmem:[%s2385_s1 + $0x1e0] sm:$0xff]   ;;  %v1925_v9 = vld [vmem:[%s2385_s1 + $0x1d8] sm:$0xff]  }
  0x24   : > { %1655 = vmatpush3.bf16.msra.mxu0 %v1876_v11  ;;  %v1927_v11 = vld [vmem:[%s2385_s1 + $0x1d0] sm:$0xff]   ;;  %v1939_v29 = vld [vmem:[%s2385_s1 + $0x200] sm:$0xff]  }
  0x25   : > { %1675 = vmatpush3.bf16.msra.mxu1 %v1877_v12  ;;  %1656 = vmatprep.subr.bf16.mxu0 %v1981_v1  ;;  %v1928_v12 = vld [vmem:[%s2385_s1 + $0x188] sm:$0xff]  }
  0x26   : > { %1676 = vmatprep.subr.bf16.mxu1 %v1981_v1 }
  0x28   : > { %1657 = vmatpush3.bf16.msra.mxu0 %v1878_v13  ;;  %v1929_v13 = vld [vmem:[%s2385_s1 + $0x1c8] sm:$0xff]  }
  0x29   : > { %1677 = vmatpush3.bf16.msra.mxu1 %v1879_v14  ;;  %1658 = vmatprep.subr.bf16.mxu0 %v1981_v1  ;;  %v1930_v14 = vld [vmem:[%s2385_s1 + $0x180] sm:$0xff]  }
  0x2a   : > { %1678 = vmatprep.subr.bf16.mxu1 %v1981_v1 }
  0x2c   : > { %1659 = vmatpush3.bf16.msra.mxu0 %v1880_v15  ;;  %v1931_v15 = vld [vmem:[%s2385_s1 + $0x1c0] sm:$0xff]  }
  0x2d   : > { %1679 = vmatpush3.bf16.msra.mxu1 %v1881_v16  ;;  %1684 = vmatprep.subr.bf16.mxu0 %v1981_v1  ;;  %v1480_v16 = vld [vmem:[%s2102_s4 + $0x8] sm:$0xf] }
  0x2e   : > { %1704 = vmatprep.subr.bf16.mxu1 %v1981_v1 }
  0x2f   : > { %1661 = vmatmul.mubr.bf16.vlgmr.msra.gmra.mxu0 %v1342_v17  ;;  %v1932_v17 = vld [vmem:[%s2385_s1 + $0x238] sm:$0xff]  }
  0x30   : > { %1681 = vmatmul.mubr.bf16.vlgmr.msra.gmra.mxu1 %v200_v18  ;;  %1685 = vmatpush3.bf16.msra.mxu0 %v1882_v19  ;;  %v1506_v18 = vld [vmem:[%s2102_s4 + $0x50] sm:$0xf] }
  0x31   : > { %1705 = vmatpush3.bf16.msra.mxu1 %v1883_v20  ;;  %1686 = vmatprep.subr.bf16.mxu0 %v1981_v1  ;;  %v1933_v19 = vld [vmem:[%s2385_s1 + $0x230] sm:$0xff]   ;;  %v1934_v20 = vld [vmem:[%s2385_s1 + $0x228] sm:$0xff]  }
  0x32   : > { %1706 = vmatprep.subr.bf16.mxu1 %v1981_v1  ;;  %1700 = vmatprep.mubr.msk.bf16.mxu0 %vm1982_vm0, %v1981_v1 }
  0x33   : > { %1720 = vmatprep.mubr.msk.bf16.mxu1 %vm1982_vm0, %v1981_v1 }
  0x34   : > { %1687 = vmatpush3.bf16.msra.mxu0 %v1884_v21  ;;  %v1935_v21 = vld [vmem:[%s2385_s1 + $0x220] sm:$0xff]  }
  0x35   : > { %1707 = vmatpush3.bf16.msra.mxu1 %v1885_v22  ;;  %1688 = vmatprep.subr.bf16.mxu0 %v1981_v1  ;;  %v1936_v22 = vld [vmem:[%s2385_s1 + $0x218] sm:$0xff]  }
  0x36   : > { %1708 = vmatprep.subr.bf16.mxu1 %v1981_v1 }
  0x38   : > { %1689 = vmatpush3.bf16.msra.mxu0 %v1886_v23  ;;  %v1940_v23 = vld [vmem:[%s2102_s4 + $0x8] sm:$0x1f]  }
  0x39   : > { %1709 = vmatpush3.bf16.msra.mxu1 %v1887_v24  ;;  %1690 = vmatprep.subr.bf16.mxu0 %v1981_v1  ;;  %v1937_v24 = vld [vmem:[%s2385_s1 + $0x210] sm:$0xff]  }
  0x3a   : > { %1710 = vmatprep.subr.bf16.mxu1 %v1981_v1 }
  0x3c   : > { %1691 = vmatpush3.bf16.msra.mxu0 %v1888_v25  ;;  %v1128_v25 = vshll.u32 %v1940_v23, 16 }
  0x3d   : > { %1711 = vmatpush3.bf16.msra.mxu1 %v1889_v26  ;;  %1692 = vmatprep.subr.bf16.mxu0 %v1981_v1  ;;  %v1938_v26 = vld [vmem:[%s2385_s1 + $0x208] sm:$0xff]  }
  0x3e   : > { %1712 = vmatprep.subr.bf16.mxu1 %v1981_v1 }
  0x40   : > { %1693 = vmatpush3.bf16.msra.mxu0 %v1890_v27  ;;  %v1126_v27 = vshrl.u32 %v1940_v23, 16 }
  0x41   : > { %1713 = vmatpush3.bf16.msra.mxu1 %v1891_v28  ;;  %1694 = vmatprep.subr.bf16.mxu0 %v1981_v1  ;;  %v1130_v28 = vrot.slane %v1128_v25, 1 }
  0x42   : > { %1714 = vmatprep.subr.bf16.mxu1 %v1981_v1 }
  0x44   : > { %1695 = vmatpush3.bf16.msra.mxu0 %v1892_v30  ;;  %v1131_v30 = vor.u32 %v1130_v28, %v1126_v27 }
  0x45   : > { %1715 = vmatpush3.bf16.msra.mxu1 %v1893_v31  ;;  %1696 = vmatprep.subr.bf16.mxu0 %v1981_v1 }
  0x46   : > { %1716 = vmatprep.subr.bf16.mxu1 %v1981_v1 }
  0x48   : > { %1697 = vmatpush3.bf16.msra.mxu0 %v1894_v33 }
  0x49   : > { %1717 = vmatpush3.bf16.msra.mxu1 %v1895_v34  ;;  %1698 = vmatprep.subr.bf16.mxu0 %v1981_v1 }
  0x4a   : > { %1718 = vmatprep.subr.bf16.mxu1 %v1981_v1 }
  0x4c   : > { %1699 = vmatpush3.bf16.msra.mxu0 %v1896_v37 }
  0x4d   : > { %1719 = vmatpush3.bf16.msra.mxu1 %v1897_v38  ;;  %1724 = vmatprep.subr.bf16.mxu0 %v1981_v1 }
  0x4e   : > { %1744 = vmatprep.subr.bf16.mxu1 %v1981_v1 }
  0x4f   : > { %1701 = vmatmul.mubr.bf16.vlgmr.msra.gmra.mxu0 %v445_v39 }
  0x50   : > { %1725 = vmatpush3.bf16.msra.mxu0 %v1899_v40  ;;  %1721 = vmatmul.mubr.bf16.vlgmr.msra.gmra.mxu1 %v1401_v41 }
  0x51   : > { %1745 = vmatpush3.bf16.msra.mxu1 %v1900_v42  ;;  %1726 = vmatprep.subr.bf16.mxu0 %v1981_v1 }
  0x52   : > { %1746 = vmatprep.subr.bf16.mxu1 %v1981_v1  ;;  %1740 = vmatprep.mubr.msk.bf16.mxu0 %vm1982_vm0, %v1981_v1 }
  0x53   : > { %1760 = vmatprep.mubr.msk.bf16.mxu1 %vm1982_vm0, %v1981_v1 }
  0x54   : > { %1727 = vmatpush3.bf16.msra.mxu0 %v1901_v43 }
  0x55   : > { %1747 = vmatpush3.bf16.msra.mxu1 %v1902_v44  ;;  %1728 = vmatprep.subr.bf16.mxu0 %v1981_v1 }
  0x56   : > { %1748 = vmatprep.subr.bf16.mxu1 %v1981_v1 }
  0x58   : > { %1729 = vmatpush3.bf16.msra.mxu0 %v1903_v45 }
  0x59   : > { %1749 = vmatpush3.bf16.msra.mxu1 %v1904_v46  ;;  %1730 = vmatprep.subr.bf16.mxu0 %v1981_v1 }
  0x5a   : > { %1750 = vmatprep.subr.bf16.mxu1 %v1981_v1 }
  0x5c   : > { %1731 = vmatpush3.bf16.msra.mxu0 %v1905_v47 }
  0x5d   : > { %1751 = vmatpush3.bf16.msra.mxu1 %v1906_v48  ;;  %1732 = vmatprep.subr.bf16.mxu0 %v1981_v1 }
  0x5e   : > { %1752 = vmatprep.subr.bf16.mxu1 %v1981_v1 }
  0x60   : > { %1733 = vmatpush3.bf16.msra.mxu0 %v1907_v49 }
  0x61   : > { %1753 = vmatpush3.bf16.msra.mxu1 %v1908_v50  ;;  %1734 = vmatprep.subr.bf16.mxu0 %v1981_v1 }
  0x62   : > { %1754 = vmatprep.subr.bf16.mxu1 %v1981_v1 }
  0x64   : > { %1735 = vmatpush3.bf16.msra.mxu0 %v1909_v51 }
  0x65   : > { %1755 = vmatpush3.bf16.msra.mxu1 %v1910_v53  ;;  %1736 = vmatprep.subr.bf16.mxu0 %v1981_v1 }
  0x66   : > { %1756 = vmatprep.subr.bf16.mxu1 %v1981_v1 }
  0x68   : > { %1737 = vmatpush3.bf16.msra.mxu0 %v1911_v54 }
  0x69   : > { %1757 = vmatpush3.bf16.msra.mxu1 %v1912_v56  ;;  %1738 = vmatprep.subr.bf16.mxu0 %v1981_v1 }
  0x6a   : > { %1758 = vmatprep.subr.bf16.mxu1 %v1981_v1 }
  0x6c   : > { %1739 = vmatpush3.bf16.msra.mxu0 %v1913_v57 }
  0x6d   : > { %1759 = vmatpush3.bf16.msra.mxu1 %v1914_v60  ;;  %1764 = vmatprep.subr.bf16.mxu0 %v1981_v1 }
  0x6e   : > { %1784 = vmatprep.subr.bf16.mxu1 %v1981_v1 }
  0x6f   : > { %1741 = vmatmul.mubr.bf16.vlgmr.msra.gmra.mxu0 %v1427_v61 }
  0x70   : > { %1765 = vmatpush3.bf16.msra.mxu0 %v1915_v62  ;;  %1761 = vmatmul.mubr.bf16.vlgmr.msra.gmra.mxu1 %v788_v63 }
  0x71   : > { %1785 = vmatpush3.bf16.msra.mxu1 %v1917_v0  ;;  %1766 = vmatprep.subr.bf16.mxu0 %v1981_v1 }
  0x72   : > { %1786 = vmatprep.subr.bf16.mxu1 %v1981_v1  ;;  %1780 = vmatprep.mubr.msk.bf16.mxu0 %vm1982_vm0, %v1981_v1 }
  0x73   : > { %1800 = vmatprep.mubr.msk.bf16.mxu1 %vm1982_vm0, %v1981_v1 }
  0x74   : > { %1767 = vmatpush3.bf16.msra.mxu0 %v1918_v2 }
  0x75   : > { %1787 = vmatpush3.bf16.msra.mxu1 %v1919_v3  ;;  %1768 = vmatprep.subr.bf16.mxu0 %v1981_v1 }
  0x76   : > { %1788 = vmatprep.subr.bf16.mxu1 %v1981_v1 }
  0x78   : > { %1769 = vmatpush3.bf16.msra.mxu0 %v1920_v4 }
  0x79   : > { %1789 = vmatpush3.bf16.msra.mxu1 %v1921_v5  ;;  %1770 = vmatprep.subr.bf16.mxu0 %v1981_v1 }
  0x7a   : > { %1790 = vmatprep.subr.bf16.mxu1 %v1981_v1 }
  0x7c   : > { %1771 = vmatpush3.bf16.msra.mxu0 %v1922_v6 }
  0x7d   : > { %1791 = vmatpush3.bf16.msra.mxu1 %v1923_v7  ;;  %1772 = vmatprep.subr.bf16.mxu0 %v1981_v1  ;;  %v1558_v7 = vld [vmem:[%s2386_s2] ss:$0 sm:$0xff] }
  0x7e   : > { %1792 = vmatprep.subr.bf16.mxu1 %v1981_v1 }
  0x80   : > { %1773 = vmatpush3.bf16.msra.mxu0 %v1924_v8 }
  0x81   : > { %1793 = vmatpush3.bf16.msra.mxu1 %v1925_v9  ;;  %1774 = vmatprep.subr.bf16.mxu0 %v1981_v1 }
  0x82   : > { %1794 = vmatprep.subr.bf16.mxu1 %v1981_v1 }
  0x84   : > { %1775 = vmatpush3.bf16.msra.mxu0 %v1926_v10 }
  0x85   : > { %1795 = vmatpush3.bf16.msra.mxu1 %v1927_v11  ;;  %1776 = vmatprep.subr.bf16.mxu0 %v1981_v1 }
  0x86   : > { %1796 = vmatprep.subr.bf16.mxu1 %v1981_v1 }
  0x88   : > { %1777 = vmatpush3.bf16.msra.mxu0 %v1928_v12 }
  0x89   : > { %1797 = vmatpush3.bf16.msra.mxu1 %v1929_v13  ;;  %1778 = vmatprep.subr.bf16.mxu0 %v1981_v1 }
  0x8a   : > { %1798 = vmatprep.subr.bf16.mxu1 %v1981_v1 }
  0x8c   : > { %1779 = vmatpush3.bf16.msra.mxu0 %v1930_v14 }
  0x8d   : > { %1799 = vmatpush3.bf16.msra.mxu1 %v1931_v15  ;;  %1804 = vmatprep.subr.bf16.mxu0 %v1981_v1 }
  0x8f   : > { %1781 = vmatmul.mubr.bf16.vlgmr.msra.gmra.mxu0 %v1480_v16 }
  0x90   : > { %1805 = vmatpush3.bf16.msra.mxu0 %v1932_v17  ;;  %1801 = vmatmul.mubr.bf16.vlgmr.msra.gmra.mxu1 %v1506_v18 }
  0x91   : > { %1806 = vmatprep.subr.bf16.mxu0 %v1981_v1  ;;  %1820 = vmatprep.mubr.msk.bf16.mxu0 %vm1982_vm0, %v1981_v1 }
  0x94   : > { %1807 = vmatpush3.bf16.msra.mxu0 %v1933_v19 }
  0x95   : > { %1808 = vmatprep.subr.bf16.mxu0 %v1981_v1 }
  0x98   : > { %1809 = vmatpush3.bf16.msra.mxu0 %v1934_v20 }
  0x99   : > { %1810 = vmatprep.subr.bf16.mxu0 %v1981_v1 }
  0x9c   : > { %1811 = vmatpush3.bf16.msra.mxu0 %v1935_v21 }
  0x9d   : > { %1812 = vmatprep.subr.bf16.mxu0 %v1981_v1 }
  0xa0   : > { %1813 = vmatpush3.bf16.msra.mxu0 %v1936_v22 }
  0xa1   : > { %1814 = vmatprep.subr.bf16.mxu0 %v1981_v1 }
  0xa4   : > { %1815 = vmatpush3.bf16.msra.mxu0 %v1937_v24 }
  0xa5   : > { %1816 = vmatprep.subr.bf16.mxu0 %v1981_v1 }
  0xa8   : > { %1817 = vmatpush3.bf16.msra.mxu0 %v1938_v26 }
  0xa9   : > { %1818 = vmatprep.subr.bf16.mxu0 %v1981_v1 }
  0xac   : > { %1819 = vmatpush3.bf16.msra.mxu0 %v1939_v29 }
  0xaf   : > { %1821 = vmatmul.mubr.bf16.vlgmr.msra.gmra.mxu0 %v1131_v30 }
  0xef   : > { %v321_v31 = vpop.f32.mrf.mxu0 }
  0xf0   : > { %v409_v32 = vpop.f32.mrf.mxu1 }
  0xf1   : > { %v410_v33 = vadd.f32 %v409_v32, %v321_v31  ;;  %v1662_v34 = vpop.f32.mrf.mxu0 }
  0xf2   : > { %v1682_v35 = vpop.f32.mrf.mxu1 }
  0xf3   : > { %v324_v36 = vpop.f32.mrf.mxu0 }
  0xf4   : > { %v412_v37 = vpop.f32.mrf.mxu1 }
  0xf5   : > { %v1663_v38 = vpop.f32.mrf.mxu0 }
  0xf6   : > { %v1683_v39 = vpop.f32.mrf.mxu1 }
 0x10f   : > { %v529_v40 = vpop.f32.mrf.mxu0 }
 0x110   : > { %v535_v41 = vadd.f32 %v529_v40, %v410_v33  ;;  %v640_v42 = vpop.f32.mrf.mxu1 }
 0x111   : > { %v1702_v43 = vpop.f32.mrf.mxu0 }
 0x112   : > { %v646_v44 = vadd.f32 %v640_v42, %v535_v41  ;;  %v1722_v45 = vpop.f32.mrf.mxu1 }
 0x113   : > { %v532_v46 = vpop.f32.mrf.mxu0 }
 0x114   : > { %v643_v1 = vpop.f32.mrf.mxu1 }
 0x115   : > { %v1703_v47 = vpop.f32.mrf.mxu0 }
 0x116   : > { %v1723_v48 = vpop.f32.mrf.mxu1 }
 0x12f   : > { %v751_v49 = vpop.f32.mrf.mxu0 }
 0x130   : > { %v872_v50 = vpop.f32.mrf.mxu1  ;;  %v757_v2 = vadd.f32 %v751_v49, %v646_v44 }
 0x131   : > { %v1742_v51 = vpop.f32.mrf.mxu0 }
 0x132   : > { %v1762_v52 = vpop.f32.mrf.mxu1  ;;  %v878_v3 = vadd.f32 %v872_v50, %v757_v2 }
 0x133   : > { %v754_v53 = vpop.f32.mrf.mxu0 }
 0x134   : > { %v875_v54 = vpop.f32.mrf.mxu1 }
 0x135   : > { %v1743_v55 = vpop.f32.mrf.mxu0 }
 0x136   : > { %v1763_v56 = vpop.f32.mrf.mxu1 }
 0x14f   : > { %v983_v57 = vpop.f32.mrf.mxu0 }
 0x150   : > { %v1094_v58 = vpop.f32.mrf.mxu1  ;;  %v989_v4 = vadd.f32 %v983_v57, %v878_v3 }
 0x151   : > { %v1782_v59 = vpop.f32.mrf.mxu0 }
 0x152   : > { %v1802_v60 = vpop.f32.mrf.mxu1  ;;  %v1100_v5 = vadd.f32 %v1094_v58, %v989_v4 }
 0x153   : > { %v986_v61 = vpop.f32.mrf.mxu0 }
 0x154   : > { %v1097_v62 = vpop.f32.mrf.mxu1 }
 0x155   : > { %v1783_v63 = vpop.f32.mrf.mxu0 }
 0x156   : > { %v1803_v0 = vpop.f32.mrf.mxu1 }
 0x16f   : > { %v1215_v6 = vpop.f32.mrf.mxu0 }
 0x170   : > { %v1221_v8 = vadd.f32 %v1215_v6, %v1100_v5 }
 0x171   : > { %v1822_v9 = vpop.f32.mrf.mxu0 }
 0x172   : > { %v1229_v10 = vadd.f32 %v1558_v7, %v1221_v8 }
 0x173   : > { %v1218_v11 = vpop.f32.mrf.mxu0 }
 0x174   : > { %v1230_v12 = vmax.f32 %v1229_v10, 0.0 }
 0x175   : > { %v1823_v13 = vpop.f32.mrf.mxu0 }
 0x176   : > { %v1231_v14 = vpack.c.bf16 %v1230_v12, %v1230_v12 }
 0x178   : > { %1232 = vst [vmem:[%s195_s22] sm:$0xf] %v1231_v14 }
 0x179 PF: > { %s13_s16 = sadd.s32 1, %s1979_s16   ;;  %s2388_s12 = smov %s1971_s14 }
 0x17a   : > { %p10_p8 = scmp.ge.s32.totalorder %s13_s16, 18   ;;  %s2389_s13 = smov %s1975_s15 }
 0x17b   : > { %s2390_s14 = smov %s2393_s17  ;;  %s2391_s15 = smov %s2397_s18 }
 0x17c   :  { %12 = sbr.rel (!%p10_p8) target bundleno = 3 (0x3), region = 76 }

// kernel: model_forward.10
= control target key start
LH: loop header
LB: loop body
LE: loop exit
PB: predicated region body
PF: predicated region fallthrough
CT: control target
= control target key end

     0   :  { %s304_s1 = inlined_call_operand.vmem [shape: bf16[128,128], index: 1, kind: input, shape index: {}]   ;;  %s305_s0 = inlined_call_operand.vmem [shape: bf16[32,128], index: 0, kind: input, shape index: {}]   ;;  %s306_s2 = inlined_call_operand.vmem [shape: f32[1,128], index: 2, kind: input, shape index: {}]   ;;  %s307_s3 = inlined_call_operand.vmem [shape: bf16[32,128], index: 3, kind: output, shape index: {}]  }
   0x1   :  { %v235_v0 = vld [vmem:[%s304_s1 + $0x38] sm:$0xff]   ;;  %v236_v1 = vld [vmem:[%s304_s1 + $0x30] sm:$0xff]   ;;  %v237_v2 = vld [vmem:[%s304_s1 + $0x28] sm:$0xff]  }
   0x2   :  { %215 = vmatprep.subr.bf16.mxu0 %v235_v0  ;;  %v238_v3 = vld [vmem:[%s304_s1 + $0x20] sm:$0xff]   ;;  %v239_v5 = vld [vmem:[%s304_s1 + $0x18] sm:$0xff]   ;;  %v240_v6 = vld [vmem:[%s304_s1 + $0x10] sm:$0xff]  }
   0x3   :  { %216 = vmatpush3.bf16.msra.mxu0 %v235_v0  ;;  %v243_v4 = vld [vmem:[%s305_s0] sm:$0xff]   ;;  %v241_v7 = vld [vmem:[%s304_s1 + $0x8] sm:$0xff]  }
   0x4   :  { %217 = vmatprep.subr.bf16.mxu0 %v236_v1  ;;  %231 = vmatprep.mubr.bf16.mxu0 %v243_v4  ;;  %v242_v8 = vld [vmem:[%s304_s1] sm:$0xff]   ;;  %v244_v9 = vld [vmem:[%s305_s0 + $0x8] sm:$0xff]  }
   0x5   :  { %v175_v11 = vld [vmem:[%s306_s2] ss:$0 sm:$0xff] }
   0x7   :  { %218 = vmatpush3.bf16.msra.mxu0 %v236_v1 }
   0x8   :  { %219 = vmatprep.subr.bf16.mxu0 %v237_v2 }
   0xb   :  { %220 = vmatpush3.bf16.msra.mxu0 %v237_v2 }
   0xc   :  { %221 = vmatprep.subr.bf16.mxu0 %v238_v3 }
   0xf   :  { %222 = vmatpush3.bf16.msra.mxu0 %v238_v3 }
  0x10   :  { %223 = vmatprep.subr.bf16.mxu0 %v239_v5 }
  0x13   :  { %224 = vmatpush3.bf16.msra.mxu0 %v239_v5 }
  0x14   :  { %225 = vmatprep.subr.bf16.mxu0 %v240_v6 }
  0x17   :  { %226 = vmatpush3.bf16.msra.mxu0 %v240_v6 }
  0x18   :  { %227 = vmatprep.subr.bf16.mxu0 %v241_v7 }
  0x1b   :  { %228 = vmatpush3.bf16.msra.mxu0 %v241_v7 }
  0x1c   :  { %229 = vmatprep.subr.bf16.mxu0 %v242_v8 }
  0x1f   :  { %230 = vmatpush3.bf16.msra.mxu0 %v242_v8 }
  0x22   :  { %232 = vmatmul.mubr.bf16.vlgmr.msra.gmra.mxu0 %v244_v9 }
  0xe2   :  { %v233_v10 = vpop.f32.mrf.mxu0 }
  0xe3   :  { %v145_v14 = vadd.f32 %v233_v10, %v175_v11 }
  0xe4   :  { %v136_v12 = vpop.f32.mrf.mxu0 }
  0xe5   :  { %v137_v17 = vadd.f32 %v175_v11, %v136_v12 }
  0xe6   :  { %v234_v13 = vpop.f32.mrf.mxu0 }
  0xe7   :  { %v148_v15 = vadd.f32 %v234_v13, %v175_v11 }
  0xe8   :  { %v139_v16 = vpop.f32.mrf.mxu0 }
  0xe9   :  { %v202_v18 = vpack.c.bf16 %v148_v15, %v145_v14  ;;  %v140_v19 = vadd.f32 %v175_v11, %v139_v16 }
  0xeb   :  { %204 = vst [vmem:[%s307_s3 + $0x8] sm:$0xff] %v202_v18   ;;  %v197_v20 = vpack.c.bf16 %v140_v19, %v137_v17 }
  0xed   :  { %198 = vst [vmem:[%s307_s3] sm:$0xff] %v197_v20  }

// kernel: model_forward.11
= control target key start
LH: loop header
LB: loop body
LE: loop exit
PB: predicated region body
PF: predicated region fallthrough
CT: control target
= control target key end

     0   :  { %s739_s1 = inlined_call_operand.vmem [shape: bf16[128,128], index: 1, kind: input, shape index: {}]   ;;  %s740_s0 = inlined_call_operand.vmem [shape: bf16[128,128], index: 0, kind: input, shape index: {}]   ;;  %s741_s2 = inlined_call_operand.vmem [shape: f32[1,128], index: 2, kind: input, shape index: {}]   ;;  %s742_s3 = inlined_call_operand.vmem [shape: bf16[128,128], index: 3, kind: input, shape index: {}]   ;;  %s743_s4 = inlined_call_operand.vmem [shape: bf16[128,128], index: 4, kind: output, shape index: {}]  }
   0x1   :  { %v581_v0 = vld [vmem:[%s739_s1 + $0x38] sm:$0xff]   ;;  %v582_v1 = vld [vmem:[%s739_s1 + $0x30] sm:$0xff]   ;;  %v583_v2 = vld [vmem:[%s739_s1 + $0x28] sm:$0xff]  }
   0x2   :  { %533 = vmatprep.subr.bf16.mxu0 %v581_v0  ;;  %565 = vmatprep.subr.bf16.mxu1 %v581_v0  ;;  %v584_v3 = vld [vmem:[%s739_s1 + $0x20] sm:$0xff]   ;;  %v585_v6 = vld [vmem:[%s739_s1 + $0x18] sm:$0xff]   ;;  %v586_v7 = vld [vmem:[%s739_s1 + $0x10] sm:$0xff]  }
   0x3   :  { %534 = vmatpush3.bf16.msra.mxu0 %v581_v0  ;;  %573 = vmatpush3.bf16.msra.mxu1 %v581_v0  ;;  %v589_v4 = vld [vmem:[%s740_s0] sm:$0xff]   ;;  %v587_v8 = vld [vmem:[%s739_s1 + $0x8] sm:$0xff]   ;;  %v593_v12 = vld [vmem:[%s740_s0 + $0x10] sm:$0xff]  }
   0x4   :  { %535 = vmatprep.subr.bf16.mxu0 %v582_v1  ;;  %566 = vmatprep.subr.bf16.mxu1 %v582_v1  ;;  %v590_v5 = vld [vmem:[%s740_s0 + $0x20] sm:$0xff]   ;;  %v591_v10 = vld [vmem:[%s740_s0 + $0x8] sm:$0xff]   ;;  %v594_v13 = vld [vmem:[%s740_s0 + $0x30] sm:$0xff]  }
   0x5   :  { %549 = vmatprep.mubr.bf16.mxu0 %v589_v4  ;;  %557 = vmatprep.mubr.bf16.mxu1 %v590_v5  ;;  %v588_v9 = vld [vmem:[%s739_s1] sm:$0xff]   ;;  %v592_v11 = vld [vmem:[%s740_s0 + $0x28] sm:$0xff]   ;;  %v595_v14 = vld [vmem:[%s740_s0 + $0x18] sm:$0xff]  }
   0x6   :  { %v596_v15 = vld [vmem:[%s740_s0 + $0x38] sm:$0xff]   ;;  %v673_v16 = vld [vmem:[%s741_s2] ss:$0 sm:$0xff]  ;;  %v503_v17 = vld [vmem:[%s742_s3 + $0x8] sm:$0xff]  }
   0x7   :  { %536 = vmatpush3.bf16.msra.mxu0 %v582_v1  ;;  %574 = vmatpush3.bf16.msra.mxu1 %v582_v1  ;;  %v507_v18 = vld [vmem:[%s742_s3 + $0x28] sm:$0xff]   ;;  %v432_v21 = vld [vmem:[%s742_s3] sm:$0xff]   ;;  %v437_v24 = vunpack.c.l.bf16 %v503_v17  ;;  %v438_v29 = vunpack.c.h.bf16 %v503_v17  ;;  %v505_v49 = vld [vmem:[%s742_s3 + $0x18] sm:$0xff]  }
   0x8   :  { %537 = vmatprep.subr.bf16.mxu0 %v583_v2  ;;  %567 = vmatprep.subr.bf16.mxu1 %v583_v2  ;;  %v506_v22 = vld [vmem:[%s742_s3 + $0x20] sm:$0xff]   ;;  %v453_v26 = vunpack.c.l.bf16 %v507_v18  ;;  %v454_v30 = vunpack.c.h.bf16 %v507_v18  ;;  %v433_v32 = vunpack.c.l.bf16 %v432_v21  ;;  %v434_v39 = vunpack.c.h.bf16 %v432_v21  ;;  %v509_v50 = vld [vmem:[%s742_s3 + $0x38] sm:$0xff]   ;;  %v504_v59 = vld [vmem:[%s742_s3 + $0x10] sm:$0xff]  }
   0x9   :  { %v449_v34 = vunpack.c.l.bf16 %v506_v22  ;;  %v450_v40 = vunpack.c.h.bf16 %v506_v22  ;;  %v508_v60 = vld [vmem:[%s742_s3 + $0x30] sm:$0xff]   ;;  %v445_v62 = vunpack.c.l.bf16 %v505_v49  ;;  %v461_v0 = vunpack.c.l.bf16 %v509_v50 }
   0xa   :  { %v446_v5 = vunpack.c.h.bf16 %v505_v49  ;;  %v458_v17 = vunpack.c.h.bf16 %v508_v60 }
   0xb   :  { %538 = vmatpush3.bf16.msra.mxu0 %v583_v2  ;;  %575 = vmatpush3.bf16.msra.mxu1 %v583_v2 }
   0xc   :  { %539 = vmatprep.subr.bf16.mxu0 %v584_v3  ;;  %568 = vmatprep.subr.bf16.mxu1 %v584_v3 }
   0xf   :  { %540 = vmatpush3.bf16.msra.mxu0 %v584_v3  ;;  %576 = vmatpush3.bf16.msra.mxu1 %v584_v3 }
  0x10   :  { %541 = vmatprep.subr.bf16.mxu0 %v585_v6  ;;  %569 = vmatprep.subr.bf16.mxu1 %v585_v6 }
  0x13   :  { %542 = vmatpush3.bf16.msra.mxu0 %v585_v6  ;;  %577 = vmatpush3.bf16.msra.mxu1 %v585_v6  ;;  %v462_v6 = vunpack.c.h.bf16 %v509_v50 }
  0x14   :  { %543 = vmatprep.subr.bf16.mxu0 %v586_v7  ;;  %570 = vmatprep.subr.bf16.mxu1 %v586_v7 }
  0x17   :  { %544 = vmatpush3.bf16.msra.mxu0 %v586_v7  ;;  %578 = vmatpush3.bf16.msra.mxu1 %v586_v7 }
  0x18   :  { %545 = vmatprep.subr.bf16.mxu0 %v587_v8  ;;  %571 = vmatprep.subr.bf16.mxu1 %v587_v8 }
  0x1b   :  { %546 = vmatpush3.bf16.msra.mxu0 %v587_v8  ;;  %579 = vmatpush3.bf16.msra.mxu1 %v587_v8  ;;  %v441_v8 = vunpack.c.l.bf16 %v504_v59 }
  0x1c   :  { %547 = vmatprep.subr.bf16.mxu0 %v588_v9  ;;  %572 = vmatprep.subr.bf16.mxu1 %v588_v9 }
  0x1f   :  { %548 = vmatpush3.bf16.msra.mxu0 %v588_v9  ;;  %580 = vmatpush3.bf16.msra.mxu1 %v588_v9 }
  0x22   :  { %550 = vmatmul.mubr.bf16.vlgmr.msra.gmra.mxu0 %v591_v10  ;;  %558 = vmatmul.mubr.bf16.vlgmr.msra.gmra.mxu1 %v592_v11  ;;  %v457_v10 = vunpack.c.l.bf16 %v508_v60 }
  0x23   :  { %553 = vmatprep.mubr.bf16.mxu0 %v593_v12  ;;  %561 = vmatprep.mubr.bf16.mxu1 %v594_v13 }
  0x2a   :  { %554 = vmatmul.mubr.bf16.gmra.mxu0 %v595_v14  ;;  %562 = vmatmul.mubr.bf16.gmra.mxu1 %v596_v15  ;;  %v442_v15 = vunpack.c.h.bf16 %v504_v59 }
  0xe2   :  { %v551_v19 = vpop.f32.mrf.mxu0  ;;  %v559_v20 = vpop.f32.mrf.mxu1 }
  0xe3   :  { %v196_v23 = vadd.f32 %v551_v19, %v673_v16  ;;  %v228_v25 = vadd.f32 %v559_v20, %v673_v16 }
  0xe4   :  { %v187_v27 = vpop.f32.mrf.mxu0  ;;  %v219_v28 = vpop.f32.mrf.mxu1 }
  0xe5   :  { %v188_v31 = vadd.f32 %v673_v16, %v187_v27  ;;  %v220_v33 = vadd.f32 %v673_v16, %v219_v28  ;;  %v284_v41 = vadd.f32 %v437_v24, %v196_v23  ;;  %v292_v42 = vadd.f32 %v453_v26, %v228_v25 }
  0xe6   :  { %v552_v35 = vpop.f32.mrf.mxu0  ;;  %v560_v36 = vpop.f32.mrf.mxu1 }
  0xe7   :  { %v199_v37 = vadd.f32 %v552_v35, %v673_v16  ;;  %v231_v38 = vadd.f32 %v560_v36, %v673_v16  ;;  %v282_v51 = vadd.f32 %v433_v32, %v188_v31  ;;  %v290_v52 = vadd.f32 %v449_v34, %v220_v33 }
  0xe8   :  { %v190_v43 = vpop.f32.mrf.mxu0  ;;  %v222_v44 = vpop.f32.mrf.mxu1 }
  0xe9   :  { %v285_v45 = vadd.f32 %v438_v29, %v199_v37  ;;  %v293_v46 = vadd.f32 %v454_v30, %v231_v38  ;;  %v191_v47 = vadd.f32 %v673_v16, %v190_v43  ;;  %v223_v48 = vadd.f32 %v673_v16, %v222_v44 }
  0xea   :  { %v555_v53 = vpop.f32.mrf.mxu0  ;;  %v563_v54 = vpop.f32.mrf.mxu1 }
  0xeb   :  { %v471_v55 = vpack.c.bf16 %v285_v45, %v284_v41  ;;  %v491_v56 = vpack.c.bf16 %v293_v46, %v292_v42  ;;  %v283_v57 = vadd.f32 %v434_v39, %v191_v47  ;;  %v291_v58 = vadd.f32 %v450_v40, %v223_v48 }
  0xec   :  { %v212_v61 = vadd.f32 %v555_v53, %v673_v16  ;;  %v244_v63 = vadd.f32 %v563_v54, %v673_v16  ;;  %v203_v1 = vpop.f32.mrf.mxu0  ;;  %v235_v2 = vpop.f32.mrf.mxu1 }
  0xed   :  { %510 = vst [vmem:[%s743_s4 + $0x8] sm:$0xff] %v471_v55   ;;  %514 = vst [vmem:[%s743_s4 + $0x28] sm:$0xff] %v491_v56   ;;  %v466_v3 = vpack.c.bf16 %v283_v57, %v282_v51  ;;  %v486_v4 = vpack.c.bf16 %v291_v58, %v290_v52  ;;  %v204_v7 = vadd.f32 %v673_v16, %v203_v1 }
  0xee   :  { %v236_v9 = vadd.f32 %v673_v16, %v235_v2  ;;  %v556_v11 = vpop.f32.mrf.mxu0  ;;  %v564_v12 = vpop.f32.mrf.mxu1  ;;  %v288_v18 = vadd.f32 %v445_v62, %v212_v61  ;;  %v296_v19 = vadd.f32 %v461_v0, %v244_v63 }
  0xef   :  { %467 = vst [vmem:[%s743_s4] sm:$0xff] %v466_v3   ;;  %513 = vst [vmem:[%s743_s4 + $0x20] sm:$0xff] %v486_v4   ;;  %v215_v13 = vadd.f32 %v556_v11, %v673_v16  ;;  %v247_v14 = vadd.f32 %v564_v12, %v673_v16  ;;  %v286_v26 = vadd.f32 %v441_v8, %v204_v7 }
  0xf0   :  { %v206_v20 = vpop.f32.mrf.mxu0  ;;  %v238_v21 = vpop.f32.mrf.mxu1  ;;  %v294_v27 = vadd.f32 %v457_v10, %v236_v9 }
  0xf1   :  { %v289_v22 = vadd.f32 %v446_v5, %v215_v13  ;;  %v297_v23 = vadd.f32 %v462_v6, %v247_v14  ;;  %v207_v24 = vadd.f32 %v673_v16, %v206_v20  ;;  %v239_v25 = vadd.f32 %v673_v16, %v238_v21 }
  0xf3   :  { %v481_v28 = vpack.c.bf16 %v289_v22, %v288_v18  ;;  %v501_v29 = vpack.c.bf16 %v297_v23, %v296_v19  ;;  %v287_v30 = vadd.f32 %v442_v15, %v207_v24  ;;  %v295_v31 = vadd.f32 %v458_v17, %v239_v25 }
  0xf5   :  { %512 = vst [vmem:[%s743_s4 + $0x18] sm:$0xff] %v481_v28   ;;  %516 = vst [vmem:[%s743_s4 + $0x38] sm:$0xff] %v501_v29   ;;  %v476_v32 = vpack.c.bf16 %v287_v30, %v286_v26  ;;  %v496_v33 = vpack.c.bf16 %v295_v31, %v294_v27 }
  0xf7   :  { %511 = vst [vmem:[%s743_s4 + $0x10] sm:$0xff] %v476_v32   ;;  %515 = vst [vmem:[%s743_s4 + $0x30] sm:$0xff] %v496_v33  }

// kernel: model_forward.9
= control target key start
LH: loop header
LB: loop body
LE: loop exit
PB: predicated region body
PF: predicated region fallthrough
CT: control target
= control target key end

     0   :  { %s1979_s12 = smov 0   ;;  %s1981_s13 = smov 0   ;;  %s2360_s0 = inlined_call_operand.vmem [shape: bf16[40,5,128], index: 0, kind: input, shape index: {}]   ;;  %s2361_s1 = inlined_call_operand.vmem [shape: bf16[9,128,128], index: 1, kind: input, shape index: {}]   ;;  %s2362_s2 = inlined_call_operand.vmem [shape: f32[1,128], index: 2, kind: input, shape index: {}]   ;;  %s2363_s3 = inlined_call_operand.vmem [shape: bf16[2,4,4,128], index: 3, kind: output, shape index: {}]  }
   0x1   :  { %s1983_s14 = smov 0   ;;  %s1985_s15 = smov 0  }
   0x2   :  { %s1987_s16 = smov 0  }
   0x3 LB: > { %s22_s17 = sadd.s32 1, %s1947_s14  ;;  %s25_s18 = sadd.s32 1, %s1951_s15  ;;  %s1955_s16 = sphi %s1987_s16, %s13_s16   ;;  %s1951_s15 = sphi %s1985_s15, %s2367_s15   ;;  %s1947_s14 = sphi %s1983_s14, %s2366_s14   ;;  %s1943_s13 = sphi %s1981_s13, %s2365_s13   ;;  %s1939_s12 = sphi %s1979_s12, %s2364_s12  }
   0x4   : > { %p23_p0 = scmp.ge.s32.totalorder %s22_s17, 4  ;;  %p1316_p1 = scmp.ge.s32.totalorder %s1955_s16, 1 }
   0x5   : > { %p152_p2 = scmp.lt.s32.totalorder %s1955_s16, 9 }
   0x6   : > { %s2369_s17 = smov (%p23_p0, %s22_s17), 0  ;;  %s2371_s18 = smov (!%p23_p0, %s25_s18), %s1951_s15 }
   0x7   : > { %p153_p3 = pnand %p1316_p1, %p152_p2  ;;  %p27_p4 = scmp.ge.s32.totalorder %s2371_s18, 2 }
   0x8   : > { %s179_s4 = smul.u32 (!%p153_p3), 20, %s1943_s13  ;;  %s1320_s30 = sshll.u32 (!%p153_p3), %s1939_s12, 2 }
   0x9   : > { %s2373_s18 = smov (%p27_p4, %s2371_s18), 0  ;;  %156 = sbr.rel (%p153_p3) target bundleno = 377 (0x179), region = 32 }
   0xa   : > { %p180_p5 = scmp.lt.s32.totalorder (!%p153_p3), %s179_s4, 39  ;;  %p185_p6 = scmp.lt.s32.totalorder (!%p153_p3), %s1943_s13, 1 }
   0xb   : > { %p187_p7 = scmp.lt.s32.totalorder (!%p153_p3), %s1939_s12, 3 }
   0xe   : > { %v1842_v0 = vld [vmem:[%s2361_s1 + $0x78] sm:$0xff]   ;;  %v1957_v1 = vmov 0.0   ;;  %v1844_v3 = vld [vmem:[%s2361_s1 + $0x70] sm:$0xff]   ;;  %vm1958_vm0 = vmmov 0   ;;  %v1846_v5 = vld [vmem:[%s2361_s1 + $0x68] sm:$0xff]   ;;  %s2375_s4 = smov (!%p180_p5, %s179_s4), 39 }
   0xf   : > { %1620 = vmatprep.subr.bf16.mxu0 %v1957_v1  ;;  %1640 = vmatprep.subr.bf16.mxu1 %v1957_v1  ;;  %v1843_v2 = vld [vmem:[%s2361_s1 + $0x38] sm:$0xff]   ;;  %v1845_v4 = vld [vmem:[%s2361_s1 + $0x30] sm:$0xff]   ;;  %v1847_v6 = vld [vmem:[%s2361_s1 + $0x28] sm:$0xff]   ;;  %s1317_s24 = sshll.u32 %s2375_s4, 2  ;;  %s2377_s13 = smov (!%p185_p6, %s1943_s13), 1 }
  0x10   : > { %1621 = vmatpush3.bf16.msra.mxu0 %v1842_v0  ;;  %1636 = vmatprep.mubr.msk.bf16.mxu0 %vm1958_vm0, %v1957_v1  ;;  %v1848_v7 = vld [vmem:[%s2361_s1 + $0x60] sm:$0xff]   ;;  %v1850_v9 = vld [vmem:[%s2361_s1 + $0x58] sm:$0xff]   ;;  %v1852_v11 = vld [vmem:[%s2361_s1 + $0x50] sm:$0xff]   ;;  %s183_s29 = scalar_lea.vmem %s2360_s0, %s1317_s24  ;;  %s2379_s12 = smov (!%p187_p7, %s1939_s12), 3 }
  0x11   : > { %1641 = vmatpush3.bf16.msra.mxu1 %v1843_v2  ;;  %1622 = vmatprep.subr.bf16.mxu0 %v1957_v1  ;;  %v1849_v8 = vld [vmem:[%s2361_s1 + $0x20] sm:$0xff]   ;;  %v1851_v10 = vld [vmem:[%s2361_s1 + $0x18] sm:$0xff]   ;;  %v1853_v12 = vld [vmem:[%s2361_s1 + $0x10] sm:$0xff]   ;;  %s2078_s4 = scalar_lea.vmem %s183_s29, %s1320_s30  ;;  %s1318_s8 = sshll.u32 %s2377_s13, 2 }
  0x12   : > { %1642 = vmatprep.subr.bf16.mxu1 %v1957_v1  ;;  %1656 = vmatprep.mubr.msk.bf16.mxu1 %vm1958_vm0, %v1957_v1  ;;  %v1854_v13 = vld [vmem:[%s2361_s1 + $0x48] sm:$0xff]   ;;  %v1856_v15 = vld [vmem:[%s2361_s1 + $0x40] sm:$0xff]   ;;  %v1322_v17 = vld [vmem:[%s2078_s4 + $0x14] sm:$0x3]  ;;  %s190_s9 = sadd.s32 %s1318_s8, %s2379_s12 }
  0x13   : > { %v1855_v14 = vld [vmem:[%s2361_s1 + $0x8] sm:$0xff]   ;;  %v1857_v16 = vld [vmem:[%s2361_s1] sm:$0xff]   ;;  %v1858_v19 = vld [vmem:[%s2361_s1 + $0xb8] sm:$0xff]   ;;  %s1319_s19 = sshll.u32 %s190_s9, 1 }
  0x14   : > { %1623 = vmatpush3.bf16.msra.mxu0 %v1844_v3  ;;  %v196_v18 = vld [vmem:[%s2078_s4] sm:$0x3]  ;;  %v1859_v20 = vld [vmem:[%s2361_s1 + $0xf8] sm:$0xff]   ;;  %v1860_v21 = vld [vmem:[%s2361_s1 + $0xb0] sm:$0xff]   ;;  %s192_s22 = scalar_lea.vmem %s2363_s3, %s1319_s19 }
  0x15   : > { %1643 = vmatpush3.bf16.msra.mxu1 %v1845_v4  ;;  %1624 = vmatprep.subr.bf16.mxu0 %v1957_v1  ;;  %v1861_v22 = vld [vmem:[%s2361_s1 + $0xf0] sm:$0xff]   ;;  %v1862_v23 = vld [vmem:[%s2361_s1 + $0xa8] sm:$0xff]   ;;  %v1864_v25 = vld [vmem:[%s2361_s1 + $0xa0] sm:$0xff]  }
  0x16   : > { %1644 = vmatprep.subr.bf16.mxu1 %v1957_v1  ;;  %v1863_v24 = vld [vmem:[%s2361_s1 + $0xe8] sm:$0xff]   ;;  %v1865_v26 = vld [vmem:[%s2361_s1 + $0xe0] sm:$0xff]   ;;  %v1866_v27 = vld [vmem:[%s2361_s1 + $0x98] sm:$0xff]  }
  0x17   : > { %v1867_v28 = vld [vmem:[%s2361_s1 + $0xd8] sm:$0xff]   ;;  %v1874_v29 = vld [vmem:[%s2078_s4] ss:$0 sps:$4 sm:$0x77]   ;;  %v1868_v30 = vld [vmem:[%s2361_s1 + $0x90] sm:$0xff]  }
  0x18   : > { %1625 = vmatpush3.bf16.msra.mxu0 %v1846_v5  ;;  %v1869_v31 = vld [vmem:[%s2361_s1 + $0xd0] sm:$0xff]   ;;  %v1870_v32 = vld [vmem:[%s2361_s1 + $0x88] sm:$0xff]   ;;  %v434_v33 = vshll.u32 %v1874_v29, 16  ;;  %v432_v35 = vshrl.u32 %v1874_v29, 16  ;;  %v1872_v37 = vld [vmem:[%s2361_s1 + $0x80] sm:$0xff]  }
  0x19   : > { %1645 = vmatpush3.bf16.msra.mxu1 %v1847_v6  ;;  %1626 = vmatprep.subr.bf16.mxu0 %v1957_v1  ;;  %v1871_v34 = vld [vmem:[%s2361_s1 + $0xc8] sm:$0xff]   ;;  %v1873_v38 = vld [vmem:[%s2361_s1 + $0xc0] sm:$0xff]   ;;  %v1875_v40 = vld [vmem:[%s2361_s1 + $0x138] sm:$0xff]  }
  0x1a   : > { %1646 = vmatprep.subr.bf16.mxu1 %v1957_v1  ;;  %v436_v36 = vrot.slane %v434_v33, 1  ;;  %v1381_v41 = vld [vmem:[%s2078_s4 + $0x28] sm:$0x3]  ;;  %v1876_v42 = vld [vmem:[%s2361_s1 + $0x178] sm:$0xff]   ;;  %v1877_v43 = vld [vmem:[%s2361_s1 + $0x130] sm:$0xff]  }
  0x1b   : > { %v1878_v44 = vld [vmem:[%s2361_s1 + $0x170] sm:$0xff]   ;;  %v1879_v45 = vld [vmem:[%s2361_s1 + $0x128] sm:$0xff]   ;;  %v1881_v47 = vld [vmem:[%s2361_s1 + $0x120] sm:$0xff]  }
  0x1c   : > { %1627 = vmatpush3.bf16.msra.mxu0 %v1848_v7  ;;  %v437_v39 = vor.u32 %v436_v36, %v432_v35  ;;  %v1880_v46 = vld [vmem:[%s2361_s1 + $0x168] sm:$0xff]   ;;  %v1882_v48 = vld [vmem:[%s2361_s1 + $0x160] sm:$0xff]   ;;  %v1883_v49 = vld [vmem:[%s2361_s1 + $0x118] sm:$0xff]  }
  0x1d   : > { %1647 = vmatpush3.bf16.msra.mxu1 %v1849_v8  ;;  %1628 = vmatprep.subr.bf16.mxu0 %v1957_v1  ;;  %v1884_v50 = vld [vmem:[%s2361_s1 + $0x158] sm:$0xff]   ;;  %v1885_v51 = vld [vmem:[%s2361_s1 + $0x110] sm:$0xff]   ;;  %v1892_v52 = vld [vmem:[%s2078_s4 + $0x28] ss:$0 sps:$4 sm:$0x77]  }
  0x1e   : > { %1648 = vmatprep.subr.bf16.mxu1 %v1957_v1  ;;  %v1886_v53 = vld [vmem:[%s2361_s1 + $0x150] sm:$0xff]   ;;  %v1887_v54 = vld [vmem:[%s2361_s1 + $0x108] sm:$0xff]   ;;  %v772_v55 = vshll.u32 %v1892_v52, 16  ;;  %v1889_v57 = vld [vmem:[%s2361_s1 + $0x100] sm:$0xff]   ;;  %v770_v58 = vshrl.u32 %v1892_v52, 16 }
  0x1f   : > { %v1888_v56 = vld [vmem:[%s2361_s1 + $0x148] sm:$0xff]   ;;  %v1890_v60 = vld [vmem:[%s2361_s1 + $0x140] sm:$0xff]   ;;  %v1407_v61 = vld [vmem:[%s2078_s4 + $0x3c] sm:$0x3] }
  0x20   : > { %1629 = vmatpush3.bf16.msra.mxu0 %v1850_v9  ;;  %v774_v59 = vrot.slane %v772_v55, 1  ;;  %v1891_v62 = vld [vmem:[%s2361_s1 + $0x1b8] sm:$0xff]   ;;  %v1894_v2 = vld [vmem:[%s2361_s1 + $0x1b0] sm:$0xff]   ;;  %v1896_v4 = vld [vmem:[%s2361_s1 + $0x1a8] sm:$0xff]  }
  0x21   : > { %1649 = vmatpush3.bf16.msra.mxu1 %v1851_v10  ;;  %1630 = vmatprep.subr.bf16.mxu0 %v1957_v1  ;;  %v1893_v0 = vld [vmem:[%s2361_s1 + $0x1f8] sm:$0xff]   ;;  %v1895_v3 = vld [vmem:[%s2361_s1 + $0x1f0] sm:$0xff]   ;;  %v1897_v5 = vld [vmem:[%s2361_s1 + $0x1e8] sm:$0xff]  }
  0x22   : > { %1650 = vmatprep.subr.bf16.mxu1 %v1957_v1  ;;  %v775_v63 = vor.u32 %v774_v59, %v770_v58  ;;  %v1898_v6 = vld [vmem:[%s2361_s1 + $0x1a0] sm:$0xff]   ;;  %v1900_v8 = vld [vmem:[%s2361_s1 + $0x198] sm:$0xff]   ;;  %v1902_v10 = vld [vmem:[%s2361_s1 + $0x190] sm:$0xff]  }
  0x23   : > { %v1899_v7 = vld [vmem:[%s2361_s1 + $0x1e0] sm:$0xff]   ;;  %v1901_v9 = vld [vmem:[%s2361_s1 + $0x1d8] sm:$0xff]  }
  0x24   : > { %1631 = vmatpush3.bf16.msra.mxu0 %v1852_v11  ;;  %v1903_v11 = vld [vmem:[%s2361_s1 + $0x1d0] sm:$0xff]   ;;  %v1915_v29 = vld [vmem:[%s2361_s1 + $0x200] sm:$0xff]  }
  0x25   : > { %1651 = vmatpush3.bf16.msra.mxu1 %v1853_v12  ;;  %1632 = vmatprep.subr.bf16.mxu0 %v1957_v1  ;;  %v1904_v12 = vld [vmem:[%s2361_s1 + $0x188] sm:$0xff]  }
  0x26   : > { %1652 = vmatprep.subr.bf16.mxu1 %v1957_v1 }
  0x28   : > { %1633 = vmatpush3.bf16.msra.mxu0 %v1854_v13  ;;  %v1905_v13 = vld [vmem:[%s2361_s1 + $0x1c8] sm:$0xff]  }
  0x29   : > { %1653 = vmatpush3.bf16.msra.mxu1 %v1855_v14  ;;  %1634 = vmatprep.subr.bf16.mxu0 %v1957_v1  ;;  %v1906_v14 = vld [vmem:[%s2361_s1 + $0x180] sm:$0xff]  }
  0x2a   : > { %1654 = vmatprep.subr.bf16.mxu1 %v1957_v1 }
  0x2c   : > { %1635 = vmatpush3.bf16.msra.mxu0 %v1856_v15  ;;  %v1907_v15 = vld [vmem:[%s2361_s1 + $0x1c0] sm:$0xff]  }
  0x2d   : > { %1655 = vmatpush3.bf16.msra.mxu1 %v1857_v16  ;;  %1660 = vmatprep.subr.bf16.mxu0 %v1957_v1  ;;  %v1459_v16 = vld [vmem:[%s2078_s4 + $0x4] sm:$0x3] }
  0x2e   : > { %1680 = vmatprep.subr.bf16.mxu1 %v1957_v1 }
  0x2f   : > { %1637 = vmatmul.mubr.bf16.vlgmr.msra.gmra.mxu0 %v1322_v17  ;;  %v1908_v17 = vld [vmem:[%s2361_s1 + $0x238] sm:$0xff]  }
  0x30   : > { %1657 = vmatmul.mubr.bf16.vlgmr.msra.gmra.mxu1 %v196_v18  ;;  %1661 = vmatpush3.bf16.msra.mxu0 %v1858_v19  ;;  %v1485_v18 = vld [vmem:[%s2078_s4 + $0x18] sm:$0x3]  ;;  %v1909_v19 = vld [vmem:[%s2361_s1 + $0x230] sm:$0xff]  }
  0x31   : > { %1681 = vmatpush3.bf16.msra.mxu1 %v1859_v20  ;;  %1662 = vmatprep.subr.bf16.mxu0 %v1957_v1  ;;  %v1910_v20 = vld [vmem:[%s2361_s1 + $0x228] sm:$0xff]  }
  0x32   : > { %1682 = vmatprep.subr.bf16.mxu1 %v1957_v1  ;;  %1676 = vmatprep.mubr.msk.bf16.mxu0 %vm1958_vm0, %v1957_v1 }
  0x33   : > { %1696 = vmatprep.mubr.msk.bf16.mxu1 %vm1958_vm0, %v1957_v1 }
  0x34   : > { %1663 = vmatpush3.bf16.msra.mxu0 %v1860_v21  ;;  %v1911_v21 = vld [vmem:[%s2361_s1 + $0x220] sm:$0xff]  }
  0x35   : > { %1683 = vmatpush3.bf16.msra.mxu1 %v1861_v22  ;;  %1664 = vmatprep.subr.bf16.mxu0 %v1957_v1  ;;  %v1912_v22 = vld [vmem:[%s2361_s1 + $0x218] sm:$0xff]  }
  0x36   : > { %1684 = vmatprep.subr.bf16.mxu1 %v1957_v1 }
  0x38   : > { %1665 = vmatpush3.bf16.msra.mxu0 %v1862_v23  ;;  %v1916_v23 = vld [vmem:[%s2078_s4 + $0x4] ss:$0 sps:$4 sm:$0x77]  }
  0x39   : > { %1685 = vmatpush3.bf16.msra.mxu1 %v1863_v24  ;;  %1666 = vmatprep.subr.bf16.mxu0 %v1957_v1  ;;  %v1913_v24 = vld [vmem:[%s2361_s1 + $0x210] sm:$0xff]  }
  0x3a   : > { %1686 = vmatprep.subr.bf16.mxu1 %v1957_v1 }
  0x3c   : > { %1667 = vmatpush3.bf16.msra.mxu0 %v1864_v25  ;;  %v1110_v25 = vshll.u32 %v1916_v23, 16 }
  0x3d   : > { %1687 = vmatpush3.bf16.msra.mxu1 %v1865_v26  ;;  %1668 = vmatprep.subr.bf16.mxu0 %v1957_v1  ;;  %v1914_v26 = vld [vmem:[%s2361_s1 + $0x208] sm:$0xff]  }
  0x3e   : > { %1688 = vmatprep.subr.bf16.mxu1 %v1957_v1 }
  0x40   : > { %1669 = vmatpush3.bf16.msra.mxu0 %v1866_v27  ;;  %v1108_v27 = vshrl.u32 %v1916_v23, 16 }
  0x41   : > { %1689 = vmatpush3.bf16.msra.mxu1 %v1867_v28  ;;  %1670 = vmatprep.subr.bf16.mxu0 %v1957_v1  ;;  %v1112_v28 = vrot.slane %v1110_v25, 1 }
  0x42   : > { %1690 = vmatprep.subr.bf16.mxu1 %v1957_v1 }
  0x44   : > { %1671 = vmatpush3.bf16.msra.mxu0 %v1868_v30  ;;  %v1113_v30 = vor.u32 %v1112_v28, %v1108_v27 }
  0x45   : > { %1691 = vmatpush3.bf16.msra.mxu1 %v1869_v31  ;;  %1672 = vmatprep.subr.bf16.mxu0 %v1957_v1 }
  0x46   : > { %1692 = vmatprep.subr.bf16.mxu1 %v1957_v1 }
  0x48   : > { %1673 = vmatpush3.bf16.msra.mxu0 %v1870_v32 }
  0x49   : > { %1693 = vmatpush3.bf16.msra.mxu1 %v1871_v34  ;;  %1674 = vmatprep.subr.bf16.mxu0 %v1957_v1 }
  0x4a   : > { %1694 = vmatprep.subr.bf16.mxu1 %v1957_v1 }
  0x4c   : > { %1675 = vmatpush3.bf16.msra.mxu0 %v1872_v37 }
  0x4d   : > { %1695 = vmatpush3.bf16.msra.mxu1 %v1873_v38  ;;  %1700 = vmatprep.subr.bf16.mxu0 %v1957_v1 }
  0x4e   : > { %1720 = vmatprep.subr.bf16.mxu1 %v1957_v1 }
  0x4f   : > { %1677 = vmatmul.mubr.bf16.vlgmr.msra.gmra.mxu0 %v437_v39 }
  0x50   : > { %1701 = vmatpush3.bf16.msra.mxu0 %v1875_v40  ;;  %1697 = vmatmul.mubr.bf16.vlgmr.msra.gmra.mxu1 %v1381_v41 }
  0x51   : > { %1721 = vmatpush3.bf16.msra.mxu1 %v1876_v42  ;;  %1702 = vmatprep.subr.bf16.mxu0 %v1957_v1 }
  0x52   : > { %1722 = vmatprep.subr.bf16.mxu1 %v1957_v1  ;;  %1716 = vmatprep.mubr.msk.bf16.mxu0 %vm1958_vm0, %v1957_v1 }
  0x53   : > { %1736 = vmatprep.mubr.msk.bf16.mxu1 %vm1958_vm0, %v1957_v1 }
  0x54   : > { %1703 = vmatpush3.bf16.msra.mxu0 %v1877_v43 }
  0x55   : > { %1723 = vmatpush3.bf16.msra.mxu1 %v1878_v44  ;;  %1704 = vmatprep.subr.bf16.mxu0 %v1957_v1 }
  0x56   : > { %1724 = vmatprep.subr.bf16.mxu1 %v1957_v1 }
  0x58   : > { %1705 = vmatpush3.bf16.msra.mxu0 %v1879_v45 }
  0x59   : > { %1725 = vmatpush3.bf16.msra.mxu1 %v1880_v46  ;;  %1706 = vmatprep.subr.bf16.mxu0 %v1957_v1 }
  0x5a   : > { %1726 = vmatprep.subr.bf16.mxu1 %v1957_v1 }
  0x5c   : > { %1707 = vmatpush3.bf16.msra.mxu0 %v1881_v47 }
  0x5d   : > { %1727 = vmatpush3.bf16.msra.mxu1 %v1882_v48  ;;  %1708 = vmatprep.subr.bf16.mxu0 %v1957_v1 }
  0x5e   : > { %1728 = vmatprep.subr.bf16.mxu1 %v1957_v1 }
  0x60   : > { %1709 = vmatpush3.bf16.msra.mxu0 %v1883_v49 }
  0x61   : > { %1729 = vmatpush3.bf16.msra.mxu1 %v1884_v50  ;;  %1710 = vmatprep.subr.bf16.mxu0 %v1957_v1 }
  0x62   : > { %1730 = vmatprep.subr.bf16.mxu1 %v1957_v1 }
  0x64   : > { %1711 = vmatpush3.bf16.msra.mxu0 %v1885_v51 }
  0x65   : > { %1731 = vmatpush3.bf16.msra.mxu1 %v1886_v53  ;;  %1712 = vmatprep.subr.bf16.mxu0 %v1957_v1 }
  0x66   : > { %1732 = vmatprep.subr.bf16.mxu1 %v1957_v1 }
  0x68   : > { %1713 = vmatpush3.bf16.msra.mxu0 %v1887_v54 }
  0x69   : > { %1733 = vmatpush3.bf16.msra.mxu1 %v1888_v56  ;;  %1714 = vmatprep.subr.bf16.mxu0 %v1957_v1 }
  0x6a   : > { %1734 = vmatprep.subr.bf16.mxu1 %v1957_v1 }
  0x6c   : > { %1715 = vmatpush3.bf16.msra.mxu0 %v1889_v57 }
  0x6d   : > { %1735 = vmatpush3.bf16.msra.mxu1 %v1890_v60  ;;  %1740 = vmatprep.subr.bf16.mxu0 %v1957_v1 }
  0x6e   : > { %1760 = vmatprep.subr.bf16.mxu1 %v1957_v1 }
  0x6f   : > { %1717 = vmatmul.mubr.bf16.vlgmr.msra.gmra.mxu0 %v1407_v61 }
  0x70   : > { %1741 = vmatpush3.bf16.msra.mxu0 %v1891_v62  ;;  %1737 = vmatmul.mubr.bf16.vlgmr.msra.gmra.mxu1 %v775_v63 }
  0x71   : > { %1761 = vmatpush3.bf16.msra.mxu1 %v1893_v0  ;;  %1742 = vmatprep.subr.bf16.mxu0 %v1957_v1 }
  0x72   : > { %1762 = vmatprep.subr.bf16.mxu1 %v1957_v1  ;;  %1756 = vmatprep.mubr.msk.bf16.mxu0 %vm1958_vm0, %v1957_v1 }
  0x73   : > { %1776 = vmatprep.mubr.msk.bf16.mxu1 %vm1958_vm0, %v1957_v1 }
  0x74   : > { %1743 = vmatpush3.bf16.msra.mxu0 %v1894_v2 }
  0x75   : > { %1763 = vmatpush3.bf16.msra.mxu1 %v1895_v3  ;;  %1744 = vmatprep.subr.bf16.mxu0 %v1957_v1 }
  0x76   : > { %1764 = vmatprep.subr.bf16.mxu1 %v1957_v1 }
  0x78   : > { %1745 = vmatpush3.bf16.msra.mxu0 %v1896_v4 }
  0x79   : > { %1765 = vmatpush3.bf16.msra.mxu1 %v1897_v5  ;;  %1746 = vmatprep.subr.bf16.mxu0 %v1957_v1 }
  0x7a   : > { %1766 = vmatprep.subr.bf16.mxu1 %v1957_v1 }
  0x7c   : > { %1747 = vmatpush3.bf16.msra.mxu0 %v1898_v6 }
  0x7d   : > { %1767 = vmatpush3.bf16.msra.mxu1 %v1899_v7  ;;  %1748 = vmatprep.subr.bf16.mxu0 %v1957_v1  ;;  %v1536_v7 = vld [vmem:[%s2362_s2] ss:$0 sm:$0xff] }
  0x7e   : > { %1768 = vmatprep.subr.bf16.mxu1 %v1957_v1 }
  0x80   : > { %1749 = vmatpush3.bf16.msra.mxu0 %v1900_v8 }
  0x81   : > { %1769 = vmatpush3.bf16.msra.mxu1 %v1901_v9  ;;  %1750 = vmatprep.subr.bf16.mxu0 %v1957_v1 }
  0x82   : > { %1770 = vmatprep.subr.bf16.mxu1 %v1957_v1 }
  0x84   : > { %1751 = vmatpush3.bf16.msra.mxu0 %v1902_v10 }
  0x85   : > { %1771 = vmatpush3.bf16.msra.mxu1 %v1903_v11  ;;  %1752 = vmatprep.subr.bf16.mxu0 %v1957_v1 }
  0x86   : > { %1772 = vmatprep.subr.bf16.mxu1 %v1957_v1 }
  0x88   : > { %1753 = vmatpush3.bf16.msra.mxu0 %v1904_v12 }
  0x89   : > { %1773 = vmatpush3.bf16.msra.mxu1 %v1905_v13  ;;  %1754 = vmatprep.subr.bf16.mxu0 %v1957_v1 }
  0x8a   : > { %1774 = vmatprep.subr.bf16.mxu1 %v1957_v1 }
  0x8c   : > { %1755 = vmatpush3.bf16.msra.mxu0 %v1906_v14 }
  0x8d   : > { %1775 = vmatpush3.bf16.msra.mxu1 %v1907_v15  ;;  %1780 = vmatprep.subr.bf16.mxu0 %v1957_v1 }
  0x8f   : > { %1757 = vmatmul.mubr.bf16.vlgmr.msra.gmra.mxu0 %v1459_v16 }
  0x90   : > { %1781 = vmatpush3.bf16.msra.mxu0 %v1908_v17  ;;  %1777 = vmatmul.mubr.bf16.vlgmr.msra.gmra.mxu1 %v1485_v18 }
  0x91   : > { %1782 = vmatprep.subr.bf16.mxu0 %v1957_v1  ;;  %1796 = vmatprep.mubr.msk.bf16.mxu0 %vm1958_vm0, %v1957_v1 }
  0x94   : > { %1783 = vmatpush3.bf16.msra.mxu0 %v1909_v19 }
  0x95   : > { %1784 = vmatprep.subr.bf16.mxu0 %v1957_v1 }
  0x98   : > { %1785 = vmatpush3.bf16.msra.mxu0 %v1910_v20 }
  0x99   : > { %1786 = vmatprep.subr.bf16.mxu0 %v1957_v1 }
  0x9c   : > { %1787 = vmatpush3.bf16.msra.mxu0 %v1911_v21 }
  0x9d   : > { %1788 = vmatprep.subr.bf16.mxu0 %v1957_v1 }
  0xa0   : > { %1789 = vmatpush3.bf16.msra.mxu0 %v1912_v22 }
  0xa1   : > { %1790 = vmatprep.subr.bf16.mxu0 %v1957_v1 }
  0xa4   : > { %1791 = vmatpush3.bf16.msra.mxu0 %v1913_v24 }
  0xa5   : > { %1792 = vmatprep.subr.bf16.mxu0 %v1957_v1 }
  0xa8   : > { %1793 = vmatpush3.bf16.msra.mxu0 %v1914_v26 }
  0xa9   : > { %1794 = vmatprep.subr.bf16.mxu0 %v1957_v1 }
  0xac   : > { %1795 = vmatpush3.bf16.msra.mxu0 %v1915_v29 }
  0xaf   : > { %1797 = vmatmul.mubr.bf16.vlgmr.msra.gmra.mxu0 %v1113_v30 }
  0xef   : > { %v316_v31 = vpop.f32.mrf.mxu0 }
  0xf0   : > { %v404_v32 = vpop.f32.mrf.mxu1 }
  0xf1   : > { %v405_v33 = vadd.f32 %v404_v32, %v316_v31  ;;  %v1638_v34 = vpop.f32.mrf.mxu0 }
  0xf2   : > { %v1658_v35 = vpop.f32.mrf.mxu1 }
  0xf3   : > { %v319_v36 = vpop.f32.mrf.mxu0 }
  0xf4   : > { %v407_v37 = vpop.f32.mrf.mxu1 }
  0xf5   : > { %v1639_v38 = vpop.f32.mrf.mxu0 }
  0xf6   : > { %v1659_v39 = vpop.f32.mrf.mxu1 }
 0x10f   : > { %v521_v40 = vpop.f32.mrf.mxu0 }
 0x110   : > { %v527_v41 = vadd.f32 %v521_v40, %v405_v33  ;;  %v631_v42 = vpop.f32.mrf.mxu1 }
 0x111   : > { %v1678_v43 = vpop.f32.mrf.mxu0 }
 0x112   : > { %v637_v44 = vadd.f32 %v631_v42, %v527_v41  ;;  %v1698_v45 = vpop.f32.mrf.mxu1 }
 0x113   : > { %v524_v46 = vpop.f32.mrf.mxu0 }
 0x114   : > { %v634_v1 = vpop.f32.mrf.mxu1 }
 0x115   : > { %v1679_v47 = vpop.f32.mrf.mxu0 }
 0x116   : > { %v1699_v48 = vpop.f32.mrf.mxu1 }
 0x12f   : > { %v741_v49 = vpop.f32.mrf.mxu0 }
 0x130   : > { %v859_v50 = vpop.f32.mrf.mxu1  ;;  %v747_v2 = vadd.f32 %v741_v49, %v637_v44 }
 0x131   : > { %v1718_v51 = vpop.f32.mrf.mxu0 }
 0x132   : > { %v1738_v52 = vpop.f32.mrf.mxu1  ;;  %v865_v3 = vadd.f32 %v859_v50, %v747_v2 }
 0x133   : > { %v744_v53 = vpop.f32.mrf.mxu0 }
 0x134   : > { %v862_v54 = vpop.f32.mrf.mxu1 }
 0x135   : > { %v1719_v55 = vpop.f32.mrf.mxu0 }
 0x136   : > { %v1739_v56 = vpop.f32.mrf.mxu1 }
 0x14f   : > { %v969_v57 = vpop.f32.mrf.mxu0 }
 0x150   : > { %v1079_v58 = vpop.f32.mrf.mxu1  ;;  %v975_v4 = vadd.f32 %v969_v57, %v865_v3 }
 0x151   : > { %v1758_v59 = vpop.f32.mrf.mxu0 }
 0x152   : > { %v1778_v60 = vpop.f32.mrf.mxu1  ;;  %v1085_v5 = vadd.f32 %v1079_v58, %v975_v4 }
 0x153   : > { %v972_v61 = vpop.f32.mrf.mxu0 }
 0x154   : > { %v1082_v62 = vpop.f32.mrf.mxu1 }
 0x155   : > { %v1759_v63 = vpop.f32.mrf.mxu0 }
 0x156   : > { %v1779_v0 = vpop.f32.mrf.mxu1 }
 0x16f   : > { %v1197_v6 = vpop.f32.mrf.mxu0 }
 0x170   : > { %v1203_v8 = vadd.f32 %v1197_v6, %v1085_v5 }
 0x171   : > { %v1798_v9 = vpop.f32.mrf.mxu0 }
 0x172   : > { %v1211_v10 = vadd.f32 %v1536_v7, %v1203_v8 }
 0x173   : > { %v1200_v11 = vpop.f32.mrf.mxu0 }
 0x174   : > { %v1212_v12 = vmax.f32 %v1211_v10, 0.0 }
 0x175   : > { %v1799_v13 = vpop.f32.mrf.mxu0 }
 0x176   : > { %v1213_v14 = vpack.c.bf16 %v1212_v12, %v1212_v12 }
 0x178   : > { %1214 = vst [vmem:[%s192_s22] sm:$0x3] %v1213_v14 }
 0x179 PF: > { %s13_s16 = sadd.s32 1, %s1955_s16   ;;  %s2364_s12 = smov %s1947_s14 }
 0x17a   : > { %p10_p8 = scmp.ge.s32.totalorder %s13_s16, 10   ;;  %s2365_s13 = smov %s1951_s15 }
 0x17b   : > { %s2366_s14 = smov %s2369_s17  ;;  %s2367_s15 = smov %s2373_s18 }
 0x17c   :  { %12 = sbr.rel (!%p10_p8) target bundleno = 3 (0x3), region = 76 }

// kernel: model_forward.13
= control target key start
LH: loop header
LB: loop body
LE: loop exit
PB: predicated region body
PF: predicated region fallthrough
CT: control target
= control target key end

     0   :  { %s1317_s1 = inlined_call_operand.vmem [shape: bf16[128,128], index: 1, kind: input, shape index: {}]   ;;  %s1318_s0 = inlined_call_operand.vmem [shape: bf16[512,128], index: 0, kind: input, shape index: {}]   ;;  %s1319_s2 = inlined_call_operand.vmem [shape: f32[1,128], index: 2, kind: input, shape index: {}]   ;;  %s1320_s3 = inlined_call_operand.vmem [shape: f32[512,128], index: 3, kind: output, shape index: {}]  }
   0x1   :  { %v876_v0 = vld [vmem:[%s1317_s1 + $0x38] sm:$0xff]   ;;  %v877_v1 = vld [vmem:[%s1317_s1 + $0x30] sm:$0xff]   ;;  %v878_v2 = vld [vmem:[%s1317_s1 + $0x28] sm:$0xff]  }
   0x2   :  { %780 = vmatprep.subr.bf16.mxu0 %v876_v0  ;;  %860 = vmatprep.subr.bf16.mxu1 %v876_v0  ;;  %v879_v3 = vld [vmem:[%s1317_s1 + $0x20] sm:$0xff]   ;;  %v880_v6 = vld [vmem:[%s1317_s1 + $0x18] sm:$0xff]   ;;  %v881_v7 = vld [vmem:[%s1317_s1 + $0x10] sm:$0xff]  }
   0x3   :  { %781 = vmatpush3.bf16.msra.mxu0 %v876_v0  ;;  %868 = vmatpush3.bf16.msra.mxu1 %v876_v0  ;;  %v884_v4 = vld [vmem:[%s1318_s0] sm:$0xff]   ;;  %v882_v8 = vld [vmem:[%s1317_s1 + $0x8] sm:$0xff]   ;;  %v888_v12 = vld [vmem:[%s1318_s0 + $0x10] sm:$0xff]  }
   0x4   :  { %782 = vmatprep.subr.bf16.mxu0 %v877_v1  ;;  %861 = vmatprep.subr.bf16.mxu1 %v877_v1  ;;  %v885_v5 = vld [vmem:[%s1318_s0 + $0x80] sm:$0xff]   ;;  %v886_v10 = vld [vmem:[%s1318_s0 + $0x8] sm:$0xff]   ;;  %v889_v13 = vld [vmem:[%s1318_s0 + $0x90] sm:$0xff]  }
   0x5   :  { %796 = vmatprep.mubr.bf16.mxu0 %v884_v4  ;;  %828 = vmatprep.mubr.bf16.mxu1 %v885_v5  ;;  %v883_v9 = vld [vmem:[%s1317_s1] sm:$0xff]   ;;  %v887_v11 = vld [vmem:[%s1318_s0 + $0x88] sm:$0xff]   ;;  %v890_v14 = vld [vmem:[%s1318_s0 + $0x18] sm:$0xff]  }
   0x6   :  { %v891_v15 = vld [vmem:[%s1318_s0 + $0x98] sm:$0xff]   ;;  %v892_v16 = vld [vmem:[%s1318_s0 + $0x20] sm:$0xff]   ;;  %v894_v18 = vld [vmem:[%s1318_s0 + $0x28] sm:$0xff]  }
   0x7   :  { %783 = vmatpush3.bf16.msra.mxu0 %v877_v1  ;;  %869 = vmatpush3.bf16.msra.mxu1 %v877_v1  ;;  %v893_v17 = vld [vmem:[%s1318_s0 + $0xa0] sm:$0xff]   ;;  %v895_v19 = vld [vmem:[%s1318_s0 + $0xa8] sm:$0xff]   ;;  %v896_v20 = vld [vmem:[%s1318_s0 + $0x30] sm:$0xff]  }
   0x8   :  { %784 = vmatprep.subr.bf16.mxu0 %v878_v2  ;;  %862 = vmatprep.subr.bf16.mxu1 %v878_v2  ;;  %v897_v21 = vld [vmem:[%s1318_s0 + $0xb0] sm:$0xff]   ;;  %v898_v22 = vld [vmem:[%s1318_s0 + $0x38] sm:$0xff]   ;;  %v900_v24 = vld [vmem:[%s1318_s0 + $0x40] sm:$0xff]  }
   0x9   :  { %v899_v23 = vld [vmem:[%s1318_s0 + $0xb8] sm:$0xff]   ;;  %v901_v25 = vld [vmem:[%s1318_s0 + $0xc0] sm:$0xff]   ;;  %v902_v26 = vld [vmem:[%s1318_s0 + $0x48] sm:$0xff]  }
   0xa   :  { %v903_v27 = vld [vmem:[%s1318_s0 + $0xc8] sm:$0xff]   ;;  %v904_v28 = vld [vmem:[%s1318_s0 + $0x50] sm:$0xff]   ;;  %v906_v30 = vld [vmem:[%s1318_s0 + $0x58] sm:$0xff]  }
   0xb   :  { %785 = vmatpush3.bf16.msra.mxu0 %v878_v2  ;;  %870 = vmatpush3.bf16.msra.mxu1 %v878_v2  ;;  %v905_v29 = vld [vmem:[%s1318_s0 + $0xd0] sm:$0xff]   ;;  %v907_v31 = vld [vmem:[%s1318_s0 + $0xd8] sm:$0xff]   ;;  %v908_v32 = vld [vmem:[%s1318_s0 + $0x60] sm:$0xff]  }
   0xc   :  { %786 = vmatprep.subr.bf16.mxu0 %v879_v3  ;;  %863 = vmatprep.subr.bf16.mxu1 %v879_v3  ;;  %v909_v33 = vld [vmem:[%s1318_s0 + $0xe0] sm:$0xff]   ;;  %v910_v34 = vld [vmem:[%s1318_s0 + $0x68] sm:$0xff]   ;;  %v912_v36 = vld [vmem:[%s1318_s0 + $0x70] sm:$0xff]  }
   0xd   :  { %v911_v35 = vld [vmem:[%s1318_s0 + $0xe8] sm:$0xff]   ;;  %v913_v37 = vld [vmem:[%s1318_s0 + $0xf0] sm:$0xff]   ;;  %v914_v38 = vld [vmem:[%s1318_s0 + $0x78] sm:$0xff]  }
   0xe   :  { %v915_v39 = vld [vmem:[%s1318_s0 + $0xf8] sm:$0xff]   ;;  %v1059_v40 = vld [vmem:[%s1319_s2] ss:$0 sm:$0xff] }
   0xf   :  { %787 = vmatpush3.bf16.msra.mxu0 %v879_v3  ;;  %871 = vmatpush3.bf16.msra.mxu1 %v879_v3 }
  0x10   :  { %788 = vmatprep.subr.bf16.mxu0 %v880_v6  ;;  %864 = vmatprep.subr.bf16.mxu1 %v880_v6 }
  0x13   :  { %789 = vmatpush3.bf16.msra.mxu0 %v880_v6  ;;  %872 = vmatpush3.bf16.msra.mxu1 %v880_v6 }
  0x14   :  { %790 = vmatprep.subr.bf16.mxu0 %v881_v7  ;;  %865 = vmatprep.subr.bf16.mxu1 %v881_v7 }
  0x17   :  { %791 = vmatpush3.bf16.msra.mxu0 %v881_v7  ;;  %873 = vmatpush3.bf16.msra.mxu1 %v881_v7 }
  0x18   :  { %792 = vmatprep.subr.bf16.mxu0 %v882_v8  ;;  %866 = vmatprep.subr.bf16.mxu1 %v882_v8 }
  0x1b   :  { %793 = vmatpush3.bf16.msra.mxu0 %v882_v8  ;;  %874 = vmatpush3.bf16.msra.mxu1 %v882_v8 }
  0x1c   :  { %794 = vmatprep.subr.bf16.mxu0 %v883_v9  ;;  %867 = vmatprep.subr.bf16.mxu1 %v883_v9 }
  0x1f   :  { %795 = vmatpush3.bf16.msra.mxu0 %v883_v9  ;;  %875 = vmatpush3.bf16.msra.mxu1 %v883_v9 }
  0x22   :  { %797 = vmatmul.mubr.bf16.vlgmr.msra.gmra.mxu0 %v886_v10  ;;  %829 = vmatmul.mubr.bf16.vlgmr.msra.gmra.mxu1 %v887_v11 }
  0x23   :  { %800 = vmatprep.mubr.bf16.mxu0 %v888_v12  ;;  %832 = vmatprep.mubr.bf16.mxu1 %v889_v13 }
  0x2a   :  { %801 = vmatmul.mubr.bf16.gmra.mxu0 %v890_v14  ;;  %833 = vmatmul.mubr.bf16.gmra.mxu1 %v891_v15 }
  0x2b   :  { %804 = vmatprep.mubr.bf16.mxu0 %v892_v16  ;;  %836 = vmatprep.mubr.bf16.mxu1 %v893_v17 }
  0x32   :  { %805 = vmatmul.mubr.bf16.gmra.mxu0 %v894_v18  ;;  %837 = vmatmul.mubr.bf16.gmra.mxu1 %v895_v19 }
  0x33   :  { %808 = vmatprep.mubr.bf16.mxu0 %v896_v20  ;;  %840 = vmatprep.mubr.bf16.mxu1 %v897_v21 }
  0x3a   :  { %809 = vmatmul.mubr.bf16.gmra.mxu0 %v898_v22  ;;  %841 = vmatmul.mubr.bf16.gmra.mxu1 %v899_v23 }
  0x3b   :  { %812 = vmatprep.mubr.bf16.mxu0 %v900_v24  ;;  %844 = vmatprep.mubr.bf16.mxu1 %v901_v25 }
  0x42   :  { %813 = vmatmul.mubr.bf16.gmra.mxu0 %v902_v26  ;;  %845 = vmatmul.mubr.bf16.gmra.mxu1 %v903_v27 }
  0x43   :  { %816 = vmatprep.mubr.bf16.mxu0 %v904_v28  ;;  %848 = vmatprep.mubr.bf16.mxu1 %v905_v29 }
  0x4a   :  { %817 = vmatmul.mubr.bf16.gmra.mxu0 %v906_v30  ;;  %849 = vmatmul.mubr.bf16.gmra.mxu1 %v907_v31 }
  0x4b   :  { %820 = vmatprep.mubr.bf16.mxu0 %v908_v32  ;;  %852 = vmatprep.mubr.bf16.mxu1 %v909_v33 }
  0x52   :  { %821 = vmatmul.mubr.bf16.gmra.mxu0 %v910_v34  ;;  %853 = vmatmul.mubr.bf16.gmra.mxu1 %v911_v35 }
  0x53   :  { %824 = vmatprep.mubr.bf16.mxu0 %v912_v36  ;;  %856 = vmatprep.mubr.bf16.mxu1 %v913_v37 }
  0x5a   :  { %825 = vmatmul.mubr.bf16.gmra.mxu0 %v914_v38  ;;  %857 = vmatmul.mubr.bf16.gmra.mxu1 %v915_v39 }
  0xe2   :  { %v798_v41 = vpop.f32.mrf.mxu0  ;;  %v830_v42 = vpop.f32.mrf.mxu1 }
  0xe3   :  { %v385_v43 = vadd.f32 %v798_v41, %v1059_v40  ;;  %v513_v44 = vadd.f32 %v830_v42, %v1059_v40 }
  0xe4   :  { %v376_v45 = vpop.f32.mrf.mxu0  ;;  %v504_v46 = vpop.f32.mrf.mxu1 }
  0xe5   :  { %633 = vst [vmem:[%s1320_s3 + $0x10] sm:$0xff] %v385_v43  ;;  %665 = vst [vmem:[%s1320_s3 + $0x110] sm:$0xff] %v513_v44  ;;  %v377_v47 = vadd.f32 %v1059_v40, %v376_v45  ;;  %v505_v48 = vadd.f32 %v1059_v40, %v504_v46 }
  0xe6   :  { %v799_v49 = vpop.f32.mrf.mxu0  ;;  %v831_v50 = vpop.f32.mrf.mxu1 }
  0xe7   :  { %631 = vst [vmem:[%s1320_s3] sm:$0xff] %v377_v47  ;;  %663 = vst [vmem:[%s1320_s3 + $0x100] sm:$0xff] %v505_v48  ;;  %v388_v51 = vadd.f32 %v799_v49, %v1059_v40  ;;  %v516_v52 = vadd.f32 %v831_v50, %v1059_v40 }
  0xe8   :  { %v379_v53 = vpop.f32.mrf.mxu0  ;;  %v507_v54 = vpop.f32.mrf.mxu1 }
  0xe9   :  { %634 = vst [vmem:[%s1320_s3 + $0x18] sm:$0xff] %v388_v51  ;;  %666 = vst [vmem:[%s1320_s3 + $0x118] sm:$0xff] %v516_v52  ;;  %v380_v55 = vadd.f32 %v1059_v40, %v379_v53  ;;  %v508_v56 = vadd.f32 %v1059_v40, %v507_v54 }
  0xea   :  { %v802_v57 = vpop.f32.mrf.mxu0  ;;  %v834_v58 = vpop.f32.mrf.mxu1 }
  0xeb   :  { %632 = vst [vmem:[%s1320_s3 + $0x8] sm:$0xff] %v380_v55  ;;  %664 = vst [vmem:[%s1320_s3 + $0x108] sm:$0xff] %v508_v56  ;;  %v401_v59 = vadd.f32 %v802_v57, %v1059_v40  ;;  %v529_v60 = vadd.f32 %v834_v58, %v1059_v40 }
  0xec   :  { %v392_v61 = vpop.f32.mrf.mxu0  ;;  %v520_v62 = vpop.f32.mrf.mxu1 }
  0xed   :  { %637 = vst [vmem:[%s1320_s3 + $0x30] sm:$0xff] %v401_v59  ;;  %669 = vst [vmem:[%s1320_s3 + $0x130] sm:$0xff] %v529_v60  ;;  %v393_v63 = vadd.f32 %v1059_v40, %v392_v61  ;;  %v521_v0 = vadd.f32 %v1059_v40, %v520_v62 }
  0xee   :  { %v803_v1 = vpop.f32.mrf.mxu0  ;;  %v835_v2 = vpop.f32.mrf.mxu1 }
  0xef   :  { %635 = vst [vmem:[%s1320_s3 + $0x20] sm:$0xff] %v393_v63  ;;  %667 = vst [vmem:[%s1320_s3 + $0x120] sm:$0xff] %v521_v0  ;;  %v404_v3 = vadd.f32 %v803_v1, %v1059_v40  ;;  %v532_v4 = vadd.f32 %v835_v2, %v1059_v40 }
  0xf0   :  { %v395_v5 = vpop.f32.mrf.mxu0  ;;  %v523_v6 = vpop.f32.mrf.mxu1 }
  0xf1   :  { %638 = vst [vmem:[%s1320_s3 + $0x38] sm:$0xff] %v404_v3  ;;  %670 = vst [vmem:[%s1320_s3 + $0x138] sm:$0xff] %v532_v4  ;;  %v396_v7 = vadd.f32 %v1059_v40, %v395_v5  ;;  %v524_v8 = vadd.f32 %v1059_v40, %v523_v6 }
  0xf2   :  { %v806_v9 = vpop.f32.mrf.mxu0  ;;  %v838_v10 = vpop.f32.mrf.mxu1 }
  0xf3   :  { %636 = vst [vmem:[%s1320_s3 + $0x28] sm:$0xff] %v396_v7  ;;  %668 = vst [vmem:[%s1320_s3 + $0x128] sm:$0xff] %v524_v8  ;;  %v417_v11 = vadd.f32 %v806_v9, %v1059_v40  ;;  %v545_v12 = vadd.f32 %v838_v10, %v1059_v40 }
  0xf4   :  { %v408_v13 = vpop.f32.mrf.mxu0  ;;  %v536_v14 = vpop.f32.mrf.mxu1 }
  0xf5   :  { %641 = vst [vmem:[%s1320_s3 + $0x50] sm:$0xff] %v417_v11  ;;  %673 = vst [vmem:[%s1320_s3 + $0x150] sm:$0xff] %v545_v12  ;;  %v409_v15 = vadd.f32 %v1059_v40, %v408_v13  ;;  %v537_v16 = vadd.f32 %v1059_v40, %v536_v14 }
  0xf6   :  { %v807_v17 = vpop.f32.mrf.mxu0  ;;  %v839_v18 = vpop.f32.mrf.mxu1 }
  0xf7   :  { %639 = vst [vmem:[%s1320_s3 + $0x40] sm:$0xff] %v409_v15  ;;  %671 = vst [vmem:[%s1320_s3 + $0x140] sm:$0xff] %v537_v16  ;;  %v420_v19 = vadd.f32 %v807_v17, %v1059_v40  ;;  %v548_v20 = vadd.f32 %v839_v18, %v1059_v40 }
  0xf8   :  { %v411_v21 = vpop.f32.mrf.mxu0  ;;  %v539_v22 = vpop.f32.mrf.mxu1 }
  0xf9   :  { %642 = vst [vmem:[%s1320_s3 + $0x58] sm:$0xff] %v420_v19  ;;  %674 = vst [vmem:[%s1320_s3 + $0x158] sm:$0xff] %v548_v20  ;;  %v412_v23 = vadd.f32 %v1059_v40, %v411_v21  ;;  %v540_v24 = vadd.f32 %v1059_v40, %v539_v22 }
  0xfa   :  { %v810_v25 = vpop.f32.mrf.mxu0  ;;  %v842_v26 = vpop.f32.mrf.mxu1 }
  0xfb   :  { %640 = vst [vmem:[%s1320_s3 + $0x48] sm:$0xff] %v412_v23  ;;  %672 = vst [vmem:[%s1320_s3 + $0x148] sm:$0xff] %v540_v24  ;;  %v433_v27 = vadd.f32 %v810_v25, %v1059_v40  ;;  %v561_v28 = vadd.f32 %v842_v26, %v1059_v40 }
  0xfc   :  { %v424_v29 = vpop.f32.mrf.mxu0  ;;  %v552_v30 = vpop.f32.mrf.mxu1 }
  0xfd   :  { %645 = vst [vmem:[%s1320_s3 + $0x70] sm:$0xff] %v433_v27  ;;  %677 = vst [vmem:[%s1320_s3 + $0x170] sm:$0xff] %v561_v28  ;;  %v425_v31 = vadd.f32 %v1059_v40, %v424_v29  ;;  %v553_v32 = vadd.f32 %v1059_v40, %v552_v30 }
  0xfe   :  { %v811_v33 = vpop.f32.mrf.mxu0  ;;  %v843_v34 = vpop.f32.mrf.mxu1 }
  0xff   :  { %643 = vst [vmem:[%s1320_s3 + $0x60] sm:$0xff] %v425_v31  ;;  %675 = vst [vmem:[%s1320_s3 + $0x160] sm:$0xff] %v553_v32  ;;  %v436_v35 = vadd.f32 %v811_v33, %v1059_v40  ;;  %v564_v36 = vadd.f32 %v843_v34, %v1059_v40 }
 0x100   :  { %v427_v37 = vpop.f32.mrf.mxu0  ;;  %v555_v38 = vpop.f32.mrf.mxu1 }
 0x101   :  { %646 = vst [vmem:[%s1320_s3 + $0x78] sm:$0xff] %v436_v35  ;;  %678 = vst [vmem:[%s1320_s3 + $0x178] sm:$0xff] %v564_v36  ;;  %v428_v39 = vadd.f32 %v1059_v40, %v427_v37  ;;  %v556_v41 = vadd.f32 %v1059_v40, %v555_v38 }
 0x102   :  { %v814_v42 = vpop.f32.mrf.mxu0  ;;  %v846_v43 = vpop.f32.mrf.mxu1 }
 0x103   :  { %644 = vst [vmem:[%s1320_s3 + $0x68] sm:$0xff] %v428_v39  ;;  %676 = vst [vmem:[%s1320_s3 + $0x168] sm:$0xff] %v556_v41  ;;  %v449_v44 = vadd.f32 %v814_v42, %v1059_v40  ;;  %v577_v45 = vadd.f32 %v846_v43, %v1059_v40 }
 0x104   :  { %v440_v46 = vpop.f32.mrf.mxu0  ;;  %v568_v47 = vpop.f32.mrf.mxu1 }
 0x105   :  { %649 = vst [vmem:[%s1320_s3 + $0x90] sm:$0xff] %v449_v44  ;;  %681 = vst [vmem:[%s1320_s3 + $0x190] sm:$0xff] %v577_v45  ;;  %v441_v48 = vadd.f32 %v1059_v40, %v440_v46  ;;  %v569_v49 = vadd.f32 %v1059_v40, %v568_v47 }
 0x106   :  { %v815_v50 = vpop.f32.mrf.mxu0  ;;  %v847_v51 = vpop.f32.mrf.mxu1 }
 0x107   :  { %647 = vst [vmem:[%s1320_s3 + $0x80] sm:$0xff] %v441_v48  ;;  %679 = vst [vmem:[%s1320_s3 + $0x180] sm:$0xff] %v569_v49  ;;  %v452_v52 = vadd.f32 %v815_v50, %v1059_v40  ;;  %v580_v53 = vadd.f32 %v847_v51, %v1059_v40 }
 0x108   :  { %v443_v54 = vpop.f32.mrf.mxu0  ;;  %v571_v55 = vpop.f32.mrf.mxu1 }
 0x109   :  { %650 = vst [vmem:[%s1320_s3 + $0x98] sm:$0xff] %v452_v52  ;;  %682 = vst [vmem:[%s1320_s3 + $0x198] sm:$0xff] %v580_v53  ;;  %v444_v56 = vadd.f32 %v1059_v40, %v443_v54  ;;  %v572_v57 = vadd.f32 %v1059_v40, %v571_v55 }
 0x10a   :  { %v818_v58 = vpop.f32.mrf.mxu0  ;;  %v850_v59 = vpop.f32.mrf.mxu1 }
 0x10b   :  { %648 = vst [vmem:[%s1320_s3 + $0x88] sm:$0xff] %v444_v56  ;;  %680 = vst [vmem:[%s1320_s3 + $0x188] sm:$0xff] %v572_v57  ;;  %v465_v60 = vadd.f32 %v818_v58, %v1059_v40  ;;  %v593_v61 = vadd.f32 %v850_v59, %v1059_v40 }
 0x10c   :  { %v456_v62 = vpop.f32.mrf.mxu0  ;;  %v584_v63 = vpop.f32.mrf.mxu1 }
 0x10d   :  { %653 = vst [vmem:[%s1320_s3 + $0xb0] sm:$0xff] %v465_v60  ;;  %685 = vst [vmem:[%s1320_s3 + $0x1b0] sm:$0xff] %v593_v61  ;;  %v457_v0 = vadd.f32 %v1059_v40, %v456_v62  ;;  %v585_v1 = vadd.f32 %v1059_v40, %v584_v63 }
 0x10e   :  { %v819_v2 = vpop.f32.mrf.mxu0  ;;  %v851_v3 = vpop.f32.mrf.mxu1 }
 0x10f   :  { %651 = vst [vmem:[%s1320_s3 + $0xa0] sm:$0xff] %v457_v0  ;;  %683 = vst [vmem:[%s1320_s3 + $0x1a0] sm:$0xff] %v585_v1  ;;  %v468_v4 = vadd.f32 %v819_v2, %v1059_v40  ;;  %v596_v5 = vadd.f32 %v851_v3, %v1059_v40 }
 0x110   :  { %v459_v6 = vpop.f32.mrf.mxu0  ;;  %v587_v7 = vpop.f32.mrf.mxu1 }
 0x111   :  { %654 = vst [vmem:[%s1320_s3 + $0xb8] sm:$0xff] %v468_v4  ;;  %686 = vst [vmem:[%s1320_s3 + $0x1b8] sm:$0xff] %v596_v5  ;;  %v460_v8 = vadd.f32 %v1059_v40, %v459_v6  ;;  %v588_v9 = vadd.f32 %v1059_v40, %v587_v7 }
 0x112   :  { %v822_v10 = vpop.f32.mrf.mxu0  ;;  %v854_v11 = vpop.f32.mrf.mxu1 }
 0x113   :  { %652 = vst [vmem:[%s1320_s3 + $0xa8] sm:$0xff] %v460_v8  ;;  %684 = vst [vmem:[%s1320_s3 + $0x1a8] sm:$0xff] %v588_v9  ;;  %v481_v12 = vadd.f32 %v822_v10, %v1059_v40  ;;  %v609_v13 = vadd.f32 %v854_v11, %v1059_v40 }
 0x114   :  { %v472_v14 = vpop.f32.mrf.mxu0  ;;  %v600_v15 = vpop.f32.mrf.mxu1 }
 0x115   :  { %657 = vst [vmem:[%s1320_s3 + $0xd0] sm:$0xff] %v481_v12  ;;  %689 = vst [vmem:[%s1320_s3 + $0x1d0] sm:$0xff] %v609_v13  ;;  %v473_v16 = vadd.f32 %v1059_v40, %v472_v14  ;;  %v601_v17 = vadd.f32 %v1059_v40, %v600_v15 }
 0x116   :  { %v823_v18 = vpop.f32.mrf.mxu0  ;;  %v855_v19 = vpop.f32.mrf.mxu1 }
 0x117   :  { %655 = vst [vmem:[%s1320_s3 + $0xc0] sm:$0xff] %v473_v16  ;;  %687 = vst [vmem:[%s1320_s3 + $0x1c0] sm:$0xff] %v601_v17  ;;  %v484_v20 = vadd.f32 %v823_v18, %v1059_v40  ;;  %v612_v21 = vadd.f32 %v855_v19, %v1059_v40 }
 0x118   :  { %v475_v22 = vpop.f32.mrf.mxu0  ;;  %v603_v23 = vpop.f32.mrf.mxu1 }
 0x119   :  { %658 = vst [vmem:[%s1320_s3 + $0xd8] sm:$0xff] %v484_v20  ;;  %690 = vst [vmem:[%s1320_s3 + $0x1d8] sm:$0xff] %v612_v21  ;;  %v476_v24 = vadd.f32 %v1059_v40, %v475_v22  ;;  %v604_v25 = vadd.f32 %v1059_v40, %v603_v23 }
 0x11a   :  { %v826_v26 = vpop.f32.mrf.mxu0  ;;  %v858_v27 = vpop.f32.mrf.mxu1 }
 0x11b   :  { %656 = vst [vmem:[%s1320_s3 + $0xc8] sm:$0xff] %v476_v24  ;;  %688 = vst [vmem:[%s1320_s3 + $0x1c8] sm:$0xff] %v604_v25  ;;  %v497_v28 = vadd.f32 %v826_v26, %v1059_v40  ;;  %v625_v29 = vadd.f32 %v858_v27, %v1059_v40 }
 0x11c   :  { %v488_v30 = vpop.f32.mrf.mxu0  ;;  %v616_v31 = vpop.f32.mrf.mxu1 }
 0x11d   :  { %661 = vst [vmem:[%s1320_s3 + $0xf0] sm:$0xff] %v497_v28  ;;  %693 = vst [vmem:[%s1320_s3 + $0x1f0] sm:$0xff] %v625_v29  ;;  %v489_v32 = vadd.f32 %v1059_v40, %v488_v30  ;;  %v617_v33 = vadd.f32 %v1059_v40, %v616_v31 }
 0x11e   :  { %v827_v34 = vpop.f32.mrf.mxu0  ;;  %v859_v35 = vpop.f32.mrf.mxu1 }
 0x11f   :  { %659 = vst [vmem:[%s1320_s3 + $0xe0] sm:$0xff] %v489_v32  ;;  %691 = vst [vmem:[%s1320_s3 + $0x1e0] sm:$0xff] %v617_v33  ;;  %v500_v36 = vadd.f32 %v827_v34, %v1059_v40  ;;  %v628_v37 = vadd.f32 %v859_v35, %v1059_v40 }
 0x120   :  { %v491_v38 = vpop.f32.mrf.mxu0  ;;  %v619_v39 = vpop.f32.mrf.mxu1 }
 0x121   :  { %662 = vst [vmem:[%s1320_s3 + $0xf8] sm:$0xff] %v500_v36  ;;  %694 = vst [vmem:[%s1320_s3 + $0x1f8] sm:$0xff] %v628_v37  ;;  %v492_v41 = vadd.f32 %v1059_v40, %v491_v38  ;;  %v620_v42 = vadd.f32 %v1059_v40, %v619_v39 }
 0x123   :  { %660 = vst [vmem:[%s1320_s3 + $0xe8] sm:$0xff] %v492_v41  ;;  %692 = vst [vmem:[%s1320_s3 + $0x1e8] sm:$0xff] %v620_v42 }

// kernel: model_forward.12
= control target key start
LH: loop header
LB: loop body
LE: loop exit
PB: predicated region body
PF: predicated region fallthrough
CT: control target
= control target key end

     0   :  { %s2251_s1 = inlined_call_operand.vmem [shape: bf16[128,128], index: 1, kind: input, shape index: {}]   ;;  %s2252_s0 = inlined_call_operand.vmem [shape: bf16[512,128], index: 0, kind: input, shape index: {}]   ;;  %s2253_s2 = inlined_call_operand.vmem [shape: f32[1,128], index: 2, kind: input, shape index: {}]   ;;  %s2254_s3 = inlined_call_operand.vmem [shape: bf16[512,128], index: 3, kind: input, shape index: {}]   ;;  %s2255_s4 = inlined_call_operand.vmem [shape: bf16[512,128], index: 4, kind: output, shape index: {}]  }
   0x1   :  { %v1805_v0 = vld [vmem:[%s2251_s1 + $0x38] sm:$0xff]   ;;  %v1806_v1 = vld [vmem:[%s2251_s1 + $0x30] sm:$0xff]   ;;  %v1807_v2 = vld [vmem:[%s2251_s1 + $0x28] sm:$0xff]  }
   0x2   :  { %1709 = vmatprep.subr.bf16.mxu0 %v1805_v0  ;;  %1789 = vmatprep.subr.bf16.mxu1 %v1805_v0  ;;  %v1808_v3 = vld [vmem:[%s2251_s1 + $0x20] sm:$0xff]   ;;  %v1809_v6 = vld [vmem:[%s2251_s1 + $0x18] sm:$0xff]   ;;  %v1810_v7 = vld [vmem:[%s2251_s1 + $0x10] sm:$0xff]  }
   0x3   :  { %1710 = vmatpush3.bf16.msra.mxu0 %v1805_v0  ;;  %1797 = vmatpush3.bf16.msra.mxu1 %v1805_v0  ;;  %v1813_v4 = vld [vmem:[%s2252_s0] sm:$0xff]   ;;  %v1811_v8 = vld [vmem:[%s2251_s1 + $0x8] sm:$0xff]   ;;  %v1817_v12 = vld [vmem:[%s2252_s0 + $0x10] sm:$0xff]  }
   0x4   :  { %1711 = vmatprep.subr.bf16.mxu0 %v1806_v1  ;;  %1790 = vmatprep.subr.bf16.mxu1 %v1806_v1  ;;  %v1814_v5 = vld [vmem:[%s2252_s0 + $0x80] sm:$0xff]   ;;  %v1815_v10 = vld [vmem:[%s2252_s0 + $0x8] sm:$0xff]   ;;  %v1818_v13 = vld [vmem:[%s2252_s0 + $0x90] sm:$0xff]  }
   0x5   :  { %1725 = vmatprep.mubr.bf16.mxu0 %v1813_v4  ;;  %1757 = vmatprep.mubr.bf16.mxu1 %v1814_v5  ;;  %v1812_v9 = vld [vmem:[%s2251_s1] sm:$0xff]   ;;  %v1816_v11 = vld [vmem:[%s2252_s0 + $0x88] sm:$0xff]   ;;  %v1819_v14 = vld [vmem:[%s2252_s0 + $0x18] sm:$0xff]  }
   0x6   :  { %v1820_v15 = vld [vmem:[%s2252_s0 + $0x98] sm:$0xff]   ;;  %v1821_v16 = vld [vmem:[%s2252_s0 + $0x20] sm:$0xff]   ;;  %v1823_v18 = vld [vmem:[%s2252_s0 + $0x28] sm:$0xff]  }
   0x7   :  { %1712 = vmatpush3.bf16.msra.mxu0 %v1806_v1  ;;  %1798 = vmatpush3.bf16.msra.mxu1 %v1806_v1  ;;  %v1822_v17 = vld [vmem:[%s2252_s0 + $0xa0] sm:$0xff]   ;;  %v1824_v19 = vld [vmem:[%s2252_s0 + $0xa8] sm:$0xff]   ;;  %v1825_v20 = vld [vmem:[%s2252_s0 + $0x30] sm:$0xff]  }
   0x8   :  { %1713 = vmatprep.subr.bf16.mxu0 %v1807_v2  ;;  %1791 = vmatprep.subr.bf16.mxu1 %v1807_v2  ;;  %v1826_v21 = vld [vmem:[%s2252_s0 + $0xb0] sm:$0xff]   ;;  %v1827_v22 = vld [vmem:[%s2252_s0 + $0x38] sm:$0xff]   ;;  %v1829_v24 = vld [vmem:[%s2252_s0 + $0x40] sm:$0xff]  }
   0x9   :  { %v1828_v23 = vld [vmem:[%s2252_s0 + $0xb8] sm:$0xff]   ;;  %v1830_v25 = vld [vmem:[%s2252_s0 + $0xc0] sm:$0xff]   ;;  %v1831_v26 = vld [vmem:[%s2252_s0 + $0x48] sm:$0xff]  }
   0xa   :  { %v1832_v27 = vld [vmem:[%s2252_s0 + $0xc8] sm:$0xff]   ;;  %v1833_v28 = vld [vmem:[%s2252_s0 + $0x50] sm:$0xff]   ;;  %v1835_v30 = vld [vmem:[%s2252_s0 + $0x58] sm:$0xff]  }
   0xb   :  { %1714 = vmatpush3.bf16.msra.mxu0 %v1807_v2  ;;  %1799 = vmatpush3.bf16.msra.mxu1 %v1807_v2  ;;  %v1834_v29 = vld [vmem:[%s2252_s0 + $0xd0] sm:$0xff]   ;;  %v1836_v31 = vld [vmem:[%s2252_s0 + $0xd8] sm:$0xff]   ;;  %v1837_v32 = vld [vmem:[%s2252_s0 + $0x60] sm:$0xff]  }
   0xc   :  { %1715 = vmatprep.subr.bf16.mxu0 %v1808_v3  ;;  %1792 = vmatprep.subr.bf16.mxu1 %v1808_v3  ;;  %v1838_v33 = vld [vmem:[%s2252_s0 + $0xe0] sm:$0xff]   ;;  %v1839_v34 = vld [vmem:[%s2252_s0 + $0x68] sm:$0xff]   ;;  %v1841_v36 = vld [vmem:[%s2252_s0 + $0x70] sm:$0xff]  }
   0xd   :  { %v1840_v35 = vld [vmem:[%s2252_s0 + $0xe8] sm:$0xff]   ;;  %v1842_v37 = vld [vmem:[%s2252_s0 + $0xf0] sm:$0xff]   ;;  %v1843_v38 = vld [vmem:[%s2252_s0 + $0x78] sm:$0xff]  }
   0xe   :  { %v1844_v39 = vld [vmem:[%s2252_s0 + $0xf8] sm:$0xff]   ;;  %v1993_v40 = vld [vmem:[%s2253_s2] ss:$0 sm:$0xff]  ;;  %v1607_v41 = vld [vmem:[%s2254_s3 + $0x8] sm:$0xff]  }
   0xf   :  { %1716 = vmatpush3.bf16.msra.mxu0 %v1808_v3  ;;  %1800 = vmatpush3.bf16.msra.mxu1 %v1808_v3  ;;  %v1623_v42 = vld [vmem:[%s2254_s3 + $0x88] sm:$0xff]   ;;  %v1320_v45 = vld [vmem:[%s2254_s3] sm:$0xff]   ;;  %v1325_v48 = vunpack.c.l.bf16 %v1607_v41  ;;  %v1326_v53 = vunpack.c.h.bf16 %v1607_v41 }
  0x10   :  { %1717 = vmatprep.subr.bf16.mxu0 %v1809_v6  ;;  %1793 = vmatprep.subr.bf16.mxu1 %v1809_v6  ;;  %v1622_v46 = vld [vmem:[%s2254_s3 + $0x80] sm:$0xff]   ;;  %v1389_v50 = vunpack.c.l.bf16 %v1623_v42  ;;  %v1390_v54 = vunpack.c.h.bf16 %v1623_v42  ;;  %v1321_v56 = vunpack.c.l.bf16 %v1320_v45  ;;  %v1322_v63 = vunpack.c.h.bf16 %v1320_v45 }
  0x11   :  { %v1385_v58 = vunpack.c.l.bf16 %v1622_v46  ;;  %v1386_v0 = vunpack.c.h.bf16 %v1622_v46 }
  0x13   :  { %1718 = vmatpush3.bf16.msra.mxu0 %v1809_v6  ;;  %1801 = vmatpush3.bf16.msra.mxu1 %v1809_v6 }
  0x14   :  { %1719 = vmatprep.subr.bf16.mxu0 %v1810_v7  ;;  %1794 = vmatprep.subr.bf16.mxu1 %v1810_v7 }
  0x17   :  { %1720 = vmatpush3.bf16.msra.mxu0 %v1810_v7  ;;  %1802 = vmatpush3.bf16.msra.mxu1 %v1810_v7 }
  0x18   :  { %1721 = vmatprep.subr.bf16.mxu0 %v1811_v8  ;;  %1795 = vmatprep.subr.bf16.mxu1 %v1811_v8 }
  0x1b   :  { %1722 = vmatpush3.bf16.msra.mxu0 %v1811_v8  ;;  %1803 = vmatpush3.bf16.msra.mxu1 %v1811_v8 }
  0x1c   :  { %1723 = vmatprep.subr.bf16.mxu0 %v1812_v9  ;;  %1796 = vmatprep.subr.bf16.mxu1 %v1812_v9 }
  0x1f   :  { %1724 = vmatpush3.bf16.msra.mxu0 %v1812_v9  ;;  %1804 = vmatpush3.bf16.msra.mxu1 %v1812_v9  ;;  %v1609_v9 = vld [vmem:[%s2254_s3 + $0x18] sm:$0xff]  }
  0x22   :  { %1726 = vmatmul.mubr.bf16.vlgmr.msra.gmra.mxu0 %v1815_v10  ;;  %1758 = vmatmul.mubr.bf16.vlgmr.msra.gmra.mxu1 %v1816_v11  ;;  %v1625_v10 = vld [vmem:[%s2254_s3 + $0x98] sm:$0xff]  }
  0x23   :  { %1729 = vmatprep.mubr.bf16.mxu0 %v1817_v12  ;;  %1761 = vmatprep.mubr.bf16.mxu1 %v1818_v13 }
  0x2a   :  { %1730 = vmatmul.mubr.bf16.gmra.mxu0 %v1819_v14  ;;  %1762 = vmatmul.mubr.bf16.gmra.mxu1 %v1820_v15 }
  0x2b   :  { %1733 = vmatprep.mubr.bf16.mxu0 %v1821_v16  ;;  %1765 = vmatprep.mubr.bf16.mxu1 %v1822_v17 }
  0x32   :  { %1734 = vmatmul.mubr.bf16.gmra.mxu0 %v1823_v18  ;;  %1766 = vmatmul.mubr.bf16.gmra.mxu1 %v1824_v19  ;;  %v1608_v19 = vld [vmem:[%s2254_s3 + $0x10] sm:$0xff]  }
  0x33   :  { %1737 = vmatprep.mubr.bf16.mxu0 %v1825_v20  ;;  %1769 = vmatprep.mubr.bf16.mxu1 %v1826_v21  ;;  %v1624_v20 = vld [vmem:[%s2254_s3 + $0x90] sm:$0xff]  }
  0x34   :  { %v1394_v41 = vunpack.c.h.bf16 %v1624_v20 }
  0x3a   :  { %1738 = vmatmul.mubr.bf16.gmra.mxu0 %v1827_v22  ;;  %1770 = vmatmul.mubr.bf16.gmra.mxu1 %v1828_v23  ;;  %v1333_v22 = vunpack.c.l.bf16 %v1609_v9 }
  0x3b   :  { %1741 = vmatprep.mubr.bf16.mxu0 %v1829_v24  ;;  %1773 = vmatprep.mubr.bf16.mxu1 %v1830_v25  ;;  %v1397_v24 = vunpack.c.l.bf16 %v1625_v10 }
  0x42   :  { %1742 = vmatmul.mubr.bf16.gmra.mxu0 %v1831_v26  ;;  %1774 = vmatmul.mubr.bf16.gmra.mxu1 %v1832_v27 }
  0x43   :  { %1745 = vmatprep.mubr.bf16.mxu0 %v1833_v28  ;;  %1777 = vmatprep.mubr.bf16.mxu1 %v1834_v29  ;;  %v1334_v29 = vunpack.c.h.bf16 %v1609_v9 }
  0x4a   :  { %1746 = vmatmul.mubr.bf16.gmra.mxu0 %v1835_v30  ;;  %1778 = vmatmul.mubr.bf16.gmra.mxu1 %v1836_v31  ;;  %v1398_v30 = vunpack.c.h.bf16 %v1625_v10 }
  0x4b   :  { %1749 = vmatprep.mubr.bf16.mxu0 %v1837_v32  ;;  %1781 = vmatprep.mubr.bf16.mxu1 %v1838_v33  ;;  %v1329_v32 = vunpack.c.l.bf16 %v1608_v19 }
  0x52   :  { %1750 = vmatmul.mubr.bf16.gmra.mxu0 %v1839_v34  ;;  %1782 = vmatmul.mubr.bf16.gmra.mxu1 %v1840_v35  ;;  %v1393_v34 = vunpack.c.l.bf16 %v1624_v20 }
  0x53   :  { %1753 = vmatprep.mubr.bf16.mxu0 %v1841_v36  ;;  %1785 = vmatprep.mubr.bf16.mxu1 %v1842_v37 }
  0x5a   :  { %1754 = vmatmul.mubr.bf16.gmra.mxu0 %v1843_v38  ;;  %1786 = vmatmul.mubr.bf16.gmra.mxu1 %v1844_v39  ;;  %v1330_v39 = vunpack.c.h.bf16 %v1608_v19 }
  0xe2   :  { %v1727_v43 = vpop.f32.mrf.mxu0  ;;  %v1759_v44 = vpop.f32.mrf.mxu1 }
  0xe3   :  { %v388_v47 = vadd.f32 %v1727_v43, %v1993_v40  ;;  %v516_v49 = vadd.f32 %v1759_v44, %v1993_v40 }
  0xe4   :  { %v379_v51 = vpop.f32.mrf.mxu0  ;;  %v507_v52 = vpop.f32.mrf.mxu1 }
  0xe5   :  { %v380_v55 = vadd.f32 %v1993_v40, %v379_v51  ;;  %v508_v57 = vadd.f32 %v1993_v40, %v507_v52  ;;  %v764_v1 = vadd.f32 %v1325_v48, %v388_v47  ;;  %v796_v2 = vadd.f32 %v1389_v50, %v516_v49  ;;  %v1611_v50 = vld [vmem:[%s2254_s3 + $0x28] sm:$0xff]  }
  0xe6   :  { %v1728_v59 = vpop.f32.mrf.mxu0  ;;  %v1760_v60 = vpop.f32.mrf.mxu1  ;;  %v1627_v51 = vld [vmem:[%s2254_s3 + $0xa8] sm:$0xff]  }
  0xe7   :  { %v391_v61 = vadd.f32 %v1728_v59, %v1993_v40  ;;  %v519_v62 = vadd.f32 %v1760_v60, %v1993_v40  ;;  %v762_v11 = vadd.f32 %v1321_v56, %v380_v55  ;;  %v794_v12 = vadd.f32 %v1385_v58, %v508_v57  ;;  %v1610_v60 = vld [vmem:[%s2254_s3 + $0x20] sm:$0xff]  }
  0xe8   :  { %v382_v3 = vpop.f32.mrf.mxu0  ;;  %v510_v4 = vpop.f32.mrf.mxu1  ;;  %v1337_v9 = vunpack.c.l.bf16 %v1610_v60 }
  0xe9   :  { %v765_v5 = vadd.f32 %v1326_v53, %v391_v61  ;;  %v797_v6 = vadd.f32 %v1390_v54, %v519_v62  ;;  %v383_v7 = vadd.f32 %v1993_v40, %v382_v3  ;;  %v511_v8 = vadd.f32 %v1993_v40, %v510_v4  ;;  %v1626_v61 = vld [vmem:[%s2254_s3 + $0xa0] sm:$0xff]  }
  0xea   :  { %v1731_v13 = vpop.f32.mrf.mxu0  ;;  %v1763_v14 = vpop.f32.mrf.mxu1 }
  0xeb   :  { %v1455_v15 = vpack.c.bf16 %v765_v5, %v764_v1  ;;  %v1535_v16 = vpack.c.bf16 %v797_v6, %v796_v2  ;;  %v763_v17 = vadd.f32 %v1322_v63, %v383_v7  ;;  %v795_v18 = vadd.f32 %v1386_v0, %v511_v8 }
  0xec   :  { %v404_v21 = vadd.f32 %v1731_v13, %v1993_v40  ;;  %v532_v23 = vadd.f32 %v1763_v14, %v1993_v40  ;;  %v395_v25 = vpop.f32.mrf.mxu0  ;;  %v523_v26 = vpop.f32.mrf.mxu1  ;;  %v1341_v63 = vunpack.c.l.bf16 %v1611_v50  ;;  %v1405_v1 = vunpack.c.l.bf16 %v1627_v51 }
  0xed   :  { %1638 = vst [vmem:[%s2255_s4 + $0x8] sm:$0xff] %v1455_v15   ;;  %1654 = vst [vmem:[%s2255_s4 + $0x88] sm:$0xff] %v1535_v16   ;;  %v1450_v27 = vpack.c.bf16 %v763_v17, %v762_v11  ;;  %v1530_v28 = vpack.c.bf16 %v795_v18, %v794_v12  ;;  %v396_v31 = vadd.f32 %v1993_v40, %v395_v25  ;;  %v1342_v6 = vunpack.c.h.bf16 %v1611_v50 }
  0xee   :  { %v524_v33 = vadd.f32 %v1993_v40, %v523_v26  ;;  %v1732_v35 = vpop.f32.mrf.mxu0  ;;  %v1764_v36 = vpop.f32.mrf.mxu1  ;;  %v768_v42 = vadd.f32 %v1333_v22, %v404_v21  ;;  %v800_v43 = vadd.f32 %v1397_v24, %v532_v23  ;;  %v1406_v7 = vunpack.c.h.bf16 %v1627_v51  ;;  %v1613_v26 = vld [vmem:[%s2254_s3 + $0x38] sm:$0xff]  }
  0xef   :  { %1451 = vst [vmem:[%s2255_s4] sm:$0xff] %v1450_v27   ;;  %1653 = vst [vmem:[%s2255_s4 + $0x80] sm:$0xff] %v1530_v28   ;;  %v407_v37 = vadd.f32 %v1732_v35, %v1993_v40  ;;  %v535_v38 = vadd.f32 %v1764_v36, %v1993_v40  ;;  %v766_v52 = vadd.f32 %v1329_v32, %v396_v31  ;;  %v1401_v11 = vunpack.c.l.bf16 %v1626_v61  ;;  %v1629_v27 = vld [vmem:[%s2254_s3 + $0xb8] sm:$0xff]   ;;  %v1612_v36 = vld [vmem:[%s2254_s3 + $0x30] sm:$0xff]  }
  0xf0   :  { %v398_v44 = vpop.f32.mrf.mxu0  ;;  %v526_v45 = vpop.f32.mrf.mxu1  ;;  %v798_v53 = vadd.f32 %v1393_v34, %v524_v33  ;;  %v1338_v16 = vunpack.c.h.bf16 %v1610_v60  ;;  %v1402_v17 = vunpack.c.h.bf16 %v1626_v61  ;;  %v1345_v50 = vunpack.c.l.bf16 %v1612_v36 }
  0xf1   :  { %v769_v46 = vadd.f32 %v1334_v29, %v407_v37  ;;  %v801_v47 = vadd.f32 %v1398_v30, %v535_v38  ;;  %v399_v48 = vadd.f32 %v1993_v40, %v398_v44  ;;  %v527_v49 = vadd.f32 %v1993_v40, %v526_v45  ;;  %v1628_v37 = vld [vmem:[%s2254_s3 + $0xb0] sm:$0xff]  }
  0xf2   :  { %v1735_v54 = vpop.f32.mrf.mxu0  ;;  %v1767_v55 = vpop.f32.mrf.mxu1 }
  0xf3   :  { %v1465_v56 = vpack.c.bf16 %v769_v46, %v768_v42  ;;  %v1545_v57 = vpack.c.bf16 %v801_v47, %v800_v43  ;;  %v767_v58 = vadd.f32 %v1330_v39, %v399_v48  ;;  %v799_v59 = vadd.f32 %v1394_v41, %v527_v49 }
  0xf4   :  { %v420_v62 = vadd.f32 %v1735_v54, %v1993_v40  ;;  %v548_v0 = vadd.f32 %v1767_v55, %v1993_v40  ;;  %v411_v2 = vpop.f32.mrf.mxu0  ;;  %v539_v3 = vpop.f32.mrf.mxu1  ;;  %v1349_v39 = vunpack.c.l.bf16 %v1613_v26  ;;  %v1413_v42 = vunpack.c.l.bf16 %v1629_v27 }
  0xf5   :  { %1640 = vst [vmem:[%s2255_s4 + $0x18] sm:$0xff] %v1465_v56   ;;  %1656 = vst [vmem:[%s2255_s4 + $0x98] sm:$0xff] %v1545_v57   ;;  %v1460_v4 = vpack.c.bf16 %v767_v58, %v766_v52  ;;  %v1540_v5 = vpack.c.bf16 %v799_v59, %v798_v53  ;;  %v412_v8 = vadd.f32 %v1993_v40, %v411_v2  ;;  %v1350_v47 = vunpack.c.h.bf16 %v1613_v26 }
  0xf6   :  { %v540_v10 = vadd.f32 %v1993_v40, %v539_v3  ;;  %v1736_v12 = vpop.f32.mrf.mxu0  ;;  %v1768_v13 = vpop.f32.mrf.mxu1  ;;  %v772_v18 = vadd.f32 %v1341_v63, %v420_v62  ;;  %v804_v19 = vadd.f32 %v1405_v1, %v548_v0  ;;  %v1414_v48 = vunpack.c.h.bf16 %v1629_v27  ;;  %v1615_v3 = vld [vmem:[%s2254_s3 + $0x48] sm:$0xff]  }
  0xf7   :  { %1639 = vst [vmem:[%s2255_s4 + $0x10] sm:$0xff] %v1460_v4   ;;  %1655 = vst [vmem:[%s2255_s4 + $0x90] sm:$0xff] %v1540_v5   ;;  %v423_v14 = vadd.f32 %v1736_v12, %v1993_v40  ;;  %v551_v15 = vadd.f32 %v1768_v13, %v1993_v40  ;;  %v770_v28 = vadd.f32 %v1337_v9, %v412_v8  ;;  %v1409_v52 = vunpack.c.l.bf16 %v1628_v37  ;;  %v1631_v4 = vld [vmem:[%s2254_s3 + $0xc8] sm:$0xff]   ;;  %v1614_v13 = vld [vmem:[%s2254_s3 + $0x40] sm:$0xff]  }
  0xf8   :  { %v414_v20 = vpop.f32.mrf.mxu0  ;;  %v542_v21 = vpop.f32.mrf.mxu1  ;;  %v802_v29 = vadd.f32 %v1401_v11, %v540_v10  ;;  %v1346_v57 = vunpack.c.h.bf16 %v1612_v36  ;;  %v1410_v58 = vunpack.c.h.bf16 %v1628_v37  ;;  %v1353_v26 = vunpack.c.l.bf16 %v1614_v13 }
  0xf9   :  { %v773_v22 = vadd.f32 %v1342_v6, %v423_v14  ;;  %v805_v23 = vadd.f32 %v1406_v7, %v551_v15  ;;  %v415_v24 = vadd.f32 %v1993_v40, %v414_v20  ;;  %v543_v25 = vadd.f32 %v1993_v40, %v542_v21  ;;  %v1630_v14 = vld [vmem:[%s2254_s3 + $0xc0] sm:$0xff]  }
  0xfa   :  { %v1739_v30 = vpop.f32.mrf.mxu0  ;;  %v1771_v31 = vpop.f32.mrf.mxu1 }
  0xfb   :  { %v1475_v32 = vpack.c.bf16 %v773_v22, %v772_v18  ;;  %v1555_v33 = vpack.c.bf16 %v805_v23, %v804_v19  ;;  %v771_v34 = vadd.f32 %v1338_v16, %v415_v24  ;;  %v803_v35 = vadd.f32 %v1402_v17, %v543_v25 }
  0xfc   :  { %v436_v38 = vadd.f32 %v1739_v30, %v1993_v40  ;;  %v564_v41 = vadd.f32 %v1771_v31, %v1993_v40  ;;  %v427_v43 = vpop.f32.mrf.mxu0  ;;  %v555_v44 = vpop.f32.mrf.mxu1  ;;  %v1357_v16 = vunpack.c.l.bf16 %v1615_v3  ;;  %v1421_v18 = vunpack.c.l.bf16 %v1631_v4 }
  0xfd   :  { %1642 = vst [vmem:[%s2255_s4 + $0x28] sm:$0xff] %v1475_v32   ;;  %1658 = vst [vmem:[%s2255_s4 + $0xa8] sm:$0xff] %v1555_v33   ;;  %v1470_v45 = vpack.c.bf16 %v771_v34, %v770_v28  ;;  %v1550_v46 = vpack.c.bf16 %v803_v35, %v802_v29  ;;  %v428_v49 = vadd.f32 %v1993_v40, %v427_v43  ;;  %v1358_v23 = vunpack.c.h.bf16 %v1615_v3 }
  0xfe   :  { %v556_v51 = vadd.f32 %v1993_v40, %v555_v44  ;;  %v1740_v53 = vpop.f32.mrf.mxu0  ;;  %v1772_v54 = vpop.f32.mrf.mxu1  ;;  %v776_v59 = vadd.f32 %v1349_v39, %v436_v38  ;;  %v808_v60 = vadd.f32 %v1413_v42, %v564_v41  ;;  %v1422_v24 = vunpack.c.h.bf16 %v1631_v4  ;;  %v1617_v44 = vld [vmem:[%s2254_s3 + $0x58] sm:$0xff]  }
  0xff   :  { %1641 = vst [vmem:[%s2255_s4 + $0x20] sm:$0xff] %v1470_v45   ;;  %1657 = vst [vmem:[%s2255_s4 + $0xa0] sm:$0xff] %v1550_v46   ;;  %v439_v55 = vadd.f32 %v1740_v53, %v1993_v40  ;;  %v567_v56 = vadd.f32 %v1772_v54, %v1993_v40  ;;  %v774_v5 = vadd.f32 %v1345_v50, %v428_v49  ;;  %v1417_v28 = vunpack.c.l.bf16 %v1630_v14  ;;  %v1633_v45 = vld [vmem:[%s2254_s3 + $0xd8] sm:$0xff]   ;;  %v1616_v54 = vld [vmem:[%s2254_s3 + $0x50] sm:$0xff]  }
 0x100   :  { %v430_v61 = vpop.f32.mrf.mxu0  ;;  %v558_v62 = vpop.f32.mrf.mxu1  ;;  %v806_v6 = vadd.f32 %v1409_v52, %v556_v51  ;;  %v1354_v33 = vunpack.c.h.bf16 %v1614_v13  ;;  %v1418_v34 = vunpack.c.h.bf16 %v1630_v14  ;;  %v1361_v3 = vunpack.c.l.bf16 %v1616_v54 }
 0x101   :  { %v777_v63 = vadd.f32 %v1350_v47, %v439_v55  ;;  %v809_v0 = vadd.f32 %v1414_v48, %v567_v56  ;;  %v431_v1 = vadd.f32 %v1993_v40, %v430_v61  ;;  %v559_v2 = vadd.f32 %v1993_v40, %v558_v62  ;;  %v1632_v55 = vld [vmem:[%s2254_s3 + $0xd0] sm:$0xff]  }
 0x102   :  { %v1743_v7 = vpop.f32.mrf.mxu0  ;;  %v1775_v8 = vpop.f32.mrf.mxu1 }
 0x103   :  { %v1485_v9 = vpack.c.bf16 %v777_v63, %v776_v59  ;;  %v1565_v10 = vpack.c.bf16 %v809_v0, %v808_v60  ;;  %v775_v11 = vadd.f32 %v1346_v57, %v431_v1  ;;  %v807_v12 = vadd.f32 %v1410_v58, %v559_v2 }
 0x104   :  { %v452_v15 = vadd.f32 %v1743_v7, %v1993_v40  ;;  %v580_v17 = vadd.f32 %v1775_v8, %v1993_v40  ;;  %v443_v19 = vpop.f32.mrf.mxu0  ;;  %v571_v20 = vpop.f32.mrf.mxu1  ;;  %v1365_v57 = vunpack.c.l.bf16 %v1617_v44  ;;  %v1429_v59 = vunpack.c.l.bf16 %v1633_v45 }
 0x105   :  { %1644 = vst [vmem:[%s2255_s4 + $0x38] sm:$0xff] %v1485_v9   ;;  %1660 = vst [vmem:[%s2255_s4 + $0xb8] sm:$0xff] %v1565_v10   ;;  %v1480_v21 = vpack.c.bf16 %v775_v11, %v774_v5  ;;  %v1560_v22 = vpack.c.bf16 %v807_v12, %v806_v6  ;;  %v444_v25 = vadd.f32 %v1993_v40, %v443_v19  ;;  %v1366_v0 = vunpack.c.h.bf16 %v1617_v44 }
 0x106   :  { %v572_v27 = vadd.f32 %v1993_v40, %v571_v20  ;;  %v1744_v29 = vpop.f32.mrf.mxu0  ;;  %v1776_v30 = vpop.f32.mrf.mxu1  ;;  %v780_v35 = vadd.f32 %v1357_v16, %v452_v15  ;;  %v812_v36 = vadd.f32 %v1421_v18, %v580_v17  ;;  %v1430_v1 = vunpack.c.h.bf16 %v1633_v45  ;;  %v1619_v20 = vld [vmem:[%s2254_s3 + $0x68] sm:$0xff]  }
 0x107   :  { %1643 = vst [vmem:[%s2255_s4 + $0x30] sm:$0xff] %v1480_v21   ;;  %1659 = vst [vmem:[%s2255_s4 + $0xb0] sm:$0xff] %v1560_v22   ;;  %v455_v31 = vadd.f32 %v1744_v29, %v1993_v40  ;;  %v583_v32 = vadd.f32 %v1776_v30, %v1993_v40  ;;  %v778_v46 = vadd.f32 %v1353_v26, %v444_v25  ;;  %v1425_v5 = vunpack.c.l.bf16 %v1632_v55  ;;  %v1635_v21 = vld [vmem:[%s2254_s3 + $0xe8] sm:$0xff]   ;;  %v1618_v30 = vld [vmem:[%s2254_s3 + $0x60] sm:$0xff]  }
 0x108   :  { %v446_v37 = vpop.f32.mrf.mxu0  ;;  %v574_v38 = vpop.f32.mrf.mxu1  ;;  %v810_v47 = vadd.f32 %v1417_v28, %v572_v27  ;;  %v1362_v10 = vunpack.c.h.bf16 %v1616_v54  ;;  %v1426_v11 = vunpack.c.h.bf16 %v1632_v55  ;;  %v1369_v44 = vunpack.c.l.bf16 %v1618_v30 }
 0x109   :  { %v781_v39 = vadd.f32 %v1358_v23, %v455_v31  ;;  %v813_v41 = vadd.f32 %v1422_v24, %v583_v32  ;;  %v447_v42 = vadd.f32 %v1993_v40, %v446_v37  ;;  %v575_v43 = vadd.f32 %v1993_v40, %v574_v38  ;;  %v1634_v31 = vld [vmem:[%s2254_s3 + $0xe0] sm:$0xff]  }
 0x10a   :  { %v1747_v48 = vpop.f32.mrf.mxu0  ;;  %v1779_v49 = vpop.f32.mrf.mxu1 }
 0x10b   :  { %v1495_v50 = vpack.c.bf16 %v781_v39, %v780_v35  ;;  %v1575_v51 = vpack.c.bf16 %v813_v41, %v812_v36  ;;  %v779_v52 = vadd.f32 %v1354_v33, %v447_v42  ;;  %v811_v53 = vadd.f32 %v1418_v34, %v575_v43 }
 0x10c   :  { %v468_v56 = vadd.f32 %v1747_v48, %v1993_v40  ;;  %v596_v58 = vadd.f32 %v1779_v49, %v1993_v40  ;;  %v459_v60 = vpop.f32.mrf.mxu0  ;;  %v587_v61 = vpop.f32.mrf.mxu1  ;;  %v1373_v33 = vunpack.c.l.bf16 %v1619_v20  ;;  %v1437_v35 = vunpack.c.l.bf16 %v1635_v21 }
 0x10d   :  { %1646 = vst [vmem:[%s2255_s4 + $0x48] sm:$0xff] %v1495_v50   ;;  %1662 = vst [vmem:[%s2255_s4 + $0xc8] sm:$0xff] %v1575_v51   ;;  %v1490_v62 = vpack.c.bf16 %v779_v52, %v778_v46  ;;  %v1570_v63 = vpack.c.bf16 %v811_v53, %v810_v47  ;;  %v460_v2 = vadd.f32 %v1993_v40, %v459_v60  ;;  %v1374_v41 = vunpack.c.h.bf16 %v1619_v20 }
 0x10e   :  { %v588_v4 = vadd.f32 %v1993_v40, %v587_v61  ;;  %v1748_v6 = vpop.f32.mrf.mxu0  ;;  %v1780_v7 = vpop.f32.mrf.mxu1  ;;  %v784_v12 = vadd.f32 %v1365_v57, %v468_v56  ;;  %v816_v13 = vadd.f32 %v1429_v59, %v596_v58  ;;  %v1438_v42 = vunpack.c.h.bf16 %v1635_v21  ;;  %v1621_v61 = vld [vmem:[%s2254_s3 + $0x78] sm:$0xff]  }
 0x10f   :  { %1645 = vst [vmem:[%s2255_s4 + $0x40] sm:$0xff] %v1490_v62   ;;  %1661 = vst [vmem:[%s2255_s4 + $0xc0] sm:$0xff] %v1570_v63   ;;  %v471_v8 = vadd.f32 %v1748_v6, %v1993_v40  ;;  %v599_v9 = vadd.f32 %v1780_v7, %v1993_v40  ;;  %v782_v22 = vadd.f32 %v1361_v3, %v460_v2  ;;  %v1433_v46 = vunpack.c.l.bf16 %v1634_v31  ;;  %v1637_v62 = vld [vmem:[%s2254_s3 + $0xf8] sm:$0xff]   ;;  %v1620_v7 = vld [vmem:[%s2254_s3 + $0x70] sm:$0xff]  }
 0x110   :  { %v462_v14 = vpop.f32.mrf.mxu0  ;;  %v590_v15 = vpop.f32.mrf.mxu1  ;;  %v814_v23 = vadd.f32 %v1425_v5, %v588_v4  ;;  %v1370_v51 = vunpack.c.h.bf16 %v1618_v30  ;;  %v1434_v52 = vunpack.c.h.bf16 %v1634_v31  ;;  %v1377_v20 = vunpack.c.l.bf16 %v1620_v7 }
 0x111   :  { %v785_v16 = vadd.f32 %v1366_v0, %v471_v8  ;;  %v817_v17 = vadd.f32 %v1430_v1, %v599_v9  ;;  %v463_v18 = vadd.f32 %v1993_v40, %v462_v14  ;;  %v591_v19 = vadd.f32 %v1993_v40, %v590_v15  ;;  %v1636_v8 = vld [vmem:[%s2254_s3 + $0xf0] sm:$0xff]  }
 0x112   :  { %v1751_v24 = vpop.f32.mrf.mxu0  ;;  %v1783_v25 = vpop.f32.mrf.mxu1 }
 0x113   :  { %v1505_v26 = vpack.c.bf16 %v785_v16, %v784_v12  ;;  %v1585_v27 = vpack.c.bf16 %v817_v17, %v816_v13  ;;  %v783_v28 = vadd.f32 %v1362_v10, %v463_v18  ;;  %v815_v29 = vadd.f32 %v1426_v11, %v591_v19 }
 0x114   :  { %v484_v32 = vadd.f32 %v1751_v24, %v1993_v40  ;;  %v612_v34 = vadd.f32 %v1783_v25, %v1993_v40  ;;  %v475_v36 = vpop.f32.mrf.mxu0  ;;  %v603_v37 = vpop.f32.mrf.mxu1  ;;  %v1381_v10 = vunpack.c.l.bf16 %v1621_v61  ;;  %v1445_v12 = vunpack.c.l.bf16 %v1637_v62 }
 0x115   :  { %1648 = vst [vmem:[%s2255_s4 + $0x58] sm:$0xff] %v1505_v26   ;;  %1664 = vst [vmem:[%s2255_s4 + $0xd8] sm:$0xff] %v1585_v27   ;;  %v1500_v38 = vpack.c.bf16 %v783_v28, %v782_v22  ;;  %v1580_v39 = vpack.c.bf16 %v815_v29, %v814_v23  ;;  %v476_v43 = vadd.f32 %v1993_v40, %v475_v36  ;;  %v1382_v17 = vunpack.c.h.bf16 %v1621_v61 }
 0x116   :  { %v604_v45 = vadd.f32 %v1993_v40, %v603_v37  ;;  %v1752_v47 = vpop.f32.mrf.mxu0  ;;  %v1784_v48 = vpop.f32.mrf.mxu1  ;;  %v788_v53 = vadd.f32 %v1373_v33, %v484_v32  ;;  %v820_v54 = vadd.f32 %v1437_v35, %v612_v34  ;;  %v1446_v18 = vunpack.c.h.bf16 %v1637_v62 }
 0x117   :  { %1647 = vst [vmem:[%s2255_s4 + $0x50] sm:$0xff] %v1500_v38   ;;  %1663 = vst [vmem:[%s2255_s4 + $0xd0] sm:$0xff] %v1580_v39   ;;  %v487_v49 = vadd.f32 %v1752_v47, %v1993_v40  ;;  %v615_v50 = vadd.f32 %v1784_v48, %v1993_v40  ;;  %v786_v63 = vadd.f32 %v1369_v44, %v476_v43  ;;  %v1441_v22 = vunpack.c.l.bf16 %v1636_v8 }
 0x118   :  { %v478_v55 = vpop.f32.mrf.mxu0  ;;  %v606_v56 = vpop.f32.mrf.mxu1  ;;  %v818_v0 = vadd.f32 %v1433_v46, %v604_v45  ;;  %v1378_v27 = vunpack.c.h.bf16 %v1620_v7  ;;  %v1442_v28 = vunpack.c.h.bf16 %v1636_v8 }
 0x119   :  { %v789_v57 = vadd.f32 %v1374_v41, %v487_v49  ;;  %v821_v58 = vadd.f32 %v1438_v42, %v615_v50  ;;  %v479_v59 = vadd.f32 %v1993_v40, %v478_v55  ;;  %v607_v60 = vadd.f32 %v1993_v40, %v606_v56 }
 0x11a   :  { %v1755_v1 = vpop.f32.mrf.mxu0  ;;  %v1787_v2 = vpop.f32.mrf.mxu1 }
 0x11b   :  { %v1515_v3 = vpack.c.bf16 %v789_v57, %v788_v53  ;;  %v1595_v4 = vpack.c.bf16 %v821_v58, %v820_v54  ;;  %v787_v5 = vadd.f32 %v1370_v51, %v479_v59  ;;  %v819_v6 = vadd.f32 %v1434_v52, %v607_v60 }
 0x11c   :  { %v500_v9 = vadd.f32 %v1755_v1, %v1993_v40  ;;  %v628_v11 = vadd.f32 %v1787_v2, %v1993_v40  ;;  %v491_v13 = vpop.f32.mrf.mxu0  ;;  %v619_v14 = vpop.f32.mrf.mxu1 }
 0x11d   :  { %1650 = vst [vmem:[%s2255_s4 + $0x68] sm:$0xff] %v1515_v3   ;;  %1666 = vst [vmem:[%s2255_s4 + $0xe8] sm:$0xff] %v1595_v4   ;;  %v1510_v15 = vpack.c.bf16 %v787_v5, %v786_v63  ;;  %v1590_v16 = vpack.c.bf16 %v819_v6, %v818_v0  ;;  %v492_v19 = vadd.f32 %v1993_v40, %v491_v13 }
 0x11e   :  { %v620_v21 = vadd.f32 %v1993_v40, %v619_v14  ;;  %v1756_v23 = vpop.f32.mrf.mxu0  ;;  %v1788_v24 = vpop.f32.mrf.mxu1  ;;  %v792_v29 = vadd.f32 %v1381_v10, %v500_v9  ;;  %v824_v30 = vadd.f32 %v1445_v12, %v628_v11 }
 0x11f   :  { %1649 = vst [vmem:[%s2255_s4 + $0x60] sm:$0xff] %v1510_v15   ;;  %1665 = vst [vmem:[%s2255_s4 + $0xe0] sm:$0xff] %v1590_v16   ;;  %v503_v25 = vadd.f32 %v1756_v23, %v1993_v40  ;;  %v631_v26 = vadd.f32 %v1788_v24, %v1993_v40  ;;  %v790_v37 = vadd.f32 %v1377_v20, %v492_v19 }
 0x120   :  { %v494_v31 = vpop.f32.mrf.mxu0  ;;  %v622_v32 = vpop.f32.mrf.mxu1  ;;  %v822_v38 = vadd.f32 %v1441_v22, %v620_v21 }
 0x121   :  { %v793_v33 = vadd.f32 %v1382_v17, %v503_v25  ;;  %v825_v34 = vadd.f32 %v1446_v18, %v631_v26  ;;  %v495_v35 = vadd.f32 %v1993_v40, %v494_v31  ;;  %v623_v36 = vadd.f32 %v1993_v40, %v622_v32 }
 0x123   :  { %v1525_v39 = vpack.c.bf16 %v793_v33, %v792_v29  ;;  %v1605_v41 = vpack.c.bf16 %v825_v34, %v824_v30  ;;  %v791_v42 = vadd.f32 %v1378_v27, %v495_v35  ;;  %v823_v43 = vadd.f32 %v1442_v28, %v623_v36 }
 0x125   :  { %1652 = vst [vmem:[%s2255_s4 + $0x78] sm:$0xff] %v1525_v39   ;;  %1668 = vst [vmem:[%s2255_s4 + $0xf8] sm:$0xff] %v1605_v41   ;;  %v1520_v44 = vpack.c.bf16 %v791_v42, %v790_v37  ;;  %v1600_v45 = vpack.c.bf16 %v823_v43, %v822_v38 }
 0x127   :  { %1651 = vst [vmem:[%s2255_s4 + $0x70] sm:$0xff] %v1520_v44   ;;  %1667 = vst [vmem:[%s2255_s4 + $0xf0] sm:$0xff] %v1600_v45  }

</bundles_post_ra>
